<compile_context>
chip_gen: v7x
topology: tpu7x:2x2x1
jax: 0.10.0
libtpu: 0.0.40
codegen_flags: <defaults>
</compile_context>

<pallas_src>
import functools

import jax
import jax.numpy as jnp
from jax.experimental import pallas as pl
from jax.experimental.pallas import tpu as pltpu


# ----------------------------------------------------------------------------
# Pallas kernel: K-tiled (TM, TK) @ (TK, TN) with f32 accumulator scratch,
# bias (+ ReLU) epilogue on the last K step. bf16 operands, f32 accumulate.
# ----------------------------------------------------------------------------
def _matmul_bias_kernel(x_ref, w_ref, b_ref, o_ref, acc_ref, *, relu):
    # x: (TM, TK) bf16   w: (TK, TN) bf16   b: (1, TN) f32
    # o: (TM, TN) out dtype   acc: (TM, TN) f32 scratch, resident across K axis
    @pl.when(pl.program_id(2) == 0)
    def _():
        acc_ref[...] = jnp.zeros_like(acc_ref)

    acc_ref[...] += jnp.dot(x_ref[...], w_ref[...],
                            preferred_element_type=jnp.float32)

    @pl.when(pl.program_id(2) == pl.num_programs(2) - 1)
    def _():
        out = acc_ref[...] + b_ref[...]
        if relu:
            out = jnp.maximum(out, 0.0)
        o_ref[...] = out.astype(o_ref.dtype)


# ----------------------------------------------------------------------------
# Conv2d = im2col (XLA-fused glue under jit) + Pallas matmul kernel
# ----------------------------------------------------------------------------
def _round_up(x, m):
    return (x + m - 1) // m * m


def _im2col(x_nhwc, kh, kw, stride, pad):
    # Cast to bf16 BEFORE padding so the (large) patch buffer materializes in
    # bf16, halving its HBM footprint.
    x = x_nhwc.astype(jnp.bfloat16)
    x = jnp.pad(x, ((0, 0), (pad, pad), (pad, pad), (0, 0)))
    N, Hp, Wp, C = x.shape
    Ho = (Hp - kh) // stride + 1
    Wo = (Wp - kw) // stride + 1
    cols = []
    for dy in range(kh):
        for dx in range(kw):
            cols.append(x[:, dy:dy + stride * Ho:stride,
                          dx:dx + stride * Wo:stride, :])
    patches = jnp.concatenate(cols, axis=-1)          # (N, Ho, Wo, kh*kw*C)
    return patches.reshape(N * Ho * Wo, kh * kw * C), (N, Ho, Wo)


def conv2d_pallas(x_nhwc, w, b, *, stride=1, pad=1, relu=False,
                  out_dtype=jnp.bfloat16):
    """w layout: (KH, KW, Cin, Cout) — i.e. PyTorch (Cout,Cin,KH,KW).transpose(2,3,1,0)."""
    kh, kw, cin, cout = w.shape
    patches, (N, Ho, Wo) = _im2col(x_nhwc, kh, kw, stride, pad)
    M, K = patches.shape

    # --- lane-dense zero padding (exact: zeros contribute nothing) -----------
    # Small toy heads stay at 128; bigger layers use 256-multiples to fill the
    # 2x256x256 MXU on v6e/v7x.
    K_pad = 128 if K <= 128 else _round_up(K, 256)
    C_pad = 128 if cout <= 128 else _round_up(cout, 256)

    # --- tiling ---------------------------------------------------------------
    # M axis: always >= 2 tiles so the "parallel" axis can shard across v7x's
    # two TensorCores and the pipeline has steps to overlap. 16-row multiples
    # keep bf16 LHS tiles 16-sublane aligned.
    M16 = _round_up(M, 16)
    TM = min(_round_up(pl.cdiv(M16, 2), 16), 512)
    M_pad = _round_up(M, TM)
    if M_pad // TM < 2:                 # tiny-M safety: extra tile is pure pad
        M_pad = 2 * TM
    grid_m = M_pad // TM

    TN = min(C_pad, 256)
    grid_n = C_pad // TN

    TK = 512 if (K_pad >= 512 and K_pad % 512 == 0) else min(K_pad, 256)
    grid_k = K_pad // TK

    patches = jnp.pad(patches, ((0, M_pad - M), (0, K_pad - K)))  # bf16 already
    wm = jnp.pad(w.reshape(K, cout).astype(jnp.bfloat16),
                 ((0, K_pad - K), (0, C_pad - cout)))
    bm = jnp.pad(b.reshape(1, cout).astype(jnp.float32),
                 ((0, 0), (0, C_pad - cout)))

    out_bytes = jnp.dtype(out_dtype).itemsize
    # Explicit VMEM budget: double-buffered input/output tiles + f32
    # accumulator + generous headroom, capped at v7x's 64 MiB physical VMEM.
    tile_bytes = TM * TK * 2 + TK * TN * 2 + TN * 4 + TM * TN * out_bytes
    vmem_limit = int(min(2 * tile_bytes + TM * TN * 4 + (8 << 20), 64 << 20))

    cost = pl.CostEstimate(
        flops=2 * M * K * cout,
        transcendentals=0,
        bytes_accessed=M * K * 2 + K * cout * 2 + cout * 4 + M * cout * out_bytes,
    )

    out = pl.pallas_call(
        functools.partial(_matmul_bias_kernel, relu=relu),
        out_shape=jax.ShapeDtypeStruct((M_pad, C_pad), out_dtype),
        grid=(grid_m, grid_n, grid_k),
        in_specs=[
            pl.BlockSpec((TM, TK), lambda i, j, k: (i, k)),
            pl.BlockSpec((TK, TN), lambda i, j, k: (k, j)),
            pl.BlockSpec((1, TN), lambda i, j, k: (0, j)),
        ],
        out_specs=pl.BlockSpec((TM, TN), lambda i, j, k: (i, j)),
        scratch_shapes=[pltpu.VMEM((TM, TN), jnp.float32)],
        compiler_params=pltpu.CompilerParams(
            dimension_semantics=("parallel", "parallel", "arbitrary"),
            vmem_limit_bytes=vmem_limit),
        cost_estimate=cost,
    )(patches, wm, bm)
    return out[:M, :cout].reshape(N, Ho, Wo, cout)


def batchnorm2d(x_nhwc, bn, eps=1e-5):
    """Eval-mode BatchNorm2d (running stats), computed in f32.

    Kept as an XLA-fused elementwise affine rather than folded into the header
    conv weights: the header conv zero-pads its input, so folding the additive
    shift into the conv bias would be inexact at the spatial borders."""
    scale = bn["gamma"] * jax.lax.rsqrt(bn["var"] + eps)
    return (x_nhwc.astype(jnp.float32) - bn["mean"]) * scale + bn["beta"]


# ----------------------------------------------------------------------------
# Synthetic SSD configuration + deterministic parameter init
# ----------------------------------------------------------------------------
class Cfg:
    class_num = 3
    num_anchors = (4, 4, 4)            # per feature map
    featmap_channels = (16, 32, 64)    # channels of the 3 header feature maps


def _conv_init(key, kh, kw, cin, cout):
    k1, k2 = jax.random.split(key)
    fan_in, fan_out = kh * kw * cin, kh * kw * cout
    limit = (6.0 / (fan_in + fan_out)) ** 0.5       # xavier_uniform
    w = jax.random.uniform(k1, (kh, kw, cin, cout), jnp.float32, -limit, limit)
    b = jax.random.uniform(k2, (cout,), jnp.float32, -0.1, 0.1)
    return {"w": w, "b": b}


def build_ssd_params(key, cfg):
    keys = iter(jax.random.split(key, 32))
    # base "ModuleList": each entry = conv3x3 (+ReLU), mirrors a VGG-ish stem
    base = [
        {**_conv_init(next(keys), 3, 3, 3, 16), "stride": 1, "pad": 1, "relu": True},
        {**_conv_init(next(keys), 3, 3, 16, 16), "stride": 1, "pad": 1, "relu": True},
        {**_conv_init(next(keys), 3, 3, 16, 32), "stride": 2, "pad": 1, "relu": True},
        {**_conv_init(next(keys), 3, 3, 32, 32), "stride": 1, "pad": 1, "relu": True},
    ]
    base_layer_index = (2, 4)
    # BatchNorm2d(cfg.featmap_channels[0]) — eval-mode running stats
    c0 = cfg.featmap_channels[0]
    bn = {
        "gamma": 1.0 + 0.1 * jax.random.normal(next(keys), (c0,), jnp.float32),
        "beta": 0.1 * jax.random.normal(next(keys), (c0,), jnp.float32),
        "mean": 0.1 * jax.random.normal(next(keys), (c0,), jnp.float32),
        "var": jax.random.uniform(next(keys), (c0,), jnp.float32, 0.5, 1.5),
    }
    extra = [
        {**_conv_init(next(keys), 3, 3, 32, 64), "stride": 2, "pad": 1, "relu": True},
    ]
    conf_net, loc_net = [], []
    for ci, na in zip(cfg.featmap_channels, cfg.num_anchors):
        conf_net.append({**_conv_init(next(keys), 3, 3, ci, na * cfg.class_num),
                         "stride": 1, "pad": 1, "relu": False})
        loc_net.append({**_conv_init(next(keys), 3, 3, ci, na * 4),
                        "stride": 1, "pad": 1, "relu": False})
    return {"base": base, "base_layer_index": base_layer_index, "bn": bn,
            "extra": extra, "conf_net": conf_net, "loc_net": loc_net}


# ----------------------------------------------------------------------------
# SSD forward — mirrors SSD.forward / SSD.compute_header exactly
# ----------------------------------------------------------------------------
def _apply_conv_layer(x, layer):
    # backbone layers emit bf16 (next layer re-casts to bf16 for the MXU anyway)
    return conv2d_pallas(x, layer["w"], layer["b"], stride=layer["stride"],
                         pad=layer["pad"], relu=layer["relu"],
                         out_dtype=jnp.bfloat16)


def _compute_header(params, cfg, i, y):
    # conf and loc are both 3x3/s1/p1 convs over the same feature map, so they
    # are fused into a single im2col + matmul (weights concatenated along Cout)
    # and split afterwards. Reshapes are identical to the PyTorch
    # permute(0,2,3,1).view(N,-1,class_num) / view(N,-1,4). Header outputs stay
    # f32 (they are the returned tensors).
    conf_layer = params["conf_net"][i]
    loc_layer = params["loc_net"][i]
    w = jnp.concatenate([conf_layer["w"], loc_layer["w"]], axis=-1)
    b = jnp.concatenate([conf_layer["b"], loc_layer["b"]], axis=-1)
    out = conv2d_pallas(y, w, b, stride=1, pad=1, relu=False,
                        out_dtype=jnp.float32)
    N = out.shape[0]
    c_ch = conf_layer["w"].shape[-1]
    conf = out[..., :c_ch].reshape(N, -1, cfg.class_num)
    loc = out[..., c_ch:].reshape(N, -1, 4)
    return conf, loc


def ssd_forward(params, cfg, x_nchw):
    x = jnp.transpose(x_nchw, (0, 2, 3, 1)).astype(jnp.float32)  # NCHW -> NHWC
    confidences, locations = [], []
    base_start_index = 0
    all_start_index = 0
    for i, index in enumerate(params["base_layer_index"]):
        for layer in params["base"][base_start_index:index]:
            x = _apply_conv_layer(x, layer)
        if i == 0:
            y = batchnorm2d(x, params["bn"])
        else:
            y = x
        conf, loc = _compute_header(params, cfg, all_start_index, y)
        confidences.append(conf)
        locations.append(loc)
        base_start_index += index      # replicates the original accumulation quirk
        all_start_index += 1
    for layer in params["extra"]:
        x = _apply_conv_layer(x, layer)
        conf, loc = _compute_header(params, cfg, all_start_index, x)
        confidences.append(conf)
        locations.append(loc)
        all_start_index += 1
    confidences = jnp.concatenate(confidences, axis=1)
    locations = jnp.concatenate(locations, axis=1)
    return confidences, locations


# ----------------------------------------------------------------------------
if __name__ == "__main__":
    cfg = Cfg()
    key = jax.random.PRNGKey(0)
    pkey, xkey = jax.random.split(key)
    params = build_ssd_params(pkey, cfg)

    # small NCHW input, matching the PyTorch convention
    x = jax.random.normal(xkey, (2, 3, 16, 16), jnp.float32)

    # JIT the entire forward pass (params/cfg closed over as constants) so the
    # im2col glue fuses and all Pallas matmuls are launched back-to-back.
    fwd = jax.jit(functools.partial(ssd_forward, params, cfg))

    conf, loc = fwd(x)
    conf, loc = jax.block_until_ready(conf), jax.block_until_ready(loc)

    # 16*16*4 + 8*8*4 + 4*4*4 = 1344 prior boxes
    assert conf.shape == (2, 1344, cfg.class_num), conf.shape
    assert loc.shape == (2, 1344, 4), loc.shape
    assert bool(jnp.isfinite(conf).all()) and bool(jnp.isfinite(loc).all())
    print("KERNEL_OK")
</pallas_src>

<mosaic_0001>
module attributes {stable_mosaic.version = 11 : i64} {
  func.func @_matmul_bias_kernel(%arg0: i32, %arg1: i32, %arg2: i32, %arg3: memref<256x128xbf16, #tpu.memory_space<vmem>>, %arg4: memref<128x128xbf16, #tpu.memory_space<vmem>>, %arg5: memref<1x128xf32, #tpu.memory_space<vmem>>, %arg6: memref<256x128xbf16, #tpu.memory_space<vmem>>, %arg7: memref<256x128xf32, #tpu.memory_space<vmem>>) attributes {dimension_semantics = [#tpu.dimension_semantics<parallel>, #tpu.dimension_semantics<parallel>, #tpu.dimension_semantics<arbitrary>], iteration_bounds = array<i64: 2, 1, 1>, scalar_prefetch = 0 : i64, scratch_operands = 1 : i64, tpu.core_type = #tpu.core_type<tc>, window_params = [{transform_indices = @transform_0, window_bounds = array<i64: 256, 128>}, {transform_indices = @transform_1, window_bounds = array<i64: 128, 128>}, {transform_indices = @transform_2, window_bounds = array<i64: 1, 128>}, {transform_indices = @transform_3, window_bounds = array<i64: 256, 128>}]} {
    %c0_i32 = arith.constant 0 : i32
    %0 = arith.cmpi eq, %arg2, %c0_i32 : i32
    %1 = arith.extui %0 : i1 to i32
    %c0_i32_0 = arith.constant 0 : i32
    %2 = arith.cmpi ne, %1, %c0_i32_0 : i32
    scf.if %2 {
      %cst_10 = arith.constant 0.000000e+00 : f32
      %12 = vector.broadcast %cst_10 : f32 to vector<256x128xf32>
      %c0_11 = arith.constant 0 : index
      %c0_12 = arith.constant 0 : index
      %13 = vector.load %arg7[%c0_11, %c0_12] : memref<256x128xf32, #tpu.memory_space<vmem>>, vector<256x128xf32>
      tpu.vector_store %arg7[%c0_11, %c0_12], %12 {strides = array<i32>} : memref<256x128xf32, #tpu.memory_space<vmem>>, vector<256x128xf32>,
    } else {
    }
    %c0 = arith.constant 0 : index
    %c0_1 = arith.constant 0 : index
    %3 = vector.load %arg7[%c0, %c0_1] : memref<256x128xf32, #tpu.memory_space<vmem>>, vector<256x128xf32>
    %c0_2 = arith.constant 0 : index
    %c0_3 = arith.constant 0 : index
    %4 = vector.load %arg3[%c0_2, %c0_3] : memref<256x128xbf16, #tpu.memory_space<vmem>>, vector<256x128xbf16>
    %c0_4 = arith.constant 0 : index
    %c0_5 = arith.constant 0 : index
    %5 = vector.load %arg4[%c0_4, %c0_5] : memref<128x128xbf16, #tpu.memory_space<vmem>>, vector<128x128xbf16>
    %cst = arith.constant dense<0.000000e+00> : vector<256x128xf32>
    %6 = tpu.matmul %4, %5, %cst {dimension_numbers = #tpu.dot_dimension_numbers<[1], [0], [0], [1], [0, 0, 1, 1], [], []>} : vector<256x128xbf16>, vector<128x128xbf16>, vector<256x128xf32> -> vector<256x128xf32>
    %7 = arith.addf %3, %6 : vector<256x128xf32>
    %c0_6 = arith.constant 0 : index
    %c0_7 = arith.constant 0 : index
    %8 = vector.load %arg7[%c0_6, %c0_7] : memref<256x128xf32, #tpu.memory_space<vmem>>, vector<256x128xf32>
    tpu.vector_store %arg7[%c0_6, %c0_7], %7 {strides = array<i32>} : memref<256x128xf32, #tpu.memory_space<vmem>>, vector<256x128xf32>,
    %c0_i32_8 = arith.constant 0 : i32
    %9 = arith.cmpi eq, %arg2, %c0_i32_8 : i32
    %10 = arith.extui %9 : i1 to i32
    %c0_i32_9 = arith.constant 0 : i32
    %11 = arith.cmpi ne, %10, %c0_i32_9 : i32
    scf.if %11 {
      %c0_10 = arith.constant 0 : index
      %c0_11 = arith.constant 0 : index
      %12 = vector.load %arg7[%c0_10, %c0_11] : memref<256x128xf32, #tpu.memory_space<vmem>>, vector<256x128xf32>
      %c0_12 = arith.constant 0 : index
      %c0_13 = arith.constant 0 : index
      %13 = vector.load %arg5[%c0_12, %c0_13] : memref<1x128xf32, #tpu.memory_space<vmem>>, vector<1x128xf32>
      %14 = vector.broadcast %13 : vector<1x128xf32> to vector<256x128xf32>
      %15 = arith.addf %12, %14 : vector<256x128xf32>
      %cst_14 = arith.constant 0.000000e+00 : f32
      %16 = vector.broadcast %cst_14 : f32 to vector<256x128xf32>
      %17 = arith.maximumf %15, %16 : vector<256x128xf32>
      %18 = arith.truncf %17 : vector<256x128xf32> to vector<256x128xbf16>
      %c0_15 = arith.constant 0 : index
      %c0_16 = arith.constant 0 : index
      %19 = vector.load %arg6[%c0_15, %c0_16] : memref<256x128xbf16, #tpu.memory_space<vmem>>, vector<256x128xbf16>
      tpu.vector_store %arg6[%c0_15, %c0_16], %18 {strides = array<i32>} : memref<256x128xbf16, #tpu.memory_space<vmem>>, vector<256x128xbf16>,
    } else {
    }
    return
  }
  func.func @transform_0(%arg0: i32, %arg1: i32, %arg2: i32) -> (i32, i32) {
    %c0_i32 = arith.constant 0 : i32
    return %arg0, %arg2 : i32, i32
  }
  func.func @transform_1(%arg0: i32, %arg1: i32, %arg2: i32) -> (i32, i32) {
    %c0_i32 = arith.constant 0 : i32
    return %arg2, %arg1 : i32, i32
  }
  func.func @transform_2(%arg0: i32, %arg1: i32, %arg2: i32) -> (i32, i32) {
    %c0_i32 = arith.constant 0 : i32
    %c0_i32_0 = arith.constant 0 : i32
    return %c0_i32, %arg1 : i32, i32
  }
  func.func @transform_3(%arg0: i32, %arg1: i32, %arg2: i32) -> (i32, i32) {
    %c0_i32 = arith.constant 0 : i32
    return %arg0, %arg1 : i32, i32
  }
}

module attributes {stable_mosaic.version = 11 : i64} {
  func.func @_matmul_bias_kernel(%arg0: i32, %arg1: i32, %arg2: i32, %arg3: memref<256x256xbf16, #tpu.memory_space<vmem>>, %arg4: memref<256x128xbf16, #tpu.memory_space<vmem>>, %arg5: memref<1x128xf32, #tpu.memory_space<vmem>>, %arg6: memref<256x128xbf16, #tpu.memory_space<vmem>>, %arg7: memref<256x128xf32, #tpu.memory_space<vmem>>) attributes {dimension_semantics = [#tpu.dimension_semantics<parallel>, #tpu.dimension_semantics<parallel>, #tpu.dimension_semantics<arbitrary>], iteration_bounds = array<i64: 2, 1, 1>, scalar_prefetch = 0 : i64, scratch_operands = 1 : i64, tpu.core_type = #tpu.core_type<tc>, window_params = [{transform_indices = @transform_0, window_bounds = array<i64: 256, 256>}, {transform_indices = @transform_1, window_bounds = array<i64: 256, 128>}, {transform_indices = @transform_2, window_bounds = array<i64: 1, 128>}, {transform_indices = @transform_3, window_bounds = array<i64: 256, 128>}]} {
    %c0_i32 = arith.constant 0 : i32
    %0 = arith.cmpi eq, %arg2, %c0_i32 : i32
    %1 = arith.extui %0 : i1 to i32
    %c0_i32_0 = arith.constant 0 : i32
    %2 = arith.cmpi ne, %1, %c0_i32_0 : i32
    scf.if %2 {
      %cst_10 = arith.constant 0.000000e+00 : f32
      %12 = vector.broadcast %cst_10 : f32 to vector<256x128xf32>
      %c0_11 = arith.constant 0 : index
      %c0_12 = arith.constant 0 : index
      %13 = vector.load %arg7[%c0_11, %c0_12] : memref<256x128xf32, #tpu.memory_space<vmem>>, vector<256x128xf32>
      tpu.vector_store %arg7[%c0_11, %c0_12], %12 {strides = array<i32>} : memref<256x128xf32, #tpu.memory_space<vmem>>, vector<256x128xf32>,
    } else {
    }
    %c0 = arith.constant 0 : index
    %c0_1 = arith.constant 0 : index
    %3 = vector.load %arg7[%c0, %c0_1] : memref<256x128xf32, #tpu.memory_space<vmem>>, vector<256x128xf32>
    %c0_2 = arith.constant 0 : index
    %c0_3 = arith.constant 0 : index
    %4 = vector.load %arg3[%c0_2, %c0_3] : memref<256x256xbf16, #tpu.memory_space<vmem>>, vector<256x256xbf16>
    %c0_4 = arith.constant 0 : index
    %c0_5 = arith.constant 0 : index
    %5 = vector.load %arg4[%c0_4, %c0_5] : memref<256x128xbf16, #tpu.memory_space<vmem>>, vector<256x128xbf16>
    %cst = arith.constant dense<0.000000e+00> : vector<256x128xf32>
    %6 = tpu.matmul %4, %5, %cst {dimension_numbers = #tpu.dot_dimension_numbers<[1], [0], [0], [1], [0, 0, 1, 1], [], []>} : vector<256x256xbf16>, vector<256x128xbf16>, vector<256x128xf32> -> vector<256x128xf32>
    %7 = arith.addf %3, %6 : vector<256x128xf32>
    %c0_6 = arith.constant 0 : index
    %c0_7 = arith.constant 0 : index
    %8 = vector.load %arg7[%c0_6, %c0_7] : memref<256x128xf32, #tpu.memory_space<vmem>>, vector<256x128xf32>
    tpu.vector_store %arg7[%c0_6, %c0_7], %7 {strides = array<i32>} : memref<256x128xf32, #tpu.memory_space<vmem>>, vector<256x128xf32>,
    %c0_i32_8 = arith.constant 0 : i32
    %9 = arith.cmpi eq, %arg2, %c0_i32_8 : i32
    %10 = arith.extui %9 : i1 to i32
    %c0_i32_9 = arith.constant 0 : i32
    %11 = arith.cmpi ne, %10, %c0_i32_9 : i32
    scf.if %11 {
      %c0_10 = arith.constant 0 : index
      %c0_11 = arith.constant 0 : index
      %12 = vector.load %arg7[%c0_10, %c0_11] : memref<256x128xf32, #tpu.memory_space<vmem>>, vector<256x128xf32>
      %c0_12 = arith.constant 0 : index
      %c0_13 = arith.constant 0 : index
      %13 = vector.load %arg5[%c0_12, %c0_13] : memref<1x128xf32, #tpu.memory_space<vmem>>, vector<1x128xf32>
      %14 = vector.broadcast %13 : vector<1x128xf32> to vector<256x128xf32>
      %15 = arith.addf %12, %14 : vector<256x128xf32>
      %cst_14 = arith.constant 0.000000e+00 : f32
      %16 = vector.broadcast %cst_14 : f32 to vector<256x128xf32>
      %17 = arith.maximumf %15, %16 : vector<256x128xf32>
      %18 = arith.truncf %17 : vector<256x128xf32> to vector<256x128xbf16>
      %c0_15 = arith.constant 0 : index
      %c0_16 = arith.constant 0 : index
      %19 = vector.load %arg6[%c0_15, %c0_16] : memref<256x128xbf16, #tpu.memory_space<vmem>>, vector<256x128xbf16>
      tpu.vector_store %arg6[%c0_15, %c0_16], %18 {strides = array<i32>} : memref<256x128xbf16, #tpu.memory_space<vmem>>, vector<256x128xbf16>,
    } else {
    }
    return
  }
  func.func @transform_0(%arg0: i32, %arg1: i32, %arg2: i32) -> (i32, i32) {
    %c0_i32 = arith.constant 0 : i32
    return %arg0, %arg2 : i32, i32
  }
  func.func @transform_1(%arg0: i32, %arg1: i32, %arg2: i32) -> (i32, i32) {
    %c0_i32 = arith.constant 0 : i32
    return %arg2, %arg1 : i32, i32
  }
  func.func @transform_2(%arg0: i32, %arg1: i32, %arg2: i32) -> (i32, i32) {
    %c0_i32 = arith.constant 0 : i32
    %c0_i32_0 = arith.constant 0 : i32
    return %c0_i32, %arg1 : i32, i32
  }
  func.func @transform_3(%arg0: i32, %arg1: i32, %arg2: i32) -> (i32, i32) {
    %c0_i32 = arith.constant 0 : i32
    return %arg0, %arg1 : i32, i32
  }
}

module attributes {stable_mosaic.version = 11 : i64} {
  func.func @_matmul_bias_kernel(%arg0: i32, %arg1: i32, %arg2: i32, %arg3: memref<64x256xbf16, #tpu.memory_space<vmem>>, %arg4: memref<256x128xbf16, #tpu.memory_space<vmem>>, %arg5: memref<1x128xf32, #tpu.memory_space<vmem>>, %arg6: memref<64x128xbf16, #tpu.memory_space<vmem>>, %arg7: memref<64x128xf32, #tpu.memory_space<vmem>>) attributes {dimension_semantics = [#tpu.dimension_semantics<parallel>, #tpu.dimension_semantics<parallel>, #tpu.dimension_semantics<arbitrary>], iteration_bounds = array<i64: 2, 1, 1>, scalar_prefetch = 0 : i64, scratch_operands = 1 : i64, tpu.core_type = #tpu.core_type<tc>, window_params = [{transform_indices = @transform_0, window_bounds = array<i64: 64, 256>}, {transform_indices = @transform_1, window_bounds = array<i64: 256, 128>}, {transform_indices = @transform_2, window_bounds = array<i64: 1, 128>}, {transform_indices = @transform_3, window_bounds = array<i64: 64, 128>}]} {
    %c0_i32 = arith.constant 0 : i32
    %0 = arith.cmpi eq, %arg2, %c0_i32 : i32
    %1 = arith.extui %0 : i1 to i32
    %c0_i32_0 = arith.constant 0 : i32
    %2 = arith.cmpi ne, %1, %c0_i32_0 : i32
    scf.if %2 {
      %cst_10 = arith.constant 0.000000e+00 : f32
      %12 = vector.broadcast %cst_10 : f32 to vector<64x128xf32>
      %c0_11 = arith.constant 0 : index
      %c0_12 = arith.constant 0 : index
      %13 = vector.load %arg7[%c0_11, %c0_12] : memref<64x128xf32, #tpu.memory_space<vmem>>, vector<64x128xf32>
      tpu.vector_store %arg7[%c0_11, %c0_12], %12 {strides = array<i32>} : memref<64x128xf32, #tpu.memory_space<vmem>>, vector<64x128xf32>,
    } else {
    }
    %c0 = arith.constant 0 : index
    %c0_1 = arith.constant 0 : index
    %3 = vector.load %arg7[%c0, %c0_1] : memref<64x128xf32, #tpu.memory_space<vmem>>, vector<64x128xf32>
    %c0_2 = arith.constant 0 : index
    %c0_3 = arith.constant 0 : index
    %4 = vector.load %arg3[%c0_2, %c0_3] : memref<64x256xbf16, #tpu.memory_space<vmem>>, vector<64x256xbf16>
    %c0_4 = arith.constant 0 : index
    %c0_5 = arith.constant 0 : index
    %5 = vector.load %arg4[%c0_4, %c0_5] : memref<256x128xbf16, #tpu.memory_space<vmem>>, vector<256x128xbf16>
    %cst = arith.constant dense<0.000000e+00> : vector<64x128xf32>
    %6 = tpu.matmul %4, %5, %cst {dimension_numbers = #tpu.dot_dimension_numbers<[1], [0], [0], [1], [0, 0, 1, 1], [], []>} : vector<64x256xbf16>, vector<256x128xbf16>, vector<64x128xf32> -> vector<64x128xf32>
    %7 = arith.addf %3, %6 : vector<64x128xf32>
    %c0_6 = arith.constant 0 : index
    %c0_7 = arith.constant 0 : index
    %8 = vector.load %arg7[%c0_6, %c0_7] : memref<64x128xf32, #tpu.memory_space<vmem>>, vector<64x128xf32>
    tpu.vector_store %arg7[%c0_6, %c0_7], %7 {strides = array<i32>} : memref<64x128xf32, #tpu.memory_space<vmem>>, vector<64x128xf32>,
    %c0_i32_8 = arith.constant 0 : i32
    %9 = arith.cmpi eq, %arg2, %c0_i32_8 : i32
    %10 = arith.extui %9 : i1 to i32
    %c0_i32_9 = arith.constant 0 : i32
    %11 = arith.cmpi ne, %10, %c0_i32_9 : i32
    scf.if %11 {
      %c0_10 = arith.constant 0 : index
      %c0_11 = arith.constant 0 : index
      %12 = vector.load %arg7[%c0_10, %c0_11] : memref<64x128xf32, #tpu.memory_space<vmem>>, vector<64x128xf32>
      %c0_12 = arith.constant 0 : index
      %c0_13 = arith.constant 0 : index
      %13 = vector.load %arg5[%c0_12, %c0_13] : memref<1x128xf32, #tpu.memory_space<vmem>>, vector<1x128xf32>
      %14 = vector.broadcast %13 : vector<1x128xf32> to vector<64x128xf32>
      %15 = arith.addf %12, %14 : vector<64x128xf32>
      %cst_14 = arith.constant 0.000000e+00 : f32
      %16 = vector.broadcast %cst_14 : f32 to vector<64x128xf32>
      %17 = arith.maximumf %15, %16 : vector<64x128xf32>
      %18 = arith.truncf %17 : vector<64x128xf32> to vector<64x128xbf16>
      %c0_15 = arith.constant 0 : index
      %c0_16 = arith.constant 0 : index
      %19 = vector.load %arg6[%c0_15, %c0_16] : memref<64x128xbf16, #tpu.memory_space<vmem>>, vector<64x128xbf16>
      tpu.vector_store %arg6[%c0_15, %c0_16], %18 {strides = array<i32>} : memref<64x128xbf16, #tpu.memory_space<vmem>>, vector<64x128xbf16>,
    } else {
    }
    return
  }
  func.func @transform_0(%arg0: i32, %arg1: i32, %arg2: i32) -> (i32, i32) {
    %c0_i32 = arith.constant 0 : i32
    return %arg0, %arg2 : i32, i32
  }
  func.func @transform_1(%arg0: i32, %arg1: i32, %arg2: i32) -> (i32, i32) {
    %c0_i32 = arith.constant 0 : i32
    return %arg2, %arg1 : i32, i32
  }
  func.func @transform_2(%arg0: i32, %arg1: i32, %arg2: i32) -> (i32, i32) {
    %c0_i32 = arith.constant 0 : i32
    %c0_i32_0 = arith.constant 0 : i32
    return %c0_i32, %arg1 : i32, i32
  }
  func.func @transform_3(%arg0: i32, %arg1: i32, %arg2: i32) -> (i32, i32) {
    %c0_i32 = arith.constant 0 : i32
    return %arg0, %arg1 : i32, i32
  }
}

module attributes {stable_mosaic.version = 11 : i64} {
  func.func @_matmul_bias_kernel(%arg0: i32, %arg1: i32, %arg2: i32, %arg3: memref<64x512xbf16, #tpu.memory_space<vmem>>, %arg4: memref<512x128xbf16, #tpu.memory_space<vmem>>, %arg5: memref<1x128xf32, #tpu.memory_space<vmem>>, %arg6: memref<64x128xbf16, #tpu.memory_space<vmem>>, %arg7: memref<64x128xf32, #tpu.memory_space<vmem>>) attributes {dimension_semantics = [#tpu.dimension_semantics<parallel>, #tpu.dimension_semantics<parallel>, #tpu.dimension_semantics<arbitrary>], iteration_bounds = array<i64: 2, 1, 1>, scalar_prefetch = 0 : i64, scratch_operands = 1 : i64, tpu.core_type = #tpu.core_type<tc>, window_params = [{transform_indices = @transform_0, window_bounds = array<i64: 64, 512>}, {transform_indices = @transform_1, window_bounds = array<i64: 512, 128>}, {transform_indices = @transform_2, window_bounds = array<i64: 1, 128>}, {transform_indices = @transform_3, window_bounds = array<i64: 64, 128>}]} {
    %c0_i32 = arith.constant 0 : i32
    %0 = arith.cmpi eq, %arg2, %c0_i32 : i32
    %1 = arith.extui %0 : i1 to i32
    %c0_i32_0 = arith.constant 0 : i32
    %2 = arith.cmpi ne, %1, %c0_i32_0 : i32
    scf.if %2 {
      %cst_10 = arith.constant 0.000000e+00 : f32
      %12 = vector.broadcast %cst_10 : f32 to vector<64x128xf32>
      %c0_11 = arith.constant 0 : index
      %c0_12 = arith.constant 0 : index
      %13 = vector.load %arg7[%c0_11, %c0_12] : memref<64x128xf32, #tpu.memory_space<vmem>>, vector<64x128xf32>
      tpu.vector_store %arg7[%c0_11, %c0_12], %12 {strides = array<i32>} : memref<64x128xf32, #tpu.memory_space<vmem>>, vector<64x128xf32>,
    } else {
    }
    %c0 = arith.constant 0 : index
    %c0_1 = arith.constant 0 : index
    %3 = vector.load %arg7[%c0, %c0_1] : memref<64x128xf32, #tpu.memory_space<vmem>>, vector<64x128xf32>
    %c0_2 = arith.constant 0 : index
    %c0_3 = arith.constant 0 : index
    %4 = vector.load %arg3[%c0_2, %c0_3] : memref<64x512xbf16, #tpu.memory_space<vmem>>, vector<64x512xbf16>
    %c0_4 = arith.constant 0 : index
    %c0_5 = arith.constant 0 : index
    %5 = vector.load %arg4[%c0_4, %c0_5] : memref<512x128xbf16, #tpu.memory_space<vmem>>, vector<512x128xbf16>
    %cst = arith.constant dense<0.000000e+00> : vector<64x128xf32>
    %6 = tpu.matmul %4, %5, %cst {dimension_numbers = #tpu.dot_dimension_numbers<[1], [0], [0], [1], [0, 0, 1, 1], [], []>} : vector<64x512xbf16>, vector<512x128xbf16>, vector<64x128xf32> -> vector<64x128xf32>
    %7 = arith.addf %3, %6 : vector<64x128xf32>
    %c0_6 = arith.constant 0 : index
    %c0_7 = arith.constant 0 : index
    %8 = vector.load %arg7[%c0_6, %c0_7] : memref<64x128xf32, #tpu.memory_space<vmem>>, vector<64x128xf32>
    tpu.vector_store %arg7[%c0_6, %c0_7], %7 {strides = array<i32>} : memref<64x128xf32, #tpu.memory_space<vmem>>, vector<64x128xf32>,
    %c0_i32_8 = arith.constant 0 : i32
    %9 = arith.cmpi eq, %arg2, %c0_i32_8 : i32
    %10 = arith.extui %9 : i1 to i32
    %c0_i32_9 = arith.constant 0 : i32
    %11 = arith.cmpi ne, %10, %c0_i32_9 : i32
    scf.if %11 {
      %c0_10 = arith.constant 0 : index
      %c0_11 = arith.constant 0 : index
      %12 = vector.load %arg7[%c0_10, %c0_11] : memref<64x128xf32, #tpu.memory_space<vmem>>, vector<64x128xf32>
      %c0_12 = arith.constant 0 : index
      %c0_13 = arith.constant 0 : index
      %13 = vector.load %arg5[%c0_12, %c0_13] : memref<1x128xf32, #tpu.memory_space<vmem>>, vector<1x128xf32>
      %14 = vector.broadcast %13 : vector<1x128xf32> to vector<64x128xf32>
      %15 = arith.addf %12, %14 : vector<64x128xf32>
      %cst_14 = arith.constant 0.000000e+00 : f32
      %16 = vector.broadcast %cst_14 : f32 to vector<64x128xf32>
      %17 = arith.maximumf %15, %16 : vector<64x128xf32>
      %18 = arith.truncf %17 : vector<64x128xf32> to vector<64x128xbf16>
      %c0_15 = arith.constant 0 : index
      %c0_16 = arith.constant 0 : index
      %19 = vector.load %arg6[%c0_15, %c0_16] : memref<64x128xbf16, #tpu.memory_space<vmem>>, vector<64x128xbf16>
      tpu.vector_store %arg6[%c0_15, %c0_16], %18 {strides = array<i32>} : memref<64x128xbf16, #tpu.memory_space<vmem>>, vector<64x128xbf16>,
    } else {
    }
    return
  }
  func.func @transform_0(%arg0: i32, %arg1: i32, %arg2: i32) -> (i32, i32) {
    %c0_i32 = arith.constant 0 : i32
    return %arg0, %arg2 : i32, i32
  }
  func.func @transform_1(%arg0: i32, %arg1: i32, %arg2: i32) -> (i32, i32) {
    %c0_i32 = arith.constant 0 : i32
    return %arg2, %arg1 : i32, i32
  }
  func.func @transform_2(%arg0: i32, %arg1: i32, %arg2: i32) -> (i32, i32) {
    %c0_i32 = arith.constant 0 : i32
    %c0_i32_0 = arith.constant 0 : i32
    return %c0_i32, %arg1 : i32, i32
  }
  func.func @transform_3(%arg0: i32, %arg1: i32, %arg2: i32) -> (i32, i32) {
    %c0_i32 = arith.constant 0 : i32
    return %arg0, %arg1 : i32, i32
  }
}

module attributes {stable_mosaic.version = 11 : i64} {
  func.func @_matmul_bias_kernel(%arg0: i32, %arg1: i32, %arg2: i32, %arg3: memref<16x512xbf16, #tpu.memory_space<vmem>>, %arg4: memref<512x128xbf16, #tpu.memory_space<vmem>>, %arg5: memref<1x128xf32, #tpu.memory_space<vmem>>, %arg6: memref<16x128xbf16, #tpu.memory_space<vmem>>, %arg7: memref<16x128xf32, #tpu.memory_space<vmem>>) attributes {dimension_semantics = [#tpu.dimension_semantics<parallel>, #tpu.dimension_semantics<parallel>, #tpu.dimension_semantics<arbitrary>], iteration_bounds = array<i64: 2, 1, 1>, scalar_prefetch = 0 : i64, scratch_operands = 1 : i64, tpu.core_type = #tpu.core_type<tc>, window_params = [{transform_indices = @transform_0, window_bounds = array<i64: 16, 512>}, {transform_indices = @transform_1, window_bounds = array<i64: 512, 128>}, {transform_indices = @transform_2, window_bounds = array<i64: 1, 128>}, {transform_indices = @transform_3, window_bounds = array<i64: 16, 128>}]} {
    %c0_i32 = arith.constant 0 : i32
    %0 = arith.cmpi eq, %arg2, %c0_i32 : i32
    %1 = arith.extui %0 : i1 to i32
    %c0_i32_0 = arith.constant 0 : i32
    %2 = arith.cmpi ne, %1, %c0_i32_0 : i32
    scf.if %2 {
      %cst_10 = arith.constant 0.000000e+00 : f32
      %12 = vector.broadcast %cst_10 : f32 to vector<16x128xf32>
      %c0_11 = arith.constant 0 : index
      %c0_12 = arith.constant 0 : index
      %13 = vector.load %arg7[%c0_11, %c0_12] : memref<16x128xf32, #tpu.memory_space<vmem>>, vector<16x128xf32>
      tpu.vector_store %arg7[%c0_11, %c0_12], %12 {strides = array<i32>} : memref<16x128xf32, #tpu.memory_space<vmem>>, vector<16x128xf32>,
    } else {
    }
    %c0 = arith.constant 0 : index
    %c0_1 = arith.constant 0 : index
    %3 = vector.load %arg7[%c0, %c0_1] : memref<16x128xf32, #tpu.memory_space<vmem>>, vector<16x128xf32>
    %c0_2 = arith.constant 0 : index
    %c0_3 = arith.constant 0 : index
    %4 = vector.load %arg3[%c0_2, %c0_3] : memref<16x512xbf16, #tpu.memory_space<vmem>>, vector<16x512xbf16>
    %c0_4 = arith.constant 0 : index
    %c0_5 = arith.constant 0 : index
    %5 = vector.load %arg4[%c0_4, %c0_5] : memref<512x128xbf16, #tpu.memory_space<vmem>>, vector<512x128xbf16>
    %cst = arith.constant dense<0.000000e+00> : vector<16x128xf32>
    %6 = tpu.matmul %4, %5, %cst {dimension_numbers = #tpu.dot_dimension_numbers<[1], [0], [0], [1], [0, 0, 1, 1], [], []>} : vector<16x512xbf16>, vector<512x128xbf16>, vector<16x128xf32> -> vector<16x128xf32>
    %7 = arith.addf %3, %6 : vector<16x128xf32>
    %c0_6 = arith.constant 0 : index
    %c0_7 = arith.constant 0 : index
    %8 = vector.load %arg7[%c0_6, %c0_7] : memref<16x128xf32, #tpu.memory_space<vmem>>, vector<16x128xf32>
    tpu.vector_store %arg7[%c0_6, %c0_7], %7 {strides = array<i32>} : memref<16x128xf32, #tpu.memory_space<vmem>>, vector<16x128xf32>,
    %c0_i32_8 = arith.constant 0 : i32
    %9 = arith.cmpi eq, %arg2, %c0_i32_8 : i32
    %10 = arith.extui %9 : i1 to i32
    %c0_i32_9 = arith.constant 0 : i32
    %11 = arith.cmpi ne, %10, %c0_i32_9 : i32
    scf.if %11 {
      %c0_10 = arith.constant 0 : index
      %c0_11 = arith.constant 0 : index
      %12 = vector.load %arg7[%c0_10, %c0_11] : memref<16x128xf32, #tpu.memory_space<vmem>>, vector<16x128xf32>
      %c0_12 = arith.constant 0 : index
      %c0_13 = arith.constant 0 : index
      %13 = vector.load %arg5[%c0_12, %c0_13] : memref<1x128xf32, #tpu.memory_space<vmem>>, vector<1x128xf32>
      %14 = vector.broadcast %13 : vector<1x128xf32> to vector<16x128xf32>
      %15 = arith.addf %12, %14 : vector<16x128xf32>
      %cst_14 = arith.constant 0.000000e+00 : f32
      %16 = vector.broadcast %cst_14 : f32 to vector<16x128xf32>
      %17 = arith.maximumf %15, %16 : vector<16x128xf32>
      %18 = arith.truncf %17 : vector<16x128xf32> to vector<16x128xbf16>
      %c0_15 = arith.constant 0 : index
      %c0_16 = arith.constant 0 : index
      %19 = vector.load %arg6[%c0_15, %c0_16] : memref<16x128xbf16, #tpu.memory_space<vmem>>, vector<16x128xbf16>
      tpu.vector_store %arg6[%c0_15, %c0_16], %18 {strides = array<i32>} : memref<16x128xbf16, #tpu.memory_space<vmem>>, vector<16x128xbf16>,
    } else {
    }
    return
  }
  func.func @transform_0(%arg0: i32, %arg1: i32, %arg2: i32) -> (i32, i32) {
    %c0_i32 = arith.constant 0 : i32
    return %arg0, %arg2 : i32, i32
  }
  func.func @transform_1(%arg0: i32, %arg1: i32, %arg2: i32) -> (i32, i32) {
    %c0_i32 = arith.constant 0 : i32
    return %arg2, %arg1 : i32, i32
  }
  func.func @transform_2(%arg0: i32, %arg1: i32, %arg2: i32) -> (i32, i32) {
    %c0_i32 = arith.constant 0 : i32
    %c0_i32_0 = arith.constant 0 : i32
    return %c0_i32, %arg1 : i32, i32
  }
  func.func @transform_3(%arg0: i32, %arg1: i32, %arg2: i32) -> (i32, i32) {
    %c0_i32 = arith.constant 0 : i32
    return %arg0, %arg1 : i32, i32
  }
}

module attributes {stable_mosaic.version = 11 : i64} {
  func.func @_matmul_bias_kernel(%arg0: i32, %arg1: i32, %arg2: i32, %arg3: memref<16x256xbf16, #tpu.memory_space<vmem>>, %arg4: memref<256x128xbf16, #tpu.memory_space<vmem>>, %arg5: memref<1x128xf32, #tpu.memory_space<vmem>>, %arg6: memref<16x128xf32, #tpu.memory_space<vmem>>, %arg7: memref<16x128xf32, #tpu.memory_space<vmem>>) attributes {dimension_semantics = [#tpu.dimension_semantics<parallel>, #tpu.dimension_semantics<parallel>, #tpu.dimension_semantics<arbitrary>], iteration_bounds = array<i64: 2, 1, 3>, scalar_prefetch = 0 : i64, scratch_operands = 1 : i64, tpu.core_type = #tpu.core_type<tc>, window_params = [{transform_indices = @transform_0, window_bounds = array<i64: 16, 256>}, {transform_indices = @transform_1, window_bounds = array<i64: 256, 128>}, {transform_indices = @transform_2, window_bounds = array<i64: 1, 128>}, {transform_indices = @transform_3, window_bounds = array<i64: 16, 128>}]} {
    %c0_i32 = arith.constant 0 : i32
    %0 = arith.cmpi eq, %arg2, %c0_i32 : i32
    %1 = arith.extui %0 : i1 to i32
    %c0_i32_0 = arith.constant 0 : i32
    %2 = arith.cmpi ne, %1, %c0_i32_0 : i32
    scf.if %2 {
      %cst_9 = arith.constant 0.000000e+00 : f32
      %12 = vector.broadcast %cst_9 : f32 to vector<16x128xf32>
      %c0_10 = arith.constant 0 : index
      %c0_11 = arith.constant 0 : index
      %13 = vector.load %arg7[%c0_10, %c0_11] : memref<16x128xf32, #tpu.memory_space<vmem>>, vector<16x128xf32>
      tpu.vector_store %arg7[%c0_10, %c0_11], %12 {strides = array<i32>} : memref<16x128xf32, #tpu.memory_space<vmem>>, vector<16x128xf32>,
    } else {
    }
    %c0 = arith.constant 0 : index
    %c0_1 = arith.constant 0 : index
    %3 = vector.load %arg7[%c0, %c0_1] : memref<16x128xf32, #tpu.memory_space<vmem>>, vector<16x128xf32>
    %c0_2 = arith.constant 0 : index
    %c0_3 = arith.constant 0 : index
    %4 = vector.load %arg3[%c0_2, %c0_3] : memref<16x256xbf16, #tpu.memory_space<vmem>>, vector<16x256xbf16>
    %c0_4 = arith.constant 0 : index
    %c0_5 = arith.constant 0 : index
    %5 = vector.load %arg4[%c0_4, %c0_5] : memref<256x128xbf16, #tpu.memory_space<vmem>>, vector<256x128xbf16>
    %cst = arith.constant dense<0.000000e+00> : vector<16x128xf32>
    %6 = tpu.matmul %4, %5, %cst {dimension_numbers = #tpu.dot_dimension_numbers<[1], [0], [0], [1], [0, 0, 1, 1], [], []>} : vector<16x256xbf16>, vector<256x128xbf16>, vector<16x128xf32> -> vector<16x128xf32>
    %7 = arith.addf %3, %6 : vector<16x128xf32>
    %c0_6 = arith.constant 0 : index
    %c0_7 = arith.constant 0 : index
    %8 = vector.load %arg7[%c0_6, %c0_7] : memref<16x128xf32, #tpu.memory_space<vmem>>, vector<16x128xf32>
    tpu.vector_store %arg7[%c0_6, %c0_7], %7 {strides = array<i32>} : memref<16x128xf32, #tpu.memory_space<vmem>>, vector<16x128xf32>,
    %c2_i32 = arith.constant 2 : i32
    %9 = arith.cmpi eq, %arg2, %c2_i32 : i32
    %10 = arith.extui %9 : i1 to i32
    %c0_i32_8 = arith.constant 0 : i32
    %11 = arith.cmpi ne, %10, %c0_i32_8 : i32
    scf.if %11 {
      %c0_9 = arith.constant 0 : index
      %c0_10 = arith.constant 0 : index
      %12 = vector.load %arg7[%c0_9, %c0_10] : memref<16x128xf32, #tpu.memory_space<vmem>>, vector<16x128xf32>
      %c0_11 = arith.constant 0 : index
      %c0_12 = arith.constant 0 : index
      %13 = vector.load %arg5[%c0_11, %c0_12] : memref<1x128xf32, #tpu.memory_space<vmem>>, vector<1x128xf32>
      %14 = vector.broadcast %13 : vector<1x128xf32> to vector<16x128xf32>
      %15 = arith.addf %12, %14 : vector<16x128xf32>
      %c0_13 = arith.constant 0 : index
      %c0_14 = arith.constant 0 : index
      %16 = vector.load %arg6[%c0_13, %c0_14] : memref<16x128xf32, #tpu.memory_space<vmem>>, vector<16x128xf32>
      tpu.vector_store %arg6[%c0_13, %c0_14], %15 {strides = array<i32>} : memref<16x128xf32, #tpu.memory_space<vmem>>, vector<16x128xf32>,
    } else {
    }
    return
  }
  func.func @transform_0(%arg0: i32, %arg1: i32, %arg2: i32) -> (i32, i32) {
    %c0_i32 = arith.constant 0 : i32
    return %arg0, %arg2 : i32, i32
  }
  func.func @transform_1(%arg0: i32, %arg1: i32, %arg2: i32) -> (i32, i32) {
    %c0_i32 = arith.constant 0 : i32
    return %arg2, %arg1 : i32, i32
  }
  func.func @transform_2(%arg0: i32, %arg1: i32, %arg2: i32) -> (i32, i32) {
    %c0_i32 = arith.constant 0 : i32
    %c0_i32_0 = arith.constant 0 : i32
    return %c0_i32, %arg1 : i32, i32
  }
  func.func @transform_3(%arg0: i32, %arg1: i32, %arg2: i32) -> (i32, i32) {
    %c0_i32 = arith.constant 0 : i32
    return %arg0, %arg1 : i32, i32
  }
}

module attributes {stable_mosaic.version = 11 : i64} {
  func.func @_matmul_bias_kernel(%arg0: i32, %arg1: i32, %arg2: i32, %arg3: memref<64x512xbf16, #tpu.memory_space<vmem>>, %arg4: memref<512x128xbf16, #tpu.memory_space<vmem>>, %arg5: memref<1x128xf32, #tpu.memory_space<vmem>>, %arg6: memref<64x128xf32, #tpu.memory_space<vmem>>, %arg7: memref<64x128xf32, #tpu.memory_space<vmem>>) attributes {dimension_semantics = [#tpu.dimension_semantics<parallel>, #tpu.dimension_semantics<parallel>, #tpu.dimension_semantics<arbitrary>], iteration_bounds = array<i64: 2, 1, 1>, scalar_prefetch = 0 : i64, scratch_operands = 1 : i64, tpu.core_type = #tpu.core_type<tc>, window_params = [{transform_indices = @transform_0, window_bounds = array<i64: 64, 512>}, {transform_indices = @transform_1, window_bounds = array<i64: 512, 128>}, {transform_indices = @transform_2, window_bounds = array<i64: 1, 128>}, {transform_indices = @transform_3, window_bounds = array<i64: 64, 128>}]} {
    %c0_i32 = arith.constant 0 : i32
    %0 = arith.cmpi eq, %arg2, %c0_i32 : i32
    %1 = arith.extui %0 : i1 to i32
    %c0_i32_0 = arith.constant 0 : i32
    %2 = arith.cmpi ne, %1, %c0_i32_0 : i32
    scf.if %2 {
      %cst_10 = arith.constant 0.000000e+00 : f32
      %12 = vector.broadcast %cst_10 : f32 to vector<64x128xf32>
      %c0_11 = arith.constant 0 : index
      %c0_12 = arith.constant 0 : index
      %13 = vector.load %arg7[%c0_11, %c0_12] : memref<64x128xf32, #tpu.memory_space<vmem>>, vector<64x128xf32>
      tpu.vector_store %arg7[%c0_11, %c0_12], %12 {strides = array<i32>} : memref<64x128xf32, #tpu.memory_space<vmem>>, vector<64x128xf32>,
    } else {
    }
    %c0 = arith.constant 0 : index
    %c0_1 = arith.constant 0 : index
    %3 = vector.load %arg7[%c0, %c0_1] : memref<64x128xf32, #tpu.memory_space<vmem>>, vector<64x128xf32>
    %c0_2 = arith.constant 0 : index
    %c0_3 = arith.constant 0 : index
    %4 = vector.load %arg3[%c0_2, %c0_3] : memref<64x512xbf16, #tpu.memory_space<vmem>>, vector<64x512xbf16>
    %c0_4 = arith.constant 0 : index
    %c0_5 = arith.constant 0 : index
    %5 = vector.load %arg4[%c0_4, %c0_5] : memref<512x128xbf16, #tpu.memory_space<vmem>>, vector<512x128xbf16>
    %cst = arith.constant dense<0.000000e+00> : vector<64x128xf32>
    %6 = tpu.matmul %4, %5, %cst {dimension_numbers = #tpu.dot_dimension_numbers<[1], [0], [0], [1], [0, 0, 1, 1], [], []>} : vector<64x512xbf16>, vector<512x128xbf16>, vector<64x128xf32> -> vector<64x128xf32>
    %7 = arith.addf %3, %6 : vector<64x128xf32>
    %c0_6 = arith.constant 0 : index
    %c0_7 = arith.constant 0 : index
    %8 = vector.load %arg7[%c0_6, %c0_7] : memref<64x128xf32, #tpu.memory_space<vmem>>, vector<64x128xf32>
    tpu.vector_store %arg7[%c0_6, %c0_7], %7 {strides = array<i32>} : memref<64x128xf32, #tpu.memory_space<vmem>>, vector<64x128xf32>,
    %c0_i32_8 = arith.constant 0 : i32
    %9 = arith.cmpi eq, %arg2, %c0_i32_8 : i32
    %10 = arith.extui %9 : i1 to i32
    %c0_i32_9 = arith.constant 0 : i32
    %11 = arith.cmpi ne, %10, %c0_i32_9 : i32
    scf.if %11 {
      %c0_10 = arith.constant 0 : index
      %c0_11 = arith.constant 0 : index
      %12 = vector.load %arg7[%c0_10, %c0_11] : memref<64x128xf32, #tpu.memory_space<vmem>>, vector<64x128xf32>
      %c0_12 = arith.constant 0 : index
      %c0_13 = arith.constant 0 : index
      %13 = vector.load %arg5[%c0_12, %c0_13] : memref<1x128xf32, #tpu.memory_space<vmem>>, vector<1x128xf32>
      %14 = vector.broadcast %13 : vector<1x128xf32> to vector<64x128xf32>
      %15 = arith.addf %12, %14 : vector<64x128xf32>
      %c0_14 = arith.constant 0 : index
      %c0_15 = arith.constant 0 : index
      %16 = vector.load %arg6[%c0_14, %c0_15] : memref<64x128xf32, #tpu.memory_space<vmem>>, vector<64x128xf32>
      tpu.vector_store %arg6[%c0_14, %c0_15], %15 {strides = array<i32>} : memref<64x128xf32, #tpu.memory_space<vmem>>, vector<64x128xf32>,
    } else {
    }
    return
  }
  func.func @transform_0(%arg0: i32, %arg1: i32, %arg2: i32) -> (i32, i32) {
    %c0_i32 = arith.constant 0 : i32
    return %arg0, %arg2 : i32, i32
  }
  func.func @transform_1(%arg0: i32, %arg1: i32, %arg2: i32) -> (i32, i32) {
    %c0_i32 = arith.constant 0 : i32
    return %arg2, %arg1 : i32, i32
  }
  func.func @transform_2(%arg0: i32, %arg1: i32, %arg2: i32) -> (i32, i32) {
    %c0_i32 = arith.constant 0 : i32
    %c0_i32_0 = arith.constant 0 : i32
    return %c0_i32, %arg1 : i32, i32
  }
  func.func @transform_3(%arg0: i32, %arg1: i32, %arg2: i32) -> (i32, i32) {
    %c0_i32 = arith.constant 0 : i32
    return %arg0, %arg1 : i32, i32
  }
}

module attributes {stable_mosaic.version = 11 : i64} {
  func.func @_matmul_bias_kernel(%arg0: i32, %arg1: i32, %arg2: i32, %arg3: memref<256x256xbf16, #tpu.memory_space<vmem>>, %arg4: memref<256x128xbf16, #tpu.memory_space<vmem>>, %arg5: memref<1x128xf32, #tpu.memory_space<vmem>>, %arg6: memref<256x128xf32, #tpu.memory_space<vmem>>, %arg7: memref<256x128xf32, #tpu.memory_space<vmem>>) attributes {dimension_semantics = [#tpu.dimension_semantics<parallel>, #tpu.dimension_semantics<parallel>, #tpu.dimension_semantics<arbitrary>], iteration_bounds = array<i64: 2, 1, 1>, scalar_prefetch = 0 : i64, scratch_operands = 1 : i64, tpu.core_type = #tpu.core_type<tc>, window_params = [{transform_indices = @transform_0, window_bounds = array<i64: 256, 256>}, {transform_indices = @transform_1, window_bounds = array<i64: 256, 128>}, {transform_indices = @transform_2, window_bounds = array<i64: 1, 128>}, {transform_indices = @transform_3, window_bounds = array<i64: 256, 128>}]} {
    %c0_i32 = arith.constant 0 : i32
    %0 = arith.cmpi eq, %arg2, %c0_i32 : i32
    %1 = arith.extui %0 : i1 to i32
    %c0_i32_0 = arith.constant 0 : i32
    %2 = arith.cmpi ne, %1, %c0_i32_0 : i32
    scf.if %2 {
      %cst_10 = arith.constant 0.000000e+00 : f32
      %12 = vector.broadcast %cst_10 : f32 to vector<256x128xf32>
      %c0_11 = arith.constant 0 : index
      %c0_12 = arith.constant 0 : index
      %13 = vector.load %arg7[%c0_11, %c0_12] : memref<256x128xf32, #tpu.memory_space<vmem>>, vector<256x128xf32>
      tpu.vector_store %arg7[%c0_11, %c0_12], %12 {strides = array<i32>} : memref<256x128xf32, #tpu.memory_space<vmem>>, vector<256x128xf32>,
    } else {
    }
    %c0 = arith.constant 0 : index
    %c0_1 = arith.constant 0 : index
    %3 = vector.load %arg7[%c0, %c0_1] : memref<256x128xf32, #tpu.memory_space<vmem>>, vector<256x128xf32>
    %c0_2 = arith.constant 0 : index
    %c0_3 = arith.constant 0 : index
    %4 = vector.load %arg3[%c0_2, %c0_3] : memref<256x256xbf16, #tpu.memory_space<vmem>>, vector<256x256xbf16>
    %c0_4 = arith.constant 0 : index
    %c0_5 = arith.constant 0 : index
    %5 = vector.load %arg4[%c0_4, %c0_5] : memref<256x128xbf16, #tpu.memory_space<vmem>>, vector<256x128xbf16>
    %cst = arith.constant dense<0.000000e+00> : vector<256x128xf32>
    %6 = tpu.matmul %4, %5, %cst {dimension_numbers = #tpu.dot_dimension_numbers<[1], [0], [0], [1], [0, 0, 1, 1], [], []>} : vector<256x256xbf16>, vector<256x128xbf16>, vector<256x128xf32> -> vector<256x128xf32>
    %7 = arith.addf %3, %6 : vector<256x128xf32>
    %c0_6 = arith.constant 0 : index
    %c0_7 = arith.constant 0 : index
    %8 = vector.load %arg7[%c0_6, %c0_7] : memref<256x128xf32, #tpu.memory_space<vmem>>, vector<256x128xf32>
    tpu.vector_store %arg7[%c0_6, %c0_7], %7 {strides = array<i32>} : memref<256x128xf32, #tpu.memory_space<vmem>>, vector<256x128xf32>,
    %c0_i32_8 = arith.constant 0 : i32
    %9 = arith.cmpi eq, %arg2, %c0_i32_8 : i32
    %10 = arith.extui %9 : i1 to i32
    %c0_i32_9 = arith.constant 0 : i32
    %11 = arith.cmpi ne, %10, %c0_i32_9 : i32
    scf.if %11 {
      %c0_10 = arith.constant 0 : index
      %c0_11 = arith.constant 0 : index
      %12 = vector.load %arg7[%c0_10, %c0_11] : memref<256x128xf32, #tpu.memory_space<vmem>>, vector<256x128xf32>
      %c0_12 = arith.constant 0 : index
      %c0_13 = arith.constant 0 : index
      %13 = vector.load %arg5[%c0_12, %c0_13] : memref<1x128xf32, #tpu.memory_space<vmem>>, vector<1x128xf32>
      %14 = vector.broadcast %13 : vector<1x128xf32> to vector<256x128xf32>
      %15 = arith.addf %12, %14 : vector<256x128xf32>
      %c0_14 = arith.constant 0 : index
      %c0_15 = arith.constant 0 : index
      %16 = vector.load %arg6[%c0_14, %c0_15] : memref<256x128xf32, #tpu.memory_space<vmem>>, vector<256x128xf32>
      tpu.vector_store %arg6[%c0_14, %c0_15], %15 {strides = array<i32>} : memref<256x128xf32, #tpu.memory_space<vmem>>, vector<256x128xf32>,
    } else {
    }
    return
  }
  func.func @transform_0(%arg0: i32, %arg1: i32, %arg2: i32) -> (i32, i32) {
    %c0_i32 = arith.constant 0 : i32
    return %arg0, %arg2 : i32, i32
  }
  func.func @transform_1(%arg0: i32, %arg1: i32, %arg2: i32) -> (i32, i32) {
    %c0_i32 = arith.constant 0 : i32
    return %arg2, %arg1 : i32, i32
  }
  func.func @transform_2(%arg0: i32, %arg1: i32, %arg2: i32) -> (i32, i32) {
    %c0_i32 = arith.constant 0 : i32
    %c0_i32_0 = arith.constant 0 : i32
    return %c0_i32, %arg1 : i32, i32
  }
  func.func @transform_3(%arg0: i32, %arg1: i32, %arg2: i32) -> (i32, i32) {
    %c0_i32 = arith.constant 0 : i32
    return %arg0, %arg1 : i32, i32
  }
}

</mosaic_0001>

<bundles_post_ra>
// kernel: ssd_forward.8
= control target key start
LH: loop header
LB: loop body
LE: loop exit
PB: predicated region body
PF: predicated region fallthrough
CT: control target
= control target key end

     0   :  { %s1499_s12 = smov 0   ;;  %s1501_s13 = smov 0   ;;  %s1636_s0 = inlined_call_operand.vmem [shape: bf16[512,128], index: 0, kind: input, shape index: {}]   ;;  %s1637_s1 = inlined_call_operand.vmem [shape: bf16[128,128], index: 1, kind: input, shape index: {}]   ;;  %s1638_s2 = inlined_call_operand.vmem [shape: f32[1,128], index: 2, kind: input, shape index: {}]   ;;  %s1639_s3 = inlined_call_operand.vmem [shape: bf16[512,128], index: 3, kind: output, shape index: {}]  }
   0x1   :  { %s1503_s14 = smov 0  }
   0x2 LB: > { %s32_s15 = sadd.s32 1, %s1473_s13  ;;  %p1128_p0 = scmp.ge.s32.totalorder %s1477_s14, 1  ;;  %s1477_s14 = sphi %s1503_s14, %s13_s14   ;;  %s1473_s13 = sphi %s1501_s13, %s1641_s13   ;;  %s1469_s12 = sphi %s1499_s12, %s1640_s12  }
   0x3   : > { %p34_p1 = scmp.ge.s32.totalorder %s32_s15, 2  ;;  %p188_p2 = scmp.lt.s32.totalorder %s1477_s14, 3 }
   0x5   : > { %s1643_s15 = smov (%p34_p1, %s32_s15), 0  ;;  %p189_p3 = pnand %p1128_p0, %p188_p2 }
   0x6   : > { %v1431_v0 = vld [vmem:[%s1637_s1] sm:$0xff] (!%p189_p3)   ;;  %s1129_s18 = sshll.u32 (!%p189_p3), %s1469_s12, 5  ;;  %v1432_v1 = vld [vmem:[%s1637_s1 + $0x8] sm:$0xff] (!%p189_p3)   ;;  %v1433_v2 = vld [vmem:[%s1637_s1 + $0x10] sm:$0xff] (!%p189_p3)  }
   0x7   : > { %192 = sbr.rel (%p189_p3) target bundleno = 285 (0x11d), region = 32  ;;  %p230_p4 = scmp.lt.s32.totalorder (!%p189_p3), %s1129_s18, 63  ;;  %1343 = vmatprep.subr.bf16.mxu0 (!%p189_p3), %v1431_v0  ;;  %1391 = vmatprep.subr.bf16.mxu1 (!%p189_p3), %v1431_v0  ;;  %v1434_v3 = vld [vmem:[%s1637_s1 + $0x18] sm:$0xff] (!%p189_p3)   ;;  %v1435_v6 = vld [vmem:[%s1637_s1 + $0x20] sm:$0xff] (!%p189_p3)   ;;  %v1436_v7 = vld [vmem:[%s1637_s1 + $0x28] sm:$0xff] (!%p189_p3)  }
   0x8   : > { %1344 = vmatpush3.bf16.msra.mxu0 (!%p189_p3), %v1431_v0  ;;  %1399 = vmatpush3.bf16.msra.mxu1 (!%p189_p3), %v1431_v0  ;;  %v1437_v8 = vld [vmem:[%s1637_s1 + $0x30] sm:$0xff] (!%p189_p3)   ;;  %v1438_v9 = vld [vmem:[%s1637_s1 + $0x38] sm:$0xff] (!%p189_p3)   ;;  %v1570_v24 = vld [vmem:[%s1638_s2] ss:$0 sm:$0xff] (!%p189_p3) }
   0x9   : > { %1345 = vmatprep.subr.bf16.mxu0 (!%p189_p3), %v1432_v1  ;;  %1392 = vmatprep.subr.bf16.mxu1 (!%p189_p3), %v1432_v1 }
   0xc   : > { %1346 = vmatpush3.bf16.msra.mxu0 (!%p189_p3), %v1432_v1  ;;  %1400 = vmatpush3.bf16.msra.mxu1 (!%p189_p3), %v1432_v1 }
   0xd   : > { %1347 = vmatprep.subr.bf16.mxu0 (!%p189_p3), %v1433_v2  ;;  %1393 = vmatprep.subr.bf16.mxu1 (!%p189_p3), %v1433_v2 }
   0xe   : > { %s1645_s18 = smov (!%p230_p4, %s1129_s18), 63 }
   0xf   : > { %s1130_s23 = sshll.u32 %s1645_s18, 2 }
  0x10   : > { %s1534_s26 = scalar_lea.vmem %s1636_s0, %s1130_s23  ;;  %1348 = vmatpush3.bf16.msra.mxu0 %v1433_v2  ;;  %1401 = vmatpush3.bf16.msra.mxu1 %v1433_v2  ;;  %s1585_s17 = scalar_lea.vmem %s1639_s3, %s1130_s23 }
  0x11   : > { %v1439_v4 = vld [vmem:[%s1534_s26] sm:$0xff]   ;;  %1349 = vmatprep.subr.bf16.mxu0 %v1434_v3  ;;  %1394 = vmatprep.subr.bf16.mxu1 %v1434_v3  ;;  %v1441_v10 = vld [vmem:[%s1534_s26 + $0x8] sm:$0xff]   ;;  %v1443_v12 = vld [vmem:[%s1534_s26 + $0x10] sm:$0xff]  }
  0x12   : > { %v1440_v5 = vld [vmem:[%s1534_s26 + $0x40] sm:$0xff]   ;;  %1359 = vmatprep.mubr.bf16.mxu0 %v1439_v4  ;;  %v1442_v11 = vld [vmem:[%s1534_s26 + $0x48] sm:$0xff]   ;;  %v1444_v13 = vld [vmem:[%s1534_s26 + $0x50] sm:$0xff]  }
  0x13   : > { %1375 = vmatprep.mubr.bf16.mxu1 %v1440_v5  ;;  %v1445_v14 = vld [vmem:[%s1534_s26 + $0x18] sm:$0xff]   ;;  %v1447_v16 = vld [vmem:[%s1534_s26 + $0x20] sm:$0xff]   ;;  %v1449_v18 = vld [vmem:[%s1534_s26 + $0x28] sm:$0xff]  }
  0x14   : > { %1350 = vmatpush3.bf16.msra.mxu0 %v1434_v3  ;;  %1402 = vmatpush3.bf16.msra.mxu1 %v1434_v3  ;;  %v1446_v15 = vld [vmem:[%s1534_s26 + $0x58] sm:$0xff]   ;;  %v1448_v17 = vld [vmem:[%s1534_s26 + $0x60] sm:$0xff]   ;;  %v1450_v19 = vld [vmem:[%s1534_s26 + $0x68] sm:$0xff]  }
  0x15   : > { %1351 = vmatprep.subr.bf16.mxu0 %v1435_v6  ;;  %1395 = vmatprep.subr.bf16.mxu1 %v1435_v6  ;;  %v1451_v20 = vld [vmem:[%s1534_s26 + $0x30] sm:$0xff]   ;;  %v1453_v22 = vld [vmem:[%s1534_s26 + $0x38] sm:$0xff]  }
  0x16   : > { %v1452_v21 = vld [vmem:[%s1534_s26 + $0x70] sm:$0xff]   ;;  %v1454_v23 = vld [vmem:[%s1534_s26 + $0x78] sm:$0xff]  }
  0x18   : > { %1352 = vmatpush3.bf16.msra.mxu0 %v1435_v6  ;;  %1403 = vmatpush3.bf16.msra.mxu1 %v1435_v6 }
  0x19   : > { %1353 = vmatprep.subr.bf16.mxu0 %v1436_v7  ;;  %1396 = vmatprep.subr.bf16.mxu1 %v1436_v7 }
  0x1c   : > { %1354 = vmatpush3.bf16.msra.mxu0 %v1436_v7  ;;  %1404 = vmatpush3.bf16.msra.mxu1 %v1436_v7 }
  0x1d   : > { %1355 = vmatprep.subr.bf16.mxu0 %v1437_v8  ;;  %1397 = vmatprep.subr.bf16.mxu1 %v1437_v8 }
  0x20   : > { %1356 = vmatpush3.bf16.msra.mxu0 %v1437_v8  ;;  %1405 = vmatpush3.bf16.msra.mxu1 %v1437_v8 }
  0x21   : > { %1357 = vmatprep.subr.bf16.mxu0 %v1438_v9  ;;  %1398 = vmatprep.subr.bf16.mxu1 %v1438_v9 }
  0x24   : > { %1358 = vmatpush3.bf16.msra.mxu0 %v1438_v9  ;;  %1406 = vmatpush3.bf16.msra.mxu1 %v1438_v9 }
  0x27   : > { %1360 = vmatmul.mubr.bf16.vlgmr.msra.gmra.mrb[0].mxu0 %v1441_v10  ;;  %1376 = vmatmul.mubr.bf16.vlgmr.msra.gmra.mrb[0].mxu1 %v1442_v11 }
  0x28   : > { %1363 = vmatprep.mubr.bf16.mxu0 %v1443_v12  ;;  %1379 = vmatprep.mubr.bf16.mxu1 %v1444_v13 }
  0x2f   : > { %1364 = vmatmul.mubr.bf16.gmra.mrb[4].mxu0 %v1445_v14  ;;  %1380 = vmatmul.mubr.bf16.gmra.mrb[4].mxu1 %v1446_v15 }
  0x30   : > { %1367 = vmatprep.mubr.bf16.mxu0 %v1447_v16  ;;  %1383 = vmatprep.mubr.bf16.mxu1 %v1448_v17 }
  0x37   : > { %1368 = vmatmul.mubr.bf16.gmra.mrb[8].mxu0 %v1449_v18  ;;  %1384 = vmatmul.mubr.bf16.gmra.mrb[8].mxu1 %v1450_v19 }
  0x38   : > { %1371 = vmatprep.mubr.bf16.mxu0 %v1451_v20  ;;  %1387 = vmatprep.mubr.bf16.mxu1 %v1452_v21 }
  0x3f   : > { %1372 = vmatmul.mubr.bf16.gmra.mrb[12].mxu0 %v1453_v22  ;;  %1388 = vmatmul.mubr.bf16.gmra.mrb[12].mxu1 %v1454_v23 }
  0xfa   : > { %v1361_v25 = vpop.f32.mrb[0].mxu0  ;;  %v1377_v26 = vpop.f32.mrb[0].mxu1 }
  0xfb   : > { %v789_v27 = vadd.f32 %v1361_v25, %v1570_v24  ;;  %v805_v28 = vadd.f32 %v1377_v26, %v1570_v24  ;;  %v554_v29 = vpop.f32.mrb[1].mxu0  ;;  %v618_v30 = vpop.f32.mrb[1].mxu1 }
  0xfc   : > { %v787_v31 = vadd.f32 %v1570_v24, %v554_v29  ;;  %v803_v32 = vadd.f32 %v1570_v24, %v618_v30  ;;  %v1362_v33 = vpop.f32.mrb[2].mxu0  ;;  %v1378_v34 = vpop.f32.mrb[2].mxu1 }
  0xfd   : > { %v790_v35 = vadd.f32 %v1362_v33, %v1570_v24  ;;  %v806_v36 = vadd.f32 %v1378_v34, %v1570_v24  ;;  %v557_v37 = vpop.f32.mrb[3].mxu0  ;;  %v621_v38 = vpop.f32.mrb[3].mxu1  ;;  %v821_v41 = vmax.f32 %v789_v27, 0.0  ;;  %v837_v42 = vmax.f32 %v805_v28, 0.0 }
  0xfe   : > { %v788_v39 = vadd.f32 %v1570_v24, %v557_v37  ;;  %v804_v40 = vadd.f32 %v1570_v24, %v621_v38  ;;  %v819_v45 = vmax.f32 %v787_v31, 0.0  ;;  %v835_v46 = vmax.f32 %v803_v32, 0.0 }
  0xff   : > { %v822_v43 = vmax.f32 %v790_v35, 0.0  ;;  %v838_v44 = vmax.f32 %v806_v36, 0.0 }
 0x100   : > { %v820_v47 = vmax.f32 %v788_v39, 0.0  ;;  %v836_v48 = vmax.f32 %v804_v40, 0.0 }
 0x101   : > { %v1232_v49 = vpack.c.bf16 %v822_v43, %v821_v41  ;;  %v1272_v50 = vpack.c.bf16 %v838_v44, %v837_v42 }
 0x102   : > { %v1227_v51 = vpack.c.bf16 %v820_v47, %v819_v45  ;;  %v1267_v52 = vpack.c.bf16 %v836_v48, %v835_v46  ;;  %v1365_v53 = vpop.f32.mrb[4].mxu0  ;;  %v1381_v54 = vpop.f32.mrb[4].mxu1 }
 0x103   : > { %1304 = vst [vmem:[%s1585_s17 + $0x8] sm:$0xff] %v1232_v49   ;;  %1312 = vst [vmem:[%s1585_s17 + $0x48] sm:$0xff] %v1272_v50   ;;  %v793_v55 = vadd.f32 %v1365_v53, %v1570_v24  ;;  %v809_v56 = vadd.f32 %v1381_v54, %v1570_v24  ;;  %v570_v57 = vpop.f32.mrb[5].mxu0  ;;  %v634_v58 = vpop.f32.mrb[5].mxu1 }
 0x104   : > { %1228 = vst [vmem:[%s1585_s17] sm:$0xff] %v1227_v51   ;;  %1311 = vst [vmem:[%s1585_s17 + $0x40] sm:$0xff] %v1267_v52   ;;  %v791_v59 = vadd.f32 %v1570_v24, %v570_v57  ;;  %v807_v60 = vadd.f32 %v1570_v24, %v634_v58  ;;  %v1366_v61 = vpop.f32.mrb[6].mxu0  ;;  %v1382_v62 = vpop.f32.mrb[6].mxu1 }
 0x105   : > { %v794_v63 = vadd.f32 %v1366_v61, %v1570_v24  ;;  %v810_v0 = vadd.f32 %v1382_v62, %v1570_v24  ;;  %v573_v1 = vpop.f32.mrb[7].mxu0  ;;  %v637_v2 = vpop.f32.mrb[7].mxu1  ;;  %v825_v5 = vmax.f32 %v793_v55, 0.0  ;;  %v841_v6 = vmax.f32 %v809_v56, 0.0 }
 0x106   : > { %v792_v3 = vadd.f32 %v1570_v24, %v573_v1  ;;  %v808_v4 = vadd.f32 %v1570_v24, %v637_v2  ;;  %v823_v9 = vmax.f32 %v791_v59, 0.0  ;;  %v839_v10 = vmax.f32 %v807_v60, 0.0 }
 0x107   : > { %v826_v7 = vmax.f32 %v794_v63, 0.0  ;;  %v842_v8 = vmax.f32 %v810_v0, 0.0 }
 0x108   : > { %v824_v11 = vmax.f32 %v792_v3, 0.0  ;;  %v840_v12 = vmax.f32 %v808_v4, 0.0 }
 0x109   : > { %v1242_v13 = vpack.c.bf16 %v826_v7, %v825_v5  ;;  %v1282_v14 = vpack.c.bf16 %v842_v8, %v841_v6 }
 0x10a   : > { %v1237_v15 = vpack.c.bf16 %v824_v11, %v823_v9  ;;  %v1277_v16 = vpack.c.bf16 %v840_v12, %v839_v10  ;;  %v1369_v17 = vpop.f32.mrb[8].mxu0  ;;  %v1385_v18 = vpop.f32.mrb[8].mxu1 }
 0x10b   : > { %1306 = vst [vmem:[%s1585_s17 + $0x18] sm:$0xff] %v1242_v13   ;;  %1314 = vst [vmem:[%s1585_s17 + $0x58] sm:$0xff] %v1282_v14   ;;  %v797_v19 = vadd.f32 %v1369_v17, %v1570_v24  ;;  %v813_v20 = vadd.f32 %v1385_v18, %v1570_v24  ;;  %v586_v21 = vpop.f32.mrb[9].mxu0  ;;  %v650_v22 = vpop.f32.mrb[9].mxu1 }
 0x10c   : > { %1305 = vst [vmem:[%s1585_s17 + $0x10] sm:$0xff] %v1237_v15   ;;  %1313 = vst [vmem:[%s1585_s17 + $0x50] sm:$0xff] %v1277_v16   ;;  %v795_v23 = vadd.f32 %v1570_v24, %v586_v21  ;;  %v811_v25 = vadd.f32 %v1570_v24, %v650_v22  ;;  %v1370_v26 = vpop.f32.mrb[10].mxu0  ;;  %v1386_v27 = vpop.f32.mrb[10].mxu1 }
 0x10d   : > { %v798_v28 = vadd.f32 %v1370_v26, %v1570_v24  ;;  %v814_v29 = vadd.f32 %v1386_v27, %v1570_v24  ;;  %v589_v30 = vpop.f32.mrb[11].mxu0  ;;  %v653_v31 = vpop.f32.mrb[11].mxu1  ;;  %v829_v34 = vmax.f32 %v797_v19, 0.0  ;;  %v845_v35 = vmax.f32 %v813_v20, 0.0 }
 0x10e   : > { %v796_v32 = vadd.f32 %v1570_v24, %v589_v30  ;;  %v812_v33 = vadd.f32 %v1570_v24, %v653_v31  ;;  %v827_v38 = vmax.f32 %v795_v23, 0.0  ;;  %v843_v39 = vmax.f32 %v811_v25, 0.0 }
 0x10f   : > { %v830_v36 = vmax.f32 %v798_v28, 0.0  ;;  %v846_v37 = vmax.f32 %v814_v29, 0.0 }
 0x110   : > { %v828_v40 = vmax.f32 %v796_v32, 0.0  ;;  %v844_v41 = vmax.f32 %v812_v33, 0.0 }
 0x111   : > { %v1252_v42 = vpack.c.bf16 %v830_v36, %v829_v34  ;;  %v1292_v43 = vpack.c.bf16 %v846_v37, %v845_v35 }
 0x112   : > { %v1247_v44 = vpack.c.bf16 %v828_v40, %v827_v38  ;;  %v1287_v45 = vpack.c.bf16 %v844_v41, %v843_v39  ;;  %v1373_v46 = vpop.f32.mrb[12].mxu0  ;;  %v1389_v47 = vpop.f32.mrb[12].mxu1 }
 0x113   : > { %1308 = vst [vmem:[%s1585_s17 + $0x28] sm:$0xff] %v1252_v42   ;;  %1316 = vst [vmem:[%s1585_s17 + $0x68] sm:$0xff] %v1292_v43   ;;  %v801_v48 = vadd.f32 %v1373_v46, %v1570_v24  ;;  %v817_v49 = vadd.f32 %v1389_v47, %v1570_v24  ;;  %v602_v50 = vpop.f32.mrb[13].mxu0  ;;  %v666_v51 = vpop.f32.mrb[13].mxu1 }
 0x114   : > { %1307 = vst [vmem:[%s1585_s17 + $0x20] sm:$0xff] %v1247_v44   ;;  %1315 = vst [vmem:[%s1585_s17 + $0x60] sm:$0xff] %v1287_v45   ;;  %v799_v52 = vadd.f32 %v1570_v24, %v602_v50  ;;  %v815_v53 = vadd.f32 %v1570_v24, %v666_v51  ;;  %v1374_v54 = vpop.f32.mrb[14].mxu0  ;;  %v1390_v55 = vpop.f32.mrb[14].mxu1 }
 0x115   : > { %v802_v56 = vadd.f32 %v1374_v54, %v1570_v24  ;;  %v818_v57 = vadd.f32 %v1390_v55, %v1570_v24  ;;  %v605_v58 = vpop.f32.mrb[15].mxu0  ;;  %v669_v59 = vpop.f32.mrb[15].mxu1  ;;  %v833_v62 = vmax.f32 %v801_v48, 0.0  ;;  %v849_v63 = vmax.f32 %v817_v49, 0.0 }
 0x116   : > { %v800_v60 = vadd.f32 %v1570_v24, %v605_v58  ;;  %v816_v61 = vadd.f32 %v1570_v24, %v669_v59  ;;  %v831_v2 = vmax.f32 %v799_v52, 0.0  ;;  %v847_v3 = vmax.f32 %v815_v53, 0.0 }
 0x117   : > { %v834_v0 = vmax.f32 %v802_v56, 0.0  ;;  %v850_v1 = vmax.f32 %v818_v57, 0.0 }
 0x118   : > { %v832_v4 = vmax.f32 %v800_v60, 0.0  ;;  %v848_v5 = vmax.f32 %v816_v61, 0.0 }
 0x119   : > { %v1262_v6 = vpack.c.bf16 %v834_v0, %v833_v62  ;;  %v1302_v7 = vpack.c.bf16 %v850_v1, %v849_v63 }
 0x11a   : > { %v1257_v8 = vpack.c.bf16 %v832_v4, %v831_v2  ;;  %v1297_v9 = vpack.c.bf16 %v848_v5, %v847_v3 }
 0x11b   : > { %1310 = vst [vmem:[%s1585_s17 + $0x38] sm:$0xff] %v1262_v6   ;;  %1318 = vst [vmem:[%s1585_s17 + $0x78] sm:$0xff] %v1302_v7  }
 0x11c   : > { %1309 = vst [vmem:[%s1585_s17 + $0x30] sm:$0xff] %v1257_v8   ;;  %1317 = vst [vmem:[%s1585_s17 + $0x70] sm:$0xff] %v1297_v9  }
 0x11d PF: > { %s13_s14 = sadd.s32 1, %s1477_s14   ;;  %s1640_s12 = smov %s1473_s13 }
 0x11e   : > { %p10_p5 = scmp.ge.s32.totalorder %s13_s14, 4   ;;  %s1641_s13 = smov %s1643_s15 }
 0x120   :  { %12 = sbr.rel (!%p10_p5) target bundleno = 2 (0x2), region = 76 }

// kernel: ssd_forward.9
= control target key start
LH: loop header
LB: loop body
LE: loop exit
PB: predicated region body
PF: predicated region fallthrough
CT: control target
= control target key end

     0   :  { %s1744_s12 = smov 0   ;;  %s1746_s13 = smov 0   ;;  %s1918_s0 = inlined_call_operand.vmem [shape: bf16[512,256], index: 0, kind: input, shape index: {}]   ;;  %s1919_s1 = inlined_call_operand.vmem [shape: bf16[256,128], index: 1, kind: input, shape index: {}]   ;;  %s1920_s2 = inlined_call_operand.vmem [shape: f32[1,128], index: 2, kind: input, shape index: {}]   ;;  %s1921_s3 = inlined_call_operand.vmem [shape: bf16[512,128], index: 3, kind: output, shape index: {}]  }
   0x1   :  { %s1748_s14 = smov 0  }
   0x2 LB: > { %s32_s15 = sadd.s32 1, %s1718_s13  ;;  %p1267_p0 = scmp.ge.s32.totalorder %s1722_s14, 1  ;;  %s1722_s14 = sphi %s1748_s14, %s13_s14   ;;  %s1718_s13 = sphi %s1746_s13, %s1923_s13   ;;  %s1714_s12 = sphi %s1744_s12, %s1922_s12  }
   0x3   : > { %p34_p1 = scmp.ge.s32.totalorder %s32_s15, 2  ;;  %p191_p2 = scmp.lt.s32.totalorder %s1722_s14, 3 }
   0x5   : > { %s1925_s15 = smov (%p34_p1, %s32_s15), 0  ;;  %p192_p3 = pnand %p1267_p0, %p191_p2 }
   0x6   : > { %v1636_v0 = vld [vmem:[%s1919_s1 + $0x40] sm:$0xff] (!%p192_p3)   ;;  %s1268_s18 = sshll.u32 (!%p192_p3), %s1714_s12, 5  ;;  %v1638_v2 = vld [vmem:[%s1919_s1 + $0x48] sm:$0xff] (!%p192_p3)   ;;  %v1640_v4 = vld [vmem:[%s1919_s1 + $0x50] sm:$0xff] (!%p192_p3)  }
   0x7   : > { %195 = sbr.rel (%p192_p3) target bundleno = 320 (0x140), region = 32  ;;  %v1637_v1 = vld [vmem:[%s1919_s1] sm:$0xff] (!%p192_p3)   ;;  %1484 = vmatprep.subr.bf16.mxu0 (!%p192_p3), %v1636_v0  ;;  %1596 = vmatprep.subr.bf16.mxu1 (!%p192_p3), %v1636_v0  ;;  %v1639_v3 = vld [vmem:[%s1919_s1 + $0x8] sm:$0xff] (!%p192_p3)   ;;  %p236_p4 = scmp.lt.s32.totalorder (!%p192_p3), %s1268_s18, 63  ;;  %v1641_v5 = vld [vmem:[%s1919_s1 + $0x10] sm:$0xff] (!%p192_p3)  }
   0x8   : > { %1485 = vmatpush3.bf16.msra.mxu0 (!%p192_p3), %v1637_v1  ;;  %1604 = vmatpush3.bf16.msra.mxu1 (!%p192_p3), %v1637_v1  ;;  %v1642_v6 = vld [vmem:[%s1919_s1 + $0x58] sm:$0xff] (!%p192_p3)   ;;  %v1644_v8 = vld [vmem:[%s1919_s1 + $0x60] sm:$0xff] (!%p192_p3)   ;;  %v1646_v10 = vld [vmem:[%s1919_s1 + $0x68] sm:$0xff] (!%p192_p3)  }
   0x9   : > { %1486 = vmatprep.subr.bf16.mxu0 (!%p192_p3), %v1638_v2  ;;  %1597 = vmatprep.subr.bf16.mxu1 (!%p192_p3), %v1638_v2  ;;  %v1643_v7 = vld [vmem:[%s1919_s1 + $0x18] sm:$0xff] (!%p192_p3)   ;;  %v1645_v9 = vld [vmem:[%s1919_s1 + $0x20] sm:$0xff] (!%p192_p3)   ;;  %v1647_v13 = vld [vmem:[%s1919_s1 + $0x28] sm:$0xff] (!%p192_p3)  }
   0xa   : > { %v1648_v14 = vld [vmem:[%s1919_s1 + $0x70] sm:$0xff] (!%p192_p3)   ;;  %v1650_v16 = vld [vmem:[%s1919_s1 + $0x78] sm:$0xff] (!%p192_p3)   ;;  %v1853_v51 = vld [vmem:[%s1920_s2] ss:$0 sm:$0xff] (!%p192_p3) }
   0xb   : > { %v1649_v15 = vld [vmem:[%s1919_s1 + $0x30] sm:$0xff] (!%p192_p3)   ;;  %v1651_v17 = vld [vmem:[%s1919_s1 + $0x38] sm:$0xff] (!%p192_p3)  }
   0xc   : > { %1487 = vmatpush3.bf16.msra.mxu0 (!%p192_p3), %v1639_v3  ;;  %1605 = vmatpush3.bf16.msra.mxu1 (!%p192_p3), %v1639_v3 }
   0xd   : > { %1488 = vmatprep.subr.bf16.mxu0 (!%p192_p3), %v1640_v4  ;;  %1598 = vmatprep.subr.bf16.mxu1 (!%p192_p3), %v1640_v4 }
   0xe   : > { %s1927_s18 = smov (!%p236_p4, %s1268_s18), 63 }
   0xf   : > { %s1356_s6 = sshll.u32 %s1927_s18, 3  ;;  %s1272_s5 = sshll.u32 %s1927_s18, 2 }
  0x10   : > { %1489 = vmatpush3.bf16.msra.mxu0 %v1641_v5  ;;  %1606 = vmatpush3.bf16.msra.mxu1 %v1641_v5  ;;  %s1795_s11 = scalar_lea.vmem %s1918_s0, %s1356_s6  ;;  %s1863_s8 = scalar_lea.vmem %s1921_s3, %s1272_s5 }
  0x11   : > { %1490 = vmatprep.subr.bf16.mxu0 %v1642_v6  ;;  %1599 = vmatprep.subr.bf16.mxu1 %v1642_v6  ;;  %v1654_v11 = vld [vmem:[%s1795_s11 + $0x4] ss:$8 sps:$4 sm:$0xff]   ;;  %v1652_v18 = vld [vmem:[%s1795_s11] ss:$8 sps:$4 sm:$0xff]   ;;  %v1658_v20 = vld [vmem:[%s1795_s11 + $0x14] ss:$8 sps:$4 sm:$0xff]  }
  0x12   : > { %v1657_v12 = vld [vmem:[%s1795_s11 + $0x84] ss:$8 sps:$4 sm:$0xff]   ;;  %688 = vmatprep.mubr.bf16.mxu0 %v1654_v11  ;;  %v1655_v19 = vld [vmem:[%s1795_s11 + $0x80] ss:$8 sps:$4 sm:$0xff]   ;;  %v1660_v21 = vld [vmem:[%s1795_s11 + $0x94] ss:$8 sps:$4 sm:$0xff]  }
  0x13   : > { %752 = vmatprep.mubr.bf16.mxu1 %v1657_v12  ;;  %v1662_v22 = vld [vmem:[%s1795_s11 + $0x10] ss:$8 sps:$4 sm:$0xff]   ;;  %v1664_v24 = vld [vmem:[%s1795_s11 + $0x24] ss:$8 sps:$4 sm:$0xff]   ;;  %v1668_v26 = vld [vmem:[%s1795_s11 + $0x20] ss:$8 sps:$4 sm:$0xff]  }
  0x14   : > { %1491 = vmatpush3.bf16.msra.mxu0 %v1643_v7  ;;  %1607 = vmatpush3.bf16.msra.mxu1 %v1643_v7  ;;  %v1663_v23 = vld [vmem:[%s1795_s11 + $0x90] ss:$8 sps:$4 sm:$0xff]   ;;  %v1666_v25 = vld [vmem:[%s1795_s11 + $0xa4] ss:$8 sps:$4 sm:$0xff]   ;;  %v1669_v27 = vld [vmem:[%s1795_s11 + $0xa0] ss:$8 sps:$4 sm:$0xff]  }
  0x15   : > { %1492 = vmatprep.subr.bf16.mxu0 %v1644_v8  ;;  %1600 = vmatprep.subr.bf16.mxu1 %v1644_v8  ;;  %v1670_v28 = vld [vmem:[%s1795_s11 + $0x34] ss:$8 sps:$4 sm:$0xff]   ;;  %v1674_v30 = vld [vmem:[%s1795_s11 + $0x30] ss:$8 sps:$4 sm:$0xff]   ;;  %v1676_v32 = vld [vmem:[%s1795_s11 + $0x44] ss:$8 sps:$4 sm:$0xff]  }
  0x16   : > { %v1672_v29 = vld [vmem:[%s1795_s11 + $0xb4] ss:$8 sps:$4 sm:$0xff]   ;;  %v1675_v31 = vld [vmem:[%s1795_s11 + $0xb0] ss:$8 sps:$4 sm:$0xff]   ;;  %v1678_v33 = vld [vmem:[%s1795_s11 + $0xc4] ss:$8 sps:$4 sm:$0xff]  }
  0x17   : > { %v1680_v34 = vld [vmem:[%s1795_s11 + $0x40] ss:$8 sps:$4 sm:$0xff]   ;;  %v1682_v36 = vld [vmem:[%s1795_s11 + $0x54] ss:$8 sps:$4 sm:$0xff]   ;;  %v1686_v38 = vld [vmem:[%s1795_s11 + $0x50] ss:$8 sps:$4 sm:$0xff]  }
  0x18   : > { %1493 = vmatpush3.bf16.msra.mxu0 %v1645_v9  ;;  %1608 = vmatpush3.bf16.msra.mxu1 %v1645_v9  ;;  %v1681_v35 = vld [vmem:[%s1795_s11 + $0xc0] ss:$8 sps:$4 sm:$0xff]   ;;  %v1684_v37 = vld [vmem:[%s1795_s11 + $0xd4] ss:$8 sps:$4 sm:$0xff]   ;;  %v1687_v39 = vld [vmem:[%s1795_s11 + $0xd0] ss:$8 sps:$4 sm:$0xff]  }
  0x19   : > { %1494 = vmatprep.subr.bf16.mxu0 %v1646_v10  ;;  %1601 = vmatprep.subr.bf16.mxu1 %v1646_v10  ;;  %v1688_v40 = vld [vmem:[%s1795_s11 + $0x64] ss:$8 sps:$4 sm:$0xff]   ;;  %v1692_v42 = vld [vmem:[%s1795_s11 + $0x60] ss:$8 sps:$4 sm:$0xff]   ;;  %v1694_v44 = vld [vmem:[%s1795_s11 + $0x74] ss:$8 sps:$4 sm:$0xff]  }
  0x1a   : > { %v1690_v41 = vld [vmem:[%s1795_s11 + $0xe4] ss:$8 sps:$4 sm:$0xff]   ;;  %v1693_v43 = vld [vmem:[%s1795_s11 + $0xe0] ss:$8 sps:$4 sm:$0xff]   ;;  %v1696_v45 = vld [vmem:[%s1795_s11 + $0xf4] ss:$8 sps:$4 sm:$0xff]  }
  0x1b   : > { %v1698_v46 = vld [vmem:[%s1795_s11 + $0x70] ss:$8 sps:$4 sm:$0xff]  }
  0x1c   : > { %1495 = vmatpush3.bf16.msra.mxu0 %v1647_v13  ;;  %1609 = vmatpush3.bf16.msra.mxu1 %v1647_v13  ;;  %v1699_v47 = vld [vmem:[%s1795_s11 + $0xf0] ss:$8 sps:$4 sm:$0xff]  }
  0x1d   : > { %1496 = vmatprep.subr.bf16.mxu0 %v1648_v14  ;;  %1602 = vmatprep.subr.bf16.mxu1 %v1648_v14 }
  0x20   : > { %1497 = vmatpush3.bf16.msra.mxu0 %v1649_v15  ;;  %1610 = vmatpush3.bf16.msra.mxu1 %v1649_v15 }
  0x21   : > { %1498 = vmatprep.subr.bf16.mxu0 %v1650_v16  ;;  %1603 = vmatprep.subr.bf16.mxu1 %v1650_v16 }
  0x24   : > { %1499 = vmatpush3.bf16.msra.mxu0 %v1651_v17  ;;  %1611 = vmatpush3.bf16.msra.mxu1 %v1651_v17 }
  0x27   : > { %689 = vmatmul.mubr.bf16.vlgmr.msra.gmra.mrb[0].mxu0 %v1652_v18  ;;  %753 = vmatmul.mubr.bf16.vlgmr.msra.gmra.mrb[0].mxu1 %v1655_v19 }
  0x28   : > { %696 = vmatprep.mubr.bf16.mxu0 %v1658_v20  ;;  %760 = vmatprep.mubr.bf16.mxu1 %v1660_v21 }
  0x2f   : > { %697 = vmatmul.mubr.bf16.gmra.mrb[4].mxu0 %v1662_v22  ;;  %761 = vmatmul.mubr.bf16.gmra.mrb[4].mxu1 %v1663_v23 }
  0x30   : > { %704 = vmatprep.mubr.bf16.mxu0 %v1664_v24  ;;  %768 = vmatprep.mubr.bf16.mxu1 %v1666_v25 }
  0x37   : > { %705 = vmatmul.mubr.bf16.gmra.mrb[8].mxu0 %v1668_v26  ;;  %769 = vmatmul.mubr.bf16.gmra.mrb[8].mxu1 %v1669_v27 }
  0x38   : > { %712 = vmatprep.mubr.bf16.mxu0 %v1670_v28  ;;  %776 = vmatprep.mubr.bf16.mxu1 %v1672_v29 }
  0x3f   : > { %713 = vmatmul.mubr.bf16.gmra.mrb[12].mxu0 %v1674_v30  ;;  %777 = vmatmul.mubr.bf16.gmra.mrb[12].mxu1 %v1675_v31 }
  0x40   : > { %720 = vmatprep.mubr.bf16.mxu0 %v1676_v32  ;;  %784 = vmatprep.mubr.bf16.mxu1 %v1678_v33 }
  0x47   : > { %721 = vmatmul.mubr.bf16.gmra.mrb[16].mxu0 %v1680_v34  ;;  %785 = vmatmul.mubr.bf16.gmra.mrb[16].mxu1 %v1681_v35 }
  0x48   : > { %728 = vmatprep.mubr.bf16.mxu0 %v1682_v36  ;;  %792 = vmatprep.mubr.bf16.mxu1 %v1684_v37 }
  0x4f   : > { %729 = vmatmul.mubr.bf16.gmra.mrb[20].mxu0 %v1686_v38  ;;  %793 = vmatmul.mubr.bf16.gmra.mrb[20].mxu1 %v1687_v39 }
  0x50   : > { %736 = vmatprep.mubr.bf16.mxu0 %v1688_v40  ;;  %800 = vmatprep.mubr.bf16.mxu1 %v1690_v41 }
  0x57   : > { %737 = vmatmul.mubr.bf16.gmra.mrb[24].mxu0 %v1692_v42  ;;  %801 = vmatmul.mubr.bf16.gmra.mrb[24].mxu1 %v1693_v43 }
  0x58   : > { %744 = vmatprep.mubr.bf16.mxu0 %v1694_v44  ;;  %808 = vmatprep.mubr.bf16.mxu1 %v1696_v45 }
  0x5f   : > { %745 = vmatmul.mubr.bf16.gmra.mrb[28].mxu0 %v1698_v46  ;;  %809 = vmatmul.mubr.bf16.gmra.mrb[28].mxu1 %v1699_v47 }
  0xfa   : > { %v1500_v48 = vpop.f32.mrb[0].mxu0  ;;  %v1548_v49 = vpop.f32.mrb[0].mxu1 }
  0xfb   : > { %v1501_v50 = vpop.f32.mrb[1].mxu0  ;;  %v1549_v52 = vpop.f32.mrb[1].mxu1 }
  0xfc   : > { %v1502_v53 = vadd.f32 %v1501_v50, %v1500_v48  ;;  %v1550_v54 = vadd.f32 %v1549_v52, %v1548_v49  ;;  %v1503_v55 = vpop.f32.mrb[2].mxu0  ;;  %v1551_v56 = vpop.f32.mrb[2].mxu1 }
  0xfd   : > { %v1504_v57 = vpop.f32.mrb[3].mxu0  ;;  %v1552_v58 = vpop.f32.mrb[3].mxu1 }
  0xfe   : > { %v923_v59 = vadd.f32 %v1502_v53, %v1853_v51  ;;  %v939_v60 = vadd.f32 %v1550_v54, %v1853_v51  ;;  %v1505_v61 = vadd.f32 %v1504_v57, %v1503_v55  ;;  %v1553_v62 = vadd.f32 %v1552_v58, %v1551_v56 }
 0x100   : > { %v924_v63 = vadd.f32 %v1505_v61, %v1853_v51  ;;  %v940_v0 = vadd.f32 %v1553_v62, %v1853_v51  ;;  %v955_v1 = vmax.f32 %v923_v59, 0.0  ;;  %v971_v2 = vmax.f32 %v939_v60, 0.0 }
 0x102   : > { %v956_v3 = vmax.f32 %v924_v63, 0.0  ;;  %v972_v4 = vmax.f32 %v940_v0, 0.0  ;;  %v1506_v5 = vpop.f32.mrb[4].mxu0  ;;  %v1554_v6 = vpop.f32.mrb[4].mxu1 }
 0x103   : > { %v1507_v7 = vpop.f32.mrb[5].mxu0  ;;  %v1555_v8 = vpop.f32.mrb[5].mxu1 }
 0x104   : > { %v1392_v9 = vpack.c.bf16 %v956_v3, %v955_v1  ;;  %v1432_v10 = vpack.c.bf16 %v972_v4, %v971_v2  ;;  %v1508_v11 = vadd.f32 %v1507_v7, %v1506_v5  ;;  %v1556_v12 = vadd.f32 %v1555_v8, %v1554_v6  ;;  %v1509_v13 = vpop.f32.mrb[6].mxu0  ;;  %v1557_v14 = vpop.f32.mrb[6].mxu1 }
 0x105   : > { %v1510_v15 = vpop.f32.mrb[7].mxu0  ;;  %v1558_v16 = vpop.f32.mrb[7].mxu1 }
 0x106   : > { %1393 = vst [vmem:[%s1863_s8] sm:$0xff] %v1392_v9   ;;  %1476 = vst [vmem:[%s1863_s8 + $0x40] sm:$0xff] %v1432_v10   ;;  %v925_v17 = vadd.f32 %v1508_v11, %v1853_v51  ;;  %v941_v18 = vadd.f32 %v1556_v12, %v1853_v51  ;;  %v1511_v19 = vadd.f32 %v1510_v15, %v1509_v13 }
 0x107   : > { %v1559_v20 = vadd.f32 %v1558_v16, %v1557_v14 }
 0x108   : > { %v926_v21 = vadd.f32 %v1511_v19, %v1853_v51  ;;  %v957_v23 = vmax.f32 %v925_v17, 0.0  ;;  %v973_v24 = vmax.f32 %v941_v18, 0.0 }
 0x109   : > { %v942_v22 = vadd.f32 %v1559_v20, %v1853_v51 }
 0x10a   : > { %v958_v25 = vmax.f32 %v926_v21, 0.0  ;;  %v1512_v27 = vpop.f32.mrb[8].mxu0  ;;  %v1560_v28 = vpop.f32.mrb[8].mxu1 }
 0x10b   : > { %v974_v26 = vmax.f32 %v942_v22, 0.0  ;;  %v1513_v29 = vpop.f32.mrb[9].mxu0  ;;  %v1561_v30 = vpop.f32.mrb[9].mxu1 }
 0x10c   : > { %v1397_v31 = vpack.c.bf16 %v958_v25, %v957_v23  ;;  %v1514_v33 = vadd.f32 %v1513_v29, %v1512_v27  ;;  %v1562_v34 = vadd.f32 %v1561_v30, %v1560_v28  ;;  %v1515_v35 = vpop.f32.mrb[10].mxu0  ;;  %v1563_v36 = vpop.f32.mrb[10].mxu1 }
 0x10d   : > { %v1437_v32 = vpack.c.bf16 %v974_v26, %v973_v24  ;;  %v1516_v37 = vpop.f32.mrb[11].mxu0  ;;  %v1564_v38 = vpop.f32.mrb[11].mxu1 }
 0x10e   : > { %1469 = vst [vmem:[%s1863_s8 + $0x8] sm:$0xff] %v1397_v31   ;;  %v927_v39 = vadd.f32 %v1514_v33, %v1853_v51  ;;  %v943_v40 = vadd.f32 %v1562_v34, %v1853_v51  ;;  %v1517_v41 = vadd.f32 %v1516_v37, %v1515_v35  ;;  %v1565_v42 = vadd.f32 %v1564_v38, %v1563_v36 }
 0x10f   : > { %1477 = vst [vmem:[%s1863_s8 + $0x48] sm:$0xff] %v1437_v32  }
 0x110   : > { %v928_v43 = vadd.f32 %v1517_v41, %v1853_v51  ;;  %v944_v44 = vadd.f32 %v1565_v42, %v1853_v51  ;;  %v959_v45 = vmax.f32 %v927_v39, 0.0  ;;  %v975_v46 = vmax.f32 %v943_v40, 0.0 }
 0x112   : > { %v960_v47 = vmax.f32 %v928_v43, 0.0  ;;  %v976_v48 = vmax.f32 %v944_v44, 0.0  ;;  %v1518_v49 = vpop.f32.mrb[12].mxu0  ;;  %v1566_v50 = vpop.f32.mrb[12].mxu1 }
 0x113   : > { %v1519_v52 = vpop.f32.mrb[13].mxu0  ;;  %v1567_v53 = vpop.f32.mrb[13].mxu1 }
 0x114   : > { %v1402_v54 = vpack.c.bf16 %v960_v47, %v959_v45  ;;  %v1442_v55 = vpack.c.bf16 %v976_v48, %v975_v46  ;;  %v1520_v56 = vadd.f32 %v1519_v52, %v1518_v49  ;;  %v1568_v57 = vadd.f32 %v1567_v53, %v1566_v50  ;;  %v1521_v58 = vpop.f32.mrb[14].mxu0  ;;  %v1569_v59 = vpop.f32.mrb[14].mxu1 }
 0x115   : > { %v1522_v60 = vpop.f32.mrb[15].mxu0  ;;  %v1570_v61 = vpop.f32.mrb[15].mxu1 }
 0x116   : > { %1470 = vst [vmem:[%s1863_s8 + $0x10] sm:$0xff] %v1402_v54   ;;  %1478 = vst [vmem:[%s1863_s8 + $0x50] sm:$0xff] %v1442_v55   ;;  %v929_v62 = vadd.f32 %v1520_v56, %v1853_v51  ;;  %v945_v63 = vadd.f32 %v1568_v57, %v1853_v51  ;;  %v1523_v0 = vadd.f32 %v1522_v60, %v1521_v58 }
 0x117   : > { %v1571_v1 = vadd.f32 %v1570_v61, %v1569_v59 }
 0x118   : > { %v930_v2 = vadd.f32 %v1523_v0, %v1853_v51  ;;  %v961_v4 = vmax.f32 %v929_v62, 0.0  ;;  %v977_v5 = vmax.f32 %v945_v63, 0.0 }
 0x119   : > { %v946_v3 = vadd.f32 %v1571_v1, %v1853_v51 }
 0x11a   : > { %v962_v6 = vmax.f32 %v930_v2, 0.0  ;;  %v1524_v8 = vpop.f32.mrb[16].mxu0  ;;  %v1572_v9 = vpop.f32.mrb[16].mxu1 }
 0x11b   : > { %v978_v7 = vmax.f32 %v946_v3, 0.0  ;;  %v1525_v10 = vpop.f32.mrb[17].mxu0  ;;  %v1573_v11 = vpop.f32.mrb[17].mxu1 }
 0x11c   : > { %v1407_v12 = vpack.c.bf16 %v962_v6, %v961_v4  ;;  %v1526_v14 = vadd.f32 %v1525_v10, %v1524_v8  ;;  %v1574_v15 = vadd.f32 %v1573_v11, %v1572_v9  ;;  %v1527_v16 = vpop.f32.mrb[18].mxu0  ;;  %v1575_v17 = vpop.f32.mrb[18].mxu1 }
 0x11d   : > { %v1447_v13 = vpack.c.bf16 %v978_v7, %v977_v5  ;;  %v1528_v18 = vpop.f32.mrb[19].mxu0  ;;  %v1576_v19 = vpop.f32.mrb[19].mxu1 }
 0x11e   : > { %1471 = vst [vmem:[%s1863_s8 + $0x18] sm:$0xff] %v1407_v12   ;;  %v931_v20 = vadd.f32 %v1526_v14, %v1853_v51  ;;  %v947_v21 = vadd.f32 %v1574_v15, %v1853_v51  ;;  %v1529_v22 = vadd.f32 %v1528_v18, %v1527_v16  ;;  %v1577_v23 = vadd.f32 %v1576_v19, %v1575_v17 }
 0x11f   : > { %1479 = vst [vmem:[%s1863_s8 + $0x58] sm:$0xff] %v1447_v13  }
 0x120   : > { %v932_v24 = vadd.f32 %v1529_v22, %v1853_v51  ;;  %v948_v25 = vadd.f32 %v1577_v23, %v1853_v51  ;;  %v963_v26 = vmax.f32 %v931_v20, 0.0  ;;  %v979_v27 = vmax.f32 %v947_v21, 0.0 }
 0x122   : > { %v964_v28 = vmax.f32 %v932_v24, 0.0  ;;  %v980_v29 = vmax.f32 %v948_v25, 0.0  ;;  %v1530_v30 = vpop.f32.mrb[20].mxu0  ;;  %v1578_v31 = vpop.f32.mrb[20].mxu1 }
 0x123   : > { %v1531_v32 = vpop.f32.mrb[21].mxu0  ;;  %v1579_v33 = vpop.f32.mrb[21].mxu1 }
 0x124   : > { %v1412_v34 = vpack.c.bf16 %v964_v28, %v963_v26  ;;  %v1452_v35 = vpack.c.bf16 %v980_v29, %v979_v27  ;;  %v1532_v36 = vadd.f32 %v1531_v32, %v1530_v30  ;;  %v1580_v37 = vadd.f32 %v1579_v33, %v1578_v31  ;;  %v1533_v38 = vpop.f32.mrb[22].mxu0  ;;  %v1581_v39 = vpop.f32.mrb[22].mxu1 }
 0x125   : > { %v1534_v40 = vpop.f32.mrb[23].mxu0  ;;  %v1582_v41 = vpop.f32.mrb[23].mxu1 }
 0x126   : > { %1472 = vst [vmem:[%s1863_s8 + $0x20] sm:$0xff] %v1412_v34   ;;  %1480 = vst [vmem:[%s1863_s8 + $0x60] sm:$0xff] %v1452_v35   ;;  %v933_v42 = vadd.f32 %v1532_v36, %v1853_v51  ;;  %v949_v43 = vadd.f32 %v1580_v37, %v1853_v51  ;;  %v1535_v44 = vadd.f32 %v1534_v40, %v1533_v38 }
 0x127   : > { %v1583_v45 = vadd.f32 %v1582_v41, %v1581_v39 }
 0x128   : > { %v934_v46 = vadd.f32 %v1535_v44, %v1853_v51  ;;  %v965_v48 = vmax.f32 %v933_v42, 0.0  ;;  %v981_v49 = vmax.f32 %v949_v43, 0.0 }
 0x129   : > { %v950_v47 = vadd.f32 %v1583_v45, %v1853_v51 }
 0x12a   : > { %v966_v50 = vmax.f32 %v934_v46, 0.0  ;;  %v1536_v53 = vpop.f32.mrb[24].mxu0  ;;  %v1584_v54 = vpop.f32.mrb[24].mxu1 }
 0x12b   : > { %v982_v52 = vmax.f32 %v950_v47, 0.0  ;;  %v1537_v55 = vpop.f32.mrb[25].mxu0  ;;  %v1585_v56 = vpop.f32.mrb[25].mxu1 }
 0x12c   : > { %v1417_v57 = vpack.c.bf16 %v966_v50, %v965_v48  ;;  %v1538_v59 = vadd.f32 %v1537_v55, %v1536_v53  ;;  %v1586_v60 = vadd.f32 %v1585_v56, %v1584_v54  ;;  %v1539_v61 = vpop.f32.mrb[26].mxu0  ;;  %v1587_v62 = vpop.f32.mrb[26].mxu1 }
 0x12d   : > { %v1457_v58 = vpack.c.bf16 %v982_v52, %v981_v49  ;;  %v1540_v63 = vpop.f32.mrb[27].mxu0  ;;  %v1588_v0 = vpop.f32.mrb[27].mxu1 }
 0x12e   : > { %1473 = vst [vmem:[%s1863_s8 + $0x28] sm:$0xff] %v1417_v57   ;;  %v935_v1 = vadd.f32 %v1538_v59, %v1853_v51  ;;  %v951_v2 = vadd.f32 %v1586_v60, %v1853_v51  ;;  %v1541_v3 = vadd.f32 %v1540_v63, %v1539_v61  ;;  %v1589_v4 = vadd.f32 %v1588_v0, %v1587_v62 }
 0x12f   : > { %1481 = vst [vmem:[%s1863_s8 + $0x68] sm:$0xff] %v1457_v58  }
 0x130   : > { %v936_v5 = vadd.f32 %v1541_v3, %v1853_v51  ;;  %v952_v6 = vadd.f32 %v1589_v4, %v1853_v51  ;;  %v967_v7 = vmax.f32 %v935_v1, 0.0  ;;  %v983_v8 = vmax.f32 %v951_v2, 0.0 }
 0x132   : > { %v968_v9 = vmax.f32 %v936_v5, 0.0  ;;  %v984_v10 = vmax.f32 %v952_v6, 0.0  ;;  %v1542_v11 = vpop.f32.mrb[28].mxu0  ;;  %v1590_v12 = vpop.f32.mrb[28].mxu1 }
 0x133   : > { %v1543_v13 = vpop.f32.mrb[29].mxu0  ;;  %v1591_v14 = vpop.f32.mrb[29].mxu1 }
 0x134   : > { %v1422_v15 = vpack.c.bf16 %v968_v9, %v967_v7  ;;  %v1462_v16 = vpack.c.bf16 %v984_v10, %v983_v8  ;;  %v1544_v17 = vadd.f32 %v1543_v13, %v1542_v11  ;;  %v1592_v18 = vadd.f32 %v1591_v14, %v1590_v12  ;;  %v1545_v19 = vpop.f32.mrb[30].mxu0  ;;  %v1593_v20 = vpop.f32.mrb[30].mxu1 }
 0x135   : > { %v1546_v21 = vpop.f32.mrb[31].mxu0  ;;  %v1594_v22 = vpop.f32.mrb[31].mxu1 }
 0x136   : > { %1474 = vst [vmem:[%s1863_s8 + $0x30] sm:$0xff] %v1422_v15   ;;  %1482 = vst [vmem:[%s1863_s8 + $0x70] sm:$0xff] %v1462_v16   ;;  %v937_v23 = vadd.f32 %v1544_v17, %v1853_v51  ;;  %v953_v24 = vadd.f32 %v1592_v18, %v1853_v51  ;;  %v1547_v25 = vadd.f32 %v1546_v21, %v1545_v19 }
 0x137   : > { %v1595_v26 = vadd.f32 %v1594_v22, %v1593_v20 }
 0x138   : > { %v938_v27 = vadd.f32 %v1547_v25, %v1853_v51  ;;  %v969_v29 = vmax.f32 %v937_v23, 0.0  ;;  %v985_v30 = vmax.f32 %v953_v24, 0.0 }
 0x139   : > { %v954_v28 = vadd.f32 %v1595_v26, %v1853_v51 }
 0x13a   : > { %v970_v31 = vmax.f32 %v938_v27, 0.0 }
 0x13b   : > { %v986_v32 = vmax.f32 %v954_v28, 0.0 }
 0x13c   : > { %v1427_v33 = vpack.c.bf16 %v970_v31, %v969_v29 }
 0x13d   : > { %v1467_v34 = vpack.c.bf16 %v986_v32, %v985_v30 }
 0x13e   : > { %1475 = vst [vmem:[%s1863_s8 + $0x38] sm:$0xff] %v1427_v33  }
 0x13f   : > { %1483 = vst [vmem:[%s1863_s8 + $0x78] sm:$0xff] %v1467_v34  }
 0x140 PF: > { %s13_s14 = sadd.s32 1, %s1722_s14   ;;  %s1922_s12 = smov %s1718_s13 }
 0x141   : > { %p10_p5 = scmp.ge.s32.totalorder %s13_s14, 4   ;;  %s1923_s13 = smov %s1925_s15 }
 0x143   :  { %12 = sbr.rel (!%p10_p5) target bundleno = 2 (0x2), region = 76 }

// kernel: ssd_forward.11
= control target key start
LH: loop header
LB: loop body
LE: loop exit
PB: predicated region body
PF: predicated region fallthrough
CT: control target
= control target key end

     0   :  { %s964_s12 = smov 0   ;;  %s966_s13 = smov 0   ;;  %s1062_s0 = inlined_call_operand.vmem [shape: bf16[128,256], index: 0, kind: input, shape index: {}]   ;;  %s1063_s1 = inlined_call_operand.vmem [shape: bf16[256,128], index: 1, kind: input, shape index: {}]   ;;  %s1064_s2 = inlined_call_operand.vmem [shape: f32[1,128], index: 2, kind: input, shape index: {}]   ;;  %s1065_s3 = inlined_call_operand.vmem [shape: bf16[128,128], index: 3, kind: output, shape index: {}]  }
   0x1   :  { %s968_s14 = smov 0  }
   0x2 LB: > { %s32_s15 = sadd.s32 1, %s938_s13  ;;  %p739_p0 = scmp.ge.s32.totalorder %s942_s14, 1  ;;  %s942_s14 = sphi %s968_s14, %s13_s14   ;;  %s938_s13 = sphi %s966_s13, %s1067_s13   ;;  %s934_s12 = sphi %s964_s12, %s1066_s12  }
   0x3   : > { %p34_p1 = scmp.ge.s32.totalorder %s32_s15, 2  ;;  %p191_p2 = scmp.lt.s32.totalorder %s942_s14, 3 }
   0x5   : > { %s1069_s15 = smov (%p34_p1, %s32_s15), 0  ;;  %p192_p3 = pnand %p739_p0, %p191_p2 }
   0x6   : > { %v892_v0 = vld [vmem:[%s1063_s1 + $0x40] sm:$0xff] (!%p192_p3)   ;;  %s740_s18 = sshll.u32 (!%p192_p3), %s934_s12, 3  ;;  %v894_v2 = vld [vmem:[%s1063_s1 + $0x48] sm:$0xff] (!%p192_p3)   ;;  %v896_v4 = vld [vmem:[%s1063_s1 + $0x50] sm:$0xff] (!%p192_p3)  }
   0x7   : > { %195 = sbr.rel (%p192_p3) target bundleno = 272 (0x110), region = 32  ;;  %v893_v1 = vld [vmem:[%s1063_s1] sm:$0xff] (!%p192_p3)   ;;  %812 = vmatprep.subr.bf16.mxu0 (!%p192_p3), %v892_v0  ;;  %852 = vmatprep.subr.bf16.mxu1 (!%p192_p3), %v892_v0  ;;  %v895_v3 = vld [vmem:[%s1063_s1 + $0x8] sm:$0xff] (!%p192_p3)   ;;  %p236_p4 = scmp.lt.s32.totalorder (!%p192_p3), %s740_s18, 15  ;;  %v897_v5 = vld [vmem:[%s1063_s1 + $0x10] sm:$0xff] (!%p192_p3)  }
   0x8   : > { %813 = vmatpush3.bf16.msra.mxu0 (!%p192_p3), %v893_v1  ;;  %860 = vmatpush3.bf16.msra.mxu1 (!%p192_p3), %v893_v1  ;;  %v898_v6 = vld [vmem:[%s1063_s1 + $0x58] sm:$0xff] (!%p192_p3)   ;;  %v900_v8 = vld [vmem:[%s1063_s1 + $0x60] sm:$0xff] (!%p192_p3)   ;;  %v902_v10 = vld [vmem:[%s1063_s1 + $0x68] sm:$0xff] (!%p192_p3)  }
   0x9   : > { %814 = vmatprep.subr.bf16.mxu0 (!%p192_p3), %v894_v2  ;;  %853 = vmatprep.subr.bf16.mxu1 (!%p192_p3), %v894_v2  ;;  %v899_v7 = vld [vmem:[%s1063_s1 + $0x18] sm:$0xff] (!%p192_p3)   ;;  %v901_v9 = vld [vmem:[%s1063_s1 + $0x20] sm:$0xff] (!%p192_p3)   ;;  %v903_v13 = vld [vmem:[%s1063_s1 + $0x28] sm:$0xff] (!%p192_p3)  }
   0xa   : > { %v904_v14 = vld [vmem:[%s1063_s1 + $0x70] sm:$0xff] (!%p192_p3)   ;;  %v906_v16 = vld [vmem:[%s1063_s1 + $0x78] sm:$0xff] (!%p192_p3)   ;;  %v769_v27 = vld [vmem:[%s1064_s2] ss:$0 sm:$0xff] (!%p192_p3) }
   0xb   : > { %v905_v15 = vld [vmem:[%s1063_s1 + $0x30] sm:$0xff] (!%p192_p3)   ;;  %v907_v17 = vld [vmem:[%s1063_s1 + $0x38] sm:$0xff] (!%p192_p3)  }
   0xc   : > { %815 = vmatpush3.bf16.msra.mxu0 (!%p192_p3), %v895_v3  ;;  %861 = vmatpush3.bf16.msra.mxu1 (!%p192_p3), %v895_v3 }
   0xd   : > { %816 = vmatprep.subr.bf16.mxu0 (!%p192_p3), %v896_v4  ;;  %854 = vmatprep.subr.bf16.mxu1 (!%p192_p3), %v896_v4 }
   0xe   : > { %s1071_s18 = smov (!%p236_p4, %s740_s18), 15 }
   0xf   : > { %s780_s6 = sshll.u32 %s1071_s18, 3  ;;  %s744_s5 = sshll.u32 %s1071_s18, 2 }
  0x10   : > { %817 = vmatpush3.bf16.msra.mxu0 %v897_v5  ;;  %862 = vmatpush3.bf16.msra.mxu1 %v897_v5  ;;  %s1015_s11 = scalar_lea.vmem %s1062_s0, %s780_s6  ;;  %s265_s8 = scalar_lea.vmem %s1065_s3, %s744_s5 }
  0x11   : > { %818 = vmatprep.subr.bf16.mxu0 %v898_v6  ;;  %855 = vmatprep.subr.bf16.mxu1 %v898_v6  ;;  %v910_v11 = vld [vmem:[%s1015_s11 + $0x4] ss:$8 sps:$4 sm:$0xff]   ;;  %v908_v18 = vld [vmem:[%s1015_s11] ss:$8 sps:$4 sm:$0xff]   ;;  %v914_v20 = vld [vmem:[%s1015_s11 + $0x14] ss:$8 sps:$4 sm:$0xff]  }
  0x12   : > { %v913_v12 = vld [vmem:[%s1015_s11 + $0x24] ss:$8 sps:$4 sm:$0xff]   ;;  %496 = vmatprep.mubr.bf16.mxu0 %v910_v11  ;;  %v911_v19 = vld [vmem:[%s1015_s11 + $0x20] ss:$8 sps:$4 sm:$0xff]   ;;  %v916_v21 = vld [vmem:[%s1015_s11 + $0x34] ss:$8 sps:$4 sm:$0xff]  }
  0x13   : > { %512 = vmatprep.mubr.bf16.mxu1 %v913_v12  ;;  %v918_v22 = vld [vmem:[%s1015_s11 + $0x10] ss:$8 sps:$4 sm:$0xff]  }
  0x14   : > { %819 = vmatpush3.bf16.msra.mxu0 %v899_v7  ;;  %863 = vmatpush3.bf16.msra.mxu1 %v899_v7  ;;  %v919_v23 = vld [vmem:[%s1015_s11 + $0x30] ss:$8 sps:$4 sm:$0xff]  }
  0x15   : > { %820 = vmatprep.subr.bf16.mxu0 %v900_v8  ;;  %856 = vmatprep.subr.bf16.mxu1 %v900_v8 }
  0x18   : > { %821 = vmatpush3.bf16.msra.mxu0 %v901_v9  ;;  %864 = vmatpush3.bf16.msra.mxu1 %v901_v9 }
  0x19   : > { %822 = vmatprep.subr.bf16.mxu0 %v902_v10  ;;  %857 = vmatprep.subr.bf16.mxu1 %v902_v10 }
  0x1c   : > { %823 = vmatpush3.bf16.msra.mxu0 %v903_v13  ;;  %865 = vmatpush3.bf16.msra.mxu1 %v903_v13 }
  0x1d   : > { %824 = vmatprep.subr.bf16.mxu0 %v904_v14  ;;  %858 = vmatprep.subr.bf16.mxu1 %v904_v14 }
  0x20   : > { %825 = vmatpush3.bf16.msra.mxu0 %v905_v15  ;;  %866 = vmatpush3.bf16.msra.mxu1 %v905_v15 }
  0x21   : > { %826 = vmatprep.subr.bf16.mxu0 %v906_v16  ;;  %859 = vmatprep.subr.bf16.mxu1 %v906_v16 }
  0x24   : > { %827 = vmatpush3.bf16.msra.mxu0 %v907_v17  ;;  %867 = vmatpush3.bf16.msra.mxu1 %v907_v17 }
  0x27   : > { %497 = vmatmul.mubr.bf16.vlgmr.msra.gmra.mrb[0].mxu0 %v908_v18  ;;  %513 = vmatmul.mubr.bf16.vlgmr.msra.gmra.mrb[0].mxu1 %v911_v19 }
  0x28   : > { %504 = vmatprep.mubr.bf16.mxu0 %v914_v20  ;;  %520 = vmatprep.mubr.bf16.mxu1 %v916_v21 }
  0x2f   : > { %505 = vmatmul.mubr.bf16.gmra.mrb[4].mxu0 %v918_v22  ;;  %521 = vmatmul.mubr.bf16.gmra.mrb[4].mxu1 %v919_v23 }
  0xfa   : > { %v828_v24 = vpop.f32.mrb[0].mxu0  ;;  %v840_v25 = vpop.f32.mrb[0].mxu1 }
  0xfb   : > { %v829_v26 = vpop.f32.mrb[1].mxu0  ;;  %v841_v28 = vpop.f32.mrb[1].mxu1 }
  0xfc   : > { %v830_v29 = vadd.f32 %v829_v26, %v828_v24  ;;  %v842_v30 = vadd.f32 %v841_v28, %v840_v25  ;;  %v831_v31 = vpop.f32.mrb[2].mxu0  ;;  %v843_v32 = vpop.f32.mrb[2].mxu1 }
  0xfd   : > { %v832_v33 = vpop.f32.mrb[3].mxu0  ;;  %v844_v34 = vpop.f32.mrb[3].mxu1 }
  0xfe   : > { %v563_v35 = vadd.f32 %v830_v29, %v769_v27  ;;  %v567_v36 = vadd.f32 %v842_v30, %v769_v27  ;;  %v833_v37 = vadd.f32 %v832_v33, %v831_v31  ;;  %v845_v38 = vadd.f32 %v844_v34, %v843_v32 }
 0x100   : > { %v564_v39 = vadd.f32 %v833_v37, %v769_v27  ;;  %v568_v40 = vadd.f32 %v845_v38, %v769_v27  ;;  %v571_v41 = vmax.f32 %v563_v35, 0.0  ;;  %v575_v42 = vmax.f32 %v567_v36, 0.0 }
 0x102   : > { %v572_v43 = vmax.f32 %v564_v39, 0.0  ;;  %v576_v44 = vmax.f32 %v568_v40, 0.0  ;;  %v834_v45 = vpop.f32.mrb[4].mxu0  ;;  %v846_v46 = vpop.f32.mrb[4].mxu1 }
 0x103   : > { %v835_v47 = vpop.f32.mrb[5].mxu0  ;;  %v847_v48 = vpop.f32.mrb[5].mxu1 }
 0x104   : > { %v792_v49 = vpack.c.bf16 %v572_v43, %v571_v41  ;;  %v802_v50 = vpack.c.bf16 %v576_v44, %v575_v42  ;;  %v836_v51 = vadd.f32 %v835_v47, %v834_v45  ;;  %v848_v52 = vadd.f32 %v847_v48, %v846_v46  ;;  %v837_v53 = vpop.f32.mrb[6].mxu0  ;;  %v849_v54 = vpop.f32.mrb[6].mxu1 }
 0x105   : > { %v838_v55 = vpop.f32.mrb[7].mxu0  ;;  %v850_v56 = vpop.f32.mrb[7].mxu1 }
 0x106   : > { %793 = vst [vmem:[%s265_s8] sm:$0xff] %v792_v49   ;;  %810 = vst [vmem:[%s265_s8 + $0x10] sm:$0xff] %v802_v50   ;;  %v565_v57 = vadd.f32 %v836_v51, %v769_v27  ;;  %v569_v58 = vadd.f32 %v848_v52, %v769_v27  ;;  %v839_v59 = vadd.f32 %v838_v55, %v837_v53 }
 0x107   : > { %v851_v60 = vadd.f32 %v850_v56, %v849_v54 }
 0x108   : > { %v566_v61 = vadd.f32 %v839_v59, %v769_v27  ;;  %v573_v63 = vmax.f32 %v565_v57, 0.0  ;;  %v577_v0 = vmax.f32 %v569_v58, 0.0 }
 0x109   : > { %v570_v62 = vadd.f32 %v851_v60, %v769_v27 }
 0x10a   : > { %v574_v1 = vmax.f32 %v566_v61, 0.0 }
 0x10b   : > { %v578_v2 = vmax.f32 %v570_v62, 0.0 }
 0x10c   : > { %v797_v3 = vpack.c.bf16 %v574_v1, %v573_v63 }
 0x10d   : > { %v807_v4 = vpack.c.bf16 %v578_v2, %v577_v0 }
 0x10e   : > { %809 = vst [vmem:[%s265_s8 + $0x8] sm:$0xff] %v797_v3  }
 0x10f   : > { %811 = vst [vmem:[%s265_s8 + $0x18] sm:$0xff] %v807_v4  }
 0x110 PF: > { %s13_s14 = sadd.s32 1, %s942_s14   ;;  %s1066_s12 = smov %s938_s13 }
 0x111   : > { %p10_p5 = scmp.ge.s32.totalorder %s13_s14, 4   ;;  %s1067_s13 = smov %s1069_s15 }
 0x113   :  { %12 = sbr.rel (!%p10_p5) target bundleno = 2 (0x2), region = 76 }

// kernel: ssd_forward.12
= control target key start
LH: loop header
LB: loop body
LE: loop exit
PB: predicated region body
PF: predicated region fallthrough
CT: control target
= control target key end

     0   :  { %s1281_s12 = smov 0   ;;  %s1283_s13 = smov 0   ;;  %s1454_s0 = inlined_call_operand.vmem [shape: bf16[128,512], index: 0, kind: input, shape index: {}]   ;;  %s1455_s1 = inlined_call_operand.vmem [shape: bf16[512,128], index: 1, kind: input, shape index: {}]   ;;  %s1456_s2 = inlined_call_operand.vmem [shape: f32[1,128], index: 2, kind: input, shape index: {}]   ;;  %s1457_s3 = inlined_call_operand.vmem [shape: bf16[128,128], index: 3, kind: output, shape index: {}]  }
   0x1   :  { %s1285_s14 = smov 0  }
   0x2 LB: > { %s32_s15 = sadd.s32 1, %s1255_s13  ;;  %p980_p0 = scmp.ge.s32.totalorder %s1259_s14, 1  ;;  %s1259_s14 = sphi %s1285_s14, %s13_s14   ;;  %s1255_s13 = sphi %s1283_s13, %s1459_s13   ;;  %s1251_s12 = sphi %s1281_s12, %s1458_s12  }
   0x3   : > { %p34_p1 = scmp.ge.s32.totalorder %s32_s15, 2  ;;  %p191_p2 = scmp.lt.s32.totalorder %s1259_s14, 3 }
   0x5   : > { %s1461_s15 = smov (%p34_p1, %s32_s15), 0  ;;  %p192_p3 = pnand %p980_p0, %p191_p2 }
   0x6   : > { %v1181_v0 = vld [vmem:[%s1455_s1 + $0x40] sm:$0xff] (!%p192_p3)   ;;  %v1185_v4 = vld [vmem:[%s1455_s1 + $0x48] sm:$0xff] (!%p192_p3)   ;;  %v1189_v8 = vld [vmem:[%s1455_s1 + $0x50] sm:$0xff] (!%p192_p3)   ;;  %s981_s25 = sshll.u32 (!%p192_p3), %s1251_s12, 3 }
   0x7   : > { %195 = sbr.rel (%p192_p3) target bundleno = 291 (0x123), region = 32  ;;  %v1182_v1 = vld [vmem:[%s1455_s1 + $0xc0] sm:$0xff] (!%p192_p3)   ;;  %1077 = vmatprep.subr.bf16.mxu0 (!%p192_p3), %v1181_v0  ;;  %v1186_v5 = vld [vmem:[%s1455_s1 + $0xc8] sm:$0xff] (!%p192_p3)   ;;  %v1190_v9 = vld [vmem:[%s1455_s1 + $0xd0] sm:$0xff] (!%p192_p3)   ;;  %p236_p4 = scmp.lt.s32.totalorder (!%p192_p3), %s981_s25, 15 }
   0x8   : > { %v1183_v2 = vld [vmem:[%s1455_s1] sm:$0xff] (!%p192_p3)   ;;  %1117 = vmatprep.subr.bf16.mxu1 (!%p192_p3), %v1182_v1  ;;  %v1187_v6 = vld [vmem:[%s1455_s1 + $0x8] sm:$0xff] (!%p192_p3)   ;;  %v1191_v10 = vld [vmem:[%s1455_s1 + $0x10] sm:$0xff] (!%p192_p3)  }
   0x9   : > { %v1184_v3 = vld [vmem:[%s1455_s1 + $0x80] sm:$0xff] (!%p192_p3)   ;;  %1078 = vmatpush3.bf16.msra.mxu0 (!%p192_p3), %v1183_v2  ;;  %v1188_v7 = vld [vmem:[%s1455_s1 + $0x88] sm:$0xff] (!%p192_p3)   ;;  %v1192_v11 = vld [vmem:[%s1455_s1 + $0x90] sm:$0xff] (!%p192_p3)  }
   0xa   : > { %1118 = vmatpush3.bf16.msra.mxu1 (!%p192_p3), %v1184_v3  ;;  %1079 = vmatprep.subr.bf16.mxu0 (!%p192_p3), %v1185_v4  ;;  %v1193_v12 = vld [vmem:[%s1455_s1 + $0x58] sm:$0xff] (!%p192_p3)   ;;  %v1197_v16 = vld [vmem:[%s1455_s1 + $0x60] sm:$0xff] (!%p192_p3)   ;;  %v1201_v20 = vld [vmem:[%s1455_s1 + $0x68] sm:$0xff] (!%p192_p3)  }
   0xb   : > { %1119 = vmatprep.subr.bf16.mxu1 (!%p192_p3), %v1186_v5  ;;  %v1194_v13 = vld [vmem:[%s1455_s1 + $0xd8] sm:$0xff] (!%p192_p3)   ;;  %v1198_v17 = vld [vmem:[%s1455_s1 + $0xe0] sm:$0xff] (!%p192_p3)   ;;  %v1202_v21 = vld [vmem:[%s1455_s1 + $0xe8] sm:$0xff] (!%p192_p3)  }
   0xc   : > { %v1195_v14 = vld [vmem:[%s1455_s1 + $0x18] sm:$0xff] (!%p192_p3)   ;;  %v1199_v18 = vld [vmem:[%s1455_s1 + $0x20] sm:$0xff] (!%p192_p3)   ;;  %v1203_v22 = vld [vmem:[%s1455_s1 + $0x28] sm:$0xff] (!%p192_p3)  }
   0xd   : > { %1080 = vmatpush3.bf16.msra.mxu0 (!%p192_p3), %v1187_v6  ;;  %v1196_v15 = vld [vmem:[%s1455_s1 + $0x98] sm:$0xff] (!%p192_p3)   ;;  %v1200_v19 = vld [vmem:[%s1455_s1 + $0xa0] sm:$0xff] (!%p192_p3)   ;;  %v1204_v23 = vld [vmem:[%s1455_s1 + $0xa8] sm:$0xff] (!%p192_p3)  }
   0xe   : > { %1120 = vmatpush3.bf16.msra.mxu1 %v1188_v7  ;;  %1081 = vmatprep.subr.bf16.mxu0 %v1189_v8  ;;  %s1463_s25 = smov (!%p236_p4, %s981_s25), 15  ;;  %v1205_v24 = vld [vmem:[%s1455_s1 + $0x70] sm:$0xff]   ;;  %v1209_v28 = vld [vmem:[%s1455_s1 + $0x78] sm:$0xff]   ;;  %v1425_v57 = vld [vmem:[%s1456_s2] ss:$0 sm:$0xff] }
   0xf   : > { %1121 = vmatprep.subr.bf16.mxu1 %v1190_v9  ;;  %v1206_v25 = vld [vmem:[%s1455_s1 + $0xf0] sm:$0xff]   ;;  %s1045_s24 = sshll.u32 %s1463_s25, 4  ;;  %v1210_v29 = vld [vmem:[%s1455_s1 + $0xf8] sm:$0xff]   ;;  %s985_s17 = sshll.u32 %s1463_s25, 2 }
  0x10   : > { %v1207_v26 = vld [vmem:[%s1455_s1 + $0x30] sm:$0xff]   ;;  %s1398_s12 = scalar_lea.vmem %s1454_s0, %s1045_s24  ;;  %v1211_v30 = vld [vmem:[%s1455_s1 + $0x38] sm:$0xff]   ;;  %s1433_s20 = scalar_lea.vmem %s1457_s3, %s985_s17 }
  0x11   : > { %1082 = vmatpush3.bf16.msra.mxu0 %v1191_v10  ;;  %v1208_v27 = vld [vmem:[%s1455_s1 + $0xb0] sm:$0xff]   ;;  %v1212_v31 = vld [vmem:[%s1455_s1 + $0xb8] sm:$0xff]  }
  0x12   : > { %1122 = vmatpush3.bf16.msra.mxu1 %v1192_v11  ;;  %1083 = vmatprep.subr.bf16.mxu0 %v1193_v12  ;;  %v1213_v32 = vld [vmem:[%s1398_s12] ss:$16 sps:$4 sm:$0xff]   ;;  %v1215_v33 = vld [vmem:[%s1398_s12 + $0x4] ss:$16 sps:$4 sm:$0xff]   ;;  %v1216_v34 = vld [vmem:[%s1398_s12 + $0x8] ss:$16 sps:$4 sm:$0xff]  }
  0x13   : > { %1123 = vmatprep.subr.bf16.mxu1 %v1194_v13  ;;  %v1218_v35 = vld [vmem:[%s1398_s12 + $0xc] ss:$16 sps:$4 sm:$0xff]   ;;  %672 = vmatprep.mubr.bf16.mxu0 %v1215_v33  ;;  %v1219_v36 = vld [vmem:[%s1398_s12 + $0x24] ss:$16 sps:$4 sm:$0xff]   ;;  %v1223_v38 = vld [vmem:[%s1398_s12 + $0x20] ss:$16 sps:$4 sm:$0xff]  }
  0x14   : > { %737 = vmatprep.mubr.bf16.mxu1 %v1218_v35  ;;  %v1221_v37 = vld [vmem:[%s1398_s12 + $0x2c] ss:$16 sps:$4 sm:$0xff]   ;;  %v1224_v39 = vld [vmem:[%s1398_s12 + $0x28] ss:$16 sps:$4 sm:$0xff]   ;;  %v1225_v40 = vld [vmem:[%s1398_s12 + $0x44] ss:$16 sps:$4 sm:$0xff]  }
  0x15   : > { %1084 = vmatpush3.bf16.msra.mxu0 %v1195_v14  ;;  %v1227_v41 = vld [vmem:[%s1398_s12 + $0x4c] ss:$16 sps:$4 sm:$0xff]   ;;  %v1229_v42 = vld [vmem:[%s1398_s12 + $0x40] ss:$16 sps:$4 sm:$0xff]   ;;  %v1230_v43 = vld [vmem:[%s1398_s12 + $0x48] ss:$16 sps:$4 sm:$0xff]  }
  0x16   : > { %1124 = vmatpush3.bf16.msra.mxu1 %v1196_v15  ;;  %1085 = vmatprep.subr.bf16.mxu0 %v1197_v16  ;;  %v1231_v44 = vld [vmem:[%s1398_s12 + $0x64] ss:$16 sps:$4 sm:$0xff]   ;;  %v1233_v45 = vld [vmem:[%s1398_s12 + $0x6c] ss:$16 sps:$4 sm:$0xff]   ;;  %v1235_v46 = vld [vmem:[%s1398_s12 + $0x60] ss:$16 sps:$4 sm:$0xff]  }
  0x17   : > { %1125 = vmatprep.subr.bf16.mxu1 %v1198_v17  ;;  %v1236_v47 = vld [vmem:[%s1398_s12 + $0x68] ss:$16 sps:$4 sm:$0xff]  }
  0x19   : > { %1086 = vmatpush3.bf16.msra.mxu0 %v1199_v18 }
  0x1a   : > { %1126 = vmatpush3.bf16.msra.mxu1 %v1200_v19  ;;  %1087 = vmatprep.subr.bf16.mxu0 %v1201_v20 }
  0x1b   : > { %1127 = vmatprep.subr.bf16.mxu1 %v1202_v21 }
  0x1d   : > { %1088 = vmatpush3.bf16.msra.mxu0 %v1203_v22 }
  0x1e   : > { %1128 = vmatpush3.bf16.msra.mxu1 %v1204_v23  ;;  %1089 = vmatprep.subr.bf16.mxu0 %v1205_v24 }
  0x1f   : > { %1129 = vmatprep.subr.bf16.mxu1 %v1206_v25 }
  0x21   : > { %1090 = vmatpush3.bf16.msra.mxu0 %v1207_v26 }
  0x22   : > { %1130 = vmatpush3.bf16.msra.mxu1 %v1208_v27  ;;  %1091 = vmatprep.subr.bf16.mxu0 %v1209_v28 }
  0x23   : > { %1131 = vmatprep.subr.bf16.mxu1 %v1210_v29 }
  0x25   : > { %1092 = vmatpush3.bf16.msra.mxu0 %v1211_v30 }
  0x26   : > { %1132 = vmatpush3.bf16.msra.mxu1 %v1212_v31 }
  0x28   : > { %673 = vmatmul.mubr.bf16.vlgmr.msra.gmra.mrb[0].mxu0 %v1213_v32 }
  0x29   : > { %738 = vmatmul.mubr.bf16.vlgmr.msra.gmra.mrb[0].mxu1 %v1216_v34  ;;  %680 = vmatprep.mubr.bf16.mxu0 %v1219_v36 }
  0x2a   : > { %745 = vmatprep.mubr.bf16.mxu1 %v1221_v37 }
  0x30   : > { %681 = vmatmul.mubr.bf16.gmra.mrb[4].mxu0 %v1223_v38 }
  0x31   : > { %746 = vmatmul.mubr.bf16.gmra.mrb[4].mxu1 %v1224_v39  ;;  %688 = vmatprep.mubr.bf16.mxu0 %v1225_v40 }
  0x32   : > { %753 = vmatprep.mubr.bf16.mxu1 %v1227_v41 }
  0x38   : > { %689 = vmatmul.mubr.bf16.gmra.mrb[8].mxu0 %v1229_v42 }
  0x39   : > { %754 = vmatmul.mubr.bf16.gmra.mrb[8].mxu1 %v1230_v43  ;;  %696 = vmatprep.mubr.bf16.mxu0 %v1231_v44 }
  0x3a   : > { %761 = vmatprep.mubr.bf16.mxu1 %v1233_v45 }
  0x40   : > { %697 = vmatmul.mubr.bf16.gmra.mrb[12].mxu0 %v1235_v46 }
  0x41   : > { %762 = vmatmul.mubr.bf16.gmra.mrb[12].mxu1 %v1236_v47 }
  0xfb   : > { %v1093_v48 = vpop.f32.mrb[0].mxu0 }
  0xfc   : > { %v1133_v49 = vpop.f32.mrb[0].mxu1  ;;  %v1094_v50 = vpop.f32.mrb[1].mxu0 }
  0xfd   : > { %v1095_v51 = vadd.f32 %v1094_v50, %v1093_v48  ;;  %v1134_v52 = vpop.f32.mrb[1].mxu1  ;;  %v1096_v53 = vpop.f32.mrb[2].mxu0 }
  0xfe   : > { %v1135_v54 = vadd.f32 %v1134_v52, %v1133_v49  ;;  %v1136_v55 = vpop.f32.mrb[2].mxu1  ;;  %v1097_v56 = vpop.f32.mrb[3].mxu0 }
  0xff   : > { %v1098_v58 = vadd.f32 %v1097_v56, %v1096_v53  ;;  %v1137_v59 = vpop.f32.mrb[3].mxu1 }
 0x100   : > { %v740_v60 = vadd.f32 %v1135_v54, %v1095_v51  ;;  %v1138_v61 = vadd.f32 %v1137_v59, %v1136_v55 }
 0x102   : > { %v804_v62 = vadd.f32 %v1425_v57, %v740_v60  ;;  %v743_v63 = vadd.f32 %v1138_v61, %v1098_v58 }
 0x103   : > { %v1099_v0 = vpop.f32.mrb[4].mxu0 }
 0x104   : > { %v805_v1 = vadd.f32 %v1425_v57, %v743_v63  ;;  %v1139_v2 = vpop.f32.mrb[4].mxu1  ;;  %v1100_v3 = vpop.f32.mrb[5].mxu0  ;;  %v812_v7 = vmax.f32 %v804_v62, 0.0 }
 0x105   : > { %v1101_v4 = vadd.f32 %v1100_v3, %v1099_v0  ;;  %v1140_v5 = vpop.f32.mrb[5].mxu1  ;;  %v1102_v6 = vpop.f32.mrb[6].mxu0 }
 0x106   : > { %v813_v8 = vmax.f32 %v805_v1, 0.0  ;;  %v1141_v9 = vadd.f32 %v1140_v5, %v1139_v2  ;;  %v1142_v10 = vpop.f32.mrb[6].mxu1  ;;  %v1103_v11 = vpop.f32.mrb[7].mxu0 }
 0x107   : > { %v1104_v12 = vadd.f32 %v1103_v11, %v1102_v6  ;;  %v1143_v13 = vpop.f32.mrb[7].mxu1 }
 0x108   : > { %v1057_v14 = vpack.c.bf16 %v813_v8, %v812_v7  ;;  %v748_v15 = vadd.f32 %v1141_v9, %v1101_v4  ;;  %v1144_v16 = vadd.f32 %v1143_v13, %v1142_v10 }
 0x10a   : > { %1058 = vst [vmem:[%s1433_s20] sm:$0xff] %v1057_v14   ;;  %v806_v17 = vadd.f32 %v1425_v57, %v748_v15  ;;  %v751_v18 = vadd.f32 %v1144_v16, %v1104_v12 }
 0x10b   : > { %v1105_v19 = vpop.f32.mrb[8].mxu0 }
 0x10c   : > { %v807_v20 = vadd.f32 %v1425_v57, %v751_v18  ;;  %v1145_v21 = vpop.f32.mrb[8].mxu1  ;;  %v1106_v22 = vpop.f32.mrb[9].mxu0  ;;  %v814_v26 = vmax.f32 %v806_v17, 0.0 }
 0x10d   : > { %v1107_v23 = vadd.f32 %v1106_v22, %v1105_v19  ;;  %v1146_v24 = vpop.f32.mrb[9].mxu1  ;;  %v1108_v25 = vpop.f32.mrb[10].mxu0 }
 0x10e   : > { %v815_v27 = vmax.f32 %v807_v20, 0.0  ;;  %v1147_v28 = vadd.f32 %v1146_v24, %v1145_v21  ;;  %v1148_v29 = vpop.f32.mrb[10].mxu1  ;;  %v1109_v30 = vpop.f32.mrb[11].mxu0 }
 0x10f   : > { %v1110_v31 = vadd.f32 %v1109_v30, %v1108_v25  ;;  %v1149_v32 = vpop.f32.mrb[11].mxu1 }
 0x110   : > { %v1062_v33 = vpack.c.bf16 %v815_v27, %v814_v26  ;;  %v756_v34 = vadd.f32 %v1147_v28, %v1107_v23  ;;  %v1150_v35 = vadd.f32 %v1149_v32, %v1148_v29 }
 0x112   : > { %1074 = vst [vmem:[%s1433_s20 + $0x8] sm:$0xff] %v1062_v33   ;;  %v808_v36 = vadd.f32 %v1425_v57, %v756_v34  ;;  %v759_v37 = vadd.f32 %v1150_v35, %v1110_v31 }
 0x113   : > { %v1111_v38 = vpop.f32.mrb[12].mxu0 }
 0x114   : > { %v809_v39 = vadd.f32 %v1425_v57, %v759_v37  ;;  %v1151_v40 = vpop.f32.mrb[12].mxu1  ;;  %v1112_v41 = vpop.f32.mrb[13].mxu0  ;;  %v816_v45 = vmax.f32 %v808_v36, 0.0 }
 0x115   : > { %v1113_v42 = vadd.f32 %v1112_v41, %v1111_v38  ;;  %v1152_v43 = vpop.f32.mrb[13].mxu1  ;;  %v1114_v44 = vpop.f32.mrb[14].mxu0 }
 0x116   : > { %v817_v46 = vmax.f32 %v809_v39, 0.0  ;;  %v1153_v47 = vadd.f32 %v1152_v43, %v1151_v40  ;;  %v1154_v48 = vpop.f32.mrb[14].mxu1  ;;  %v1115_v49 = vpop.f32.mrb[15].mxu0 }
 0x117   : > { %v1116_v50 = vadd.f32 %v1115_v49, %v1114_v44  ;;  %v1155_v51 = vpop.f32.mrb[15].mxu1 }
 0x118   : > { %v1067_v52 = vpack.c.bf16 %v817_v46, %v816_v45  ;;  %v764_v53 = vadd.f32 %v1153_v47, %v1113_v42  ;;  %v1156_v54 = vadd.f32 %v1155_v51, %v1154_v48 }
 0x11a   : > { %1075 = vst [vmem:[%s1433_s20 + $0x10] sm:$0xff] %v1067_v52   ;;  %v810_v55 = vadd.f32 %v1425_v57, %v764_v53  ;;  %v767_v56 = vadd.f32 %v1156_v54, %v1116_v50 }
 0x11c   : > { %v811_v58 = vadd.f32 %v1425_v57, %v767_v56  ;;  %v818_v59 = vmax.f32 %v810_v55, 0.0 }
 0x11e   : > { %v819_v60 = vmax.f32 %v811_v58, 0.0 }
 0x120   : > { %v1072_v61 = vpack.c.bf16 %v819_v60, %v818_v59 }
 0x122   : > { %1076 = vst [vmem:[%s1433_s20 + $0x18] sm:$0xff] %v1072_v61  }
 0x123 PF: > { %s13_s14 = sadd.s32 1, %s1259_s14   ;;  %s1458_s12 = smov %s1255_s13 }
 0x124   : > { %p10_p5 = scmp.ge.s32.totalorder %s13_s14, 4   ;;  %s1459_s13 = smov %s1461_s15 }
 0x126   :  { %12 = sbr.rel (!%p10_p5) target bundleno = 2 (0x2), region = 76 }

// kernel: ssd_forward.14
= control target key start
LH: loop header
LB: loop body
LE: loop exit
PB: predicated region body
PF: predicated region fallthrough
CT: control target
= control target key end

     0   :  { %s993_s12 = smov 0   ;;  %s995_s13 = smov 0   ;;  %s1132_s0 = inlined_call_operand.vmem [shape: bf16[32,512], index: 0, kind: input, shape index: {}]   ;;  %s1133_s1 = inlined_call_operand.vmem [shape: bf16[512,128], index: 1, kind: input, shape index: {}]   ;;  %s1134_s2 = inlined_call_operand.vmem [shape: f32[1,128], index: 2, kind: input, shape index: {}]   ;;  %s1135_s3 = inlined_call_operand.vmem [shape: bf16[32,128], index: 3, kind: output, shape index: {}]  }
   0x1   :  { %s997_s14 = smov 0  }
   0x2 LB: > { %s32_s15 = sadd.s32 1, %s967_s13  ;;  %p788_p0 = scmp.ge.s32.totalorder %s971_s14, 1  ;;  %s971_s14 = sphi %s997_s14, %s13_s14   ;;  %s967_s13 = sphi %s995_s13, %s1137_s13   ;;  %s963_s12 = sphi %s993_s12, %s1136_s12  }
   0x3   : > { %p34_p1 = scmp.ge.s32.totalorder %s32_s15, 2  ;;  %p191_p2 = scmp.lt.s32.totalorder %s971_s14, 3 }
   0x5   : > { %s1139_s15 = smov (%p34_p1, %s32_s15), 0  ;;  %p192_p3 = pnand %p788_p0, %p191_p2 }
   0x6   : > { %v911_v0 = vld [vmem:[%s1133_s1 + $0x40] sm:$0xff] (!%p192_p3)   ;;  %v915_v4 = vld [vmem:[%s1133_s1 + $0x48] sm:$0xff] (!%p192_p3)   ;;  %v919_v8 = vld [vmem:[%s1133_s1 + $0x50] sm:$0xff] (!%p192_p3)   ;;  %s789_s25 = sshll.u32 (!%p192_p3), %s963_s12, 1 }
   0x7   : > { %195 = sbr.rel (%p192_p3) target bundleno = 267 (0x10b), region = 32  ;;  %v912_v1 = vld [vmem:[%s1133_s1 + $0xc0] sm:$0xff] (!%p192_p3)   ;;  %843 = vmatprep.subr.bf16.mxu0 (!%p192_p3), %v911_v0  ;;  %v916_v5 = vld [vmem:[%s1133_s1 + $0xc8] sm:$0xff] (!%p192_p3)   ;;  %v920_v9 = vld [vmem:[%s1133_s1 + $0xd0] sm:$0xff] (!%p192_p3)   ;;  %p236_p4 = scmp.lt.s32.totalorder (!%p192_p3), %s789_s25, 3 }
   0x8   : > { %v913_v2 = vld [vmem:[%s1133_s1] sm:$0xff] (!%p192_p3)   ;;  %865 = vmatprep.subr.bf16.mxu1 (!%p192_p3), %v912_v1  ;;  %v917_v6 = vld [vmem:[%s1133_s1 + $0x8] sm:$0xff] (!%p192_p3)   ;;  %v921_v10 = vld [vmem:[%s1133_s1 + $0x10] sm:$0xff] (!%p192_p3)  }
   0x9   : > { %v914_v3 = vld [vmem:[%s1133_s1 + $0x80] sm:$0xff] (!%p192_p3)   ;;  %844 = vmatpush3.bf16.msra.mxu0 (!%p192_p3), %v913_v2  ;;  %v918_v7 = vld [vmem:[%s1133_s1 + $0x88] sm:$0xff] (!%p192_p3)   ;;  %v922_v11 = vld [vmem:[%s1133_s1 + $0x90] sm:$0xff] (!%p192_p3)  }
   0xa   : > { %866 = vmatpush3.bf16.msra.mxu1 (!%p192_p3), %v914_v3  ;;  %845 = vmatprep.subr.bf16.mxu0 (!%p192_p3), %v915_v4  ;;  %v923_v12 = vld [vmem:[%s1133_s1 + $0x58] sm:$0xff] (!%p192_p3)   ;;  %v927_v16 = vld [vmem:[%s1133_s1 + $0x60] sm:$0xff] (!%p192_p3)   ;;  %v931_v20 = vld [vmem:[%s1133_s1 + $0x68] sm:$0xff] (!%p192_p3)  }
   0xb   : > { %867 = vmatprep.subr.bf16.mxu1 (!%p192_p3), %v916_v5  ;;  %v924_v13 = vld [vmem:[%s1133_s1 + $0xd8] sm:$0xff] (!%p192_p3)   ;;  %v928_v17 = vld [vmem:[%s1133_s1 + $0xe0] sm:$0xff] (!%p192_p3)   ;;  %v932_v21 = vld [vmem:[%s1133_s1 + $0xe8] sm:$0xff] (!%p192_p3)  }
   0xc   : > { %v925_v14 = vld [vmem:[%s1133_s1 + $0x18] sm:$0xff] (!%p192_p3)   ;;  %v929_v18 = vld [vmem:[%s1133_s1 + $0x20] sm:$0xff] (!%p192_p3)   ;;  %v933_v22 = vld [vmem:[%s1133_s1 + $0x28] sm:$0xff] (!%p192_p3)  }
   0xd   : > { %846 = vmatpush3.bf16.msra.mxu0 (!%p192_p3), %v917_v6  ;;  %v926_v15 = vld [vmem:[%s1133_s1 + $0x98] sm:$0xff] (!%p192_p3)   ;;  %v930_v19 = vld [vmem:[%s1133_s1 + $0xa0] sm:$0xff] (!%p192_p3)   ;;  %v934_v23 = vld [vmem:[%s1133_s1 + $0xa8] sm:$0xff] (!%p192_p3)  }
   0xe   : > { %868 = vmatpush3.bf16.msra.mxu1 %v918_v7  ;;  %847 = vmatprep.subr.bf16.mxu0 %v919_v8  ;;  %s1141_s25 = smov (!%p236_p4, %s789_s25), 3  ;;  %v935_v24 = vld [vmem:[%s1133_s1 + $0x70] sm:$0xff]   ;;  %v939_v28 = vld [vmem:[%s1133_s1 + $0x78] sm:$0xff]   ;;  %v830_v45 = vld [vmem:[%s1134_s2] ss:$0 sm:$0xff] }
   0xf   : > { %869 = vmatprep.subr.bf16.mxu1 %v920_v9  ;;  %v936_v25 = vld [vmem:[%s1133_s1 + $0xf0] sm:$0xff]   ;;  %s835_s24 = sshll.u32 %s1141_s25, 4  ;;  %v940_v29 = vld [vmem:[%s1133_s1 + $0xf8] sm:$0xff]   ;;  %s793_s17 = sshll.u32 %s1141_s25, 2 }
  0x10   : > { %v937_v26 = vld [vmem:[%s1133_s1 + $0x30] sm:$0xff]   ;;  %s243_s12 = scalar_lea.vmem %s1132_s0, %s835_s24  ;;  %v941_v30 = vld [vmem:[%s1133_s1 + $0x38] sm:$0xff]   ;;  %s265_s20 = scalar_lea.vmem %s1135_s3, %s793_s17 }
  0x11   : > { %848 = vmatpush3.bf16.msra.mxu0 %v921_v10  ;;  %v938_v27 = vld [vmem:[%s1133_s1 + $0xb0] sm:$0xff]   ;;  %v942_v31 = vld [vmem:[%s1133_s1 + $0xb8] sm:$0xff]  }
  0x12   : > { %870 = vmatpush3.bf16.msra.mxu1 %v922_v11  ;;  %849 = vmatprep.subr.bf16.mxu0 %v923_v12  ;;  %v943_v32 = vld [vmem:[%s243_s12] ss:$16 sps:$4 sm:$0xff]   ;;  %v945_v33 = vld [vmem:[%s243_s12 + $0x4] ss:$16 sps:$4 sm:$0xff]   ;;  %v946_v34 = vld [vmem:[%s243_s12 + $0x8] ss:$16 sps:$4 sm:$0xff]  }
  0x13   : > { %871 = vmatprep.subr.bf16.mxu1 %v924_v13  ;;  %v948_v35 = vld [vmem:[%s243_s12 + $0xc] ss:$16 sps:$4 sm:$0xff]   ;;  %588 = vmatprep.mubr.bf16.mxu0 %v945_v33 }
  0x14   : > { %629 = vmatprep.mubr.bf16.mxu1 %v948_v35 }
  0x15   : > { %850 = vmatpush3.bf16.msra.mxu0 %v925_v14 }
  0x16   : > { %872 = vmatpush3.bf16.msra.mxu1 %v926_v15  ;;  %851 = vmatprep.subr.bf16.mxu0 %v927_v16 }
  0x17   : > { %873 = vmatprep.subr.bf16.mxu1 %v928_v17 }
  0x19   : > { %852 = vmatpush3.bf16.msra.mxu0 %v929_v18 }
  0x1a   : > { %874 = vmatpush3.bf16.msra.mxu1 %v930_v19  ;;  %853 = vmatprep.subr.bf16.mxu0 %v931_v20 }
  0x1b   : > { %875 = vmatprep.subr.bf16.mxu1 %v932_v21 }
  0x1d   : > { %854 = vmatpush3.bf16.msra.mxu0 %v933_v22 }
  0x1e   : > { %876 = vmatpush3.bf16.msra.mxu1 %v934_v23  ;;  %855 = vmatprep.subr.bf16.mxu0 %v935_v24 }
  0x1f   : > { %877 = vmatprep.subr.bf16.mxu1 %v936_v25 }
  0x21   : > { %856 = vmatpush3.bf16.msra.mxu0 %v937_v26 }
  0x22   : > { %878 = vmatpush3.bf16.msra.mxu1 %v938_v27  ;;  %857 = vmatprep.subr.bf16.mxu0 %v939_v28 }
  0x23   : > { %879 = vmatprep.subr.bf16.mxu1 %v940_v29 }
  0x25   : > { %858 = vmatpush3.bf16.msra.mxu0 %v941_v30 }
  0x26   : > { %880 = vmatpush3.bf16.msra.mxu1 %v942_v31 }
  0x28   : > { %589 = vmatmul.mubr.bf16.vlgmr.msra.gmra.mrb[0].mxu0 %v943_v32 }
  0x29   : > { %630 = vmatmul.mubr.bf16.vlgmr.msra.gmra.mrb[0].mxu1 %v946_v34 }
  0xfb   : > { %v859_v36 = vpop.f32.mrb[0].mxu0 }
  0xfc   : > { %v881_v37 = vpop.f32.mrb[0].mxu1  ;;  %v860_v38 = vpop.f32.mrb[1].mxu0 }
  0xfd   : > { %v861_v39 = vadd.f32 %v860_v38, %v859_v36  ;;  %v882_v40 = vpop.f32.mrb[1].mxu1  ;;  %v862_v41 = vpop.f32.mrb[2].mxu0 }
  0xfe   : > { %v883_v42 = vadd.f32 %v882_v40, %v881_v37  ;;  %v884_v43 = vpop.f32.mrb[2].mxu1  ;;  %v863_v44 = vpop.f32.mrb[3].mxu0 }
  0xff   : > { %v864_v46 = vadd.f32 %v863_v44, %v862_v41  ;;  %v885_v47 = vpop.f32.mrb[3].mxu1 }
 0x100   : > { %v632_v48 = vadd.f32 %v883_v42, %v861_v39  ;;  %v886_v49 = vadd.f32 %v885_v47, %v884_v43 }
 0x102   : > { %v654_v50 = vadd.f32 %v830_v45, %v632_v48  ;;  %v635_v51 = vadd.f32 %v886_v49, %v864_v46 }
 0x104   : > { %v655_v52 = vadd.f32 %v830_v45, %v635_v51  ;;  %v656_v53 = vmax.f32 %v654_v50, 0.0 }
 0x106   : > { %v657_v54 = vmax.f32 %v655_v52, 0.0 }
 0x108   : > { %v841_v55 = vpack.c.bf16 %v657_v54, %v656_v53 }
 0x10a   : > { %842 = vst [vmem:[%s265_s20] sm:$0xff] %v841_v55  }
 0x10b PF: > { %s13_s14 = sadd.s32 1, %s971_s14   ;;  %s1136_s12 = smov %s967_s13 }
 0x10c   : > { %p10_p5 = scmp.ge.s32.totalorder %s13_s14, 4   ;;  %s1137_s13 = smov %s1139_s15 }
 0x10e   :  { %12 = sbr.rel (!%p10_p5) target bundleno = 2 (0x2), region = 76 }

// kernel: ssd_forward.15
= control target key start
LH: loop header
LB: loop body
LE: loop exit
PB: predicated region body
PF: predicated region fallthrough
CT: control target
= control target key end

     0   :  { %s835_s12 = smov 0   ;;  %s837_s13 = smov 0   ;;  %s961_s0 = inlined_call_operand.vmem [shape: bf16[32,768], index: 0, kind: input, shape index: {}]   ;;  %s962_s1 = inlined_call_operand.vmem [shape: bf16[768,128], index: 1, kind: input, shape index: {}]   ;;  %s963_s2 = inlined_call_operand.vmem [shape: f32[1,128], index: 2, kind: input, shape index: {}]   ;;  %s964_s3 = inlined_call_operand.vmem [shape: f32[32,128], index: 3, kind: output, shape index: {}]  }
   0x1   :  { %s839_s14 = smov 0   ;;  %s841_s15 = smov 0  }
   0x2   :  { %s843_s16 = smov 0   ;;  %s845_s17 = smov 0  }
   0x3   :  { %s847_s18 = smov 0  }
   0x4 LB: > { %s25_s19 = sadd.s32 1, %s804_s16  ;;  %s32_s20 = sadd.s32 1, %s808_s17  ;;  %s812_s18 = sphi %s847_s18, %s13_s18   ;;  %s808_s17 = sphi %s845_s17, %s970_s17   ;;  %s804_s16 = sphi %s843_s16, %s969_s16   ;;  %s800_s15 = sphi %s841_s15, %s968_s15   ;;  %s796_s14 = sphi %s839_s14, %s967_s14   ;;  %s792_s13 = sphi %s837_s13, %s966_s13   ;;  %s788_s12 = sphi %s835_s12, %s965_s12  }
   0x5   : > { %p26_p0 = scmp.ge.s32.totalorder %s25_s19, 3  ;;  %p48_p1 = scmp.ne.s32.totalorder %s792_s13, %s788_s12 }
   0x6   : > { %p49_p2 = scmp.eq.s32.totalorder %s812_s18, 0  ;;  %s41_s24 = sadd.s32 1, %s792_s13 }
   0x7   : > { %s972_s19 = smov (%p26_p0, %s25_s19), 0  ;;  %s974_s20 = smov (!%p26_p0, %s32_s20), %s808_s17 }
   0x8   : > { %p50_p3 = por %p49_p2, %p48_p1  ;;  %p34_p4 = scmp.ge.s32.totalorder %s974_s20, 2 }
   0x9   : > { %s37_s21 = ssub.s32 %s804_s16, %s972_s19  ;;  %p624_p6 = scmp.ge.s32.totalorder %s812_s18, 6 }
   0xa   : > { %s976_s20 = smov (%p34_p4, %s974_s20), 0 }
   0xb   : > { %s36_s22 = ssub.s32 %s808_s17, %s976_s20  ;;  %162 = sbr.rel (%p624_p6) target bundleno = 27 (0x1b), region = 20 }
   0xc   : > { %s38_s23 = sor.u32 %s37_s21, %s36_s22 }
   0xd   : > { %p39_p5 = scmp.eq.s32.totalorder %s38_s23, 0 }
   0xf   : > { %s886_s25 = scalar_select %p39_p5, %s792_s13, %s41_s24  }
  0x12   : > { %165 = sbr.rel (!%p50_p3) target bundleno = 27 (0x1b), region = 24  ;;  %s167_s26 = sand.u32 (%p50_p3), 1, %s792_s13  }
  0x13   : > { %s627_s27 = sshll.u32 (%p50_p3), %s804_s16, 1  ;;  %s625_s28 = sshll.u32 (%p50_p3), %s167_s26, 4 }
  0x14   : > { %s681_s29 = smul.u32 (%p50_p3), 12, %s808_s17  ;;  %s169_s8 = scalar_lea.vmem (%p50_p3), [#allocation3], %s625_s28 }
  0x16   : > { %s173_s30 = sadd.s32 (%p50_p3), %s681_s29, %s627_s27 }
  0x17   : > { %s629_s4 = sshll.u32 (%p50_p3), %s173_s30, 2 }
  0x18   : > { %s175_s7 = scalar_lea.vmem (%p50_p3), %s961_s0, %s629_s4 }
  0x19   : > { %v205_v0 = vld [vmem:[%s175_s7] sm:$0xff]  ;;  %v207_v1 = vld [vmem:[%s175_s7 + $0x18] sm:$0xff] }
  0x1a   : > { %206 = vst [vmem:[%s169_s8] sm:$0xff] %v205_v0  ;;  %208 = vst [vmem:[%s169_s8 + $0x8] sm:$0xff] %v207_v1 }
  0x1b PF: > { %p630_p7 = scmp.ge.s32.totalorder %s812_s18, 1  ;;  %p225_p8 = scmp.lt.s32.totalorder %s812_s18, 7 }
  0x1d   : > { %p226_p9 = pnand %p630_p7, %p225_p8 }
  0x1e   : > { %s232_s9 = sand.u32 (!%p226_p9), 1, %s788_s12   ;;  %s632_s10 = sshll.u32 (!%p226_p9), %s796_s14, 5 }
  0x1f   : > { %229 = sbr.rel (%p226_p9) target bundleno = 311 (0x137), region = 66  ;;  %s899_s11 = sshll.u32 (!%p226_p9), %s232_s9, 4 }
  0x20   : > { %p272_p10 = scmp.lt.s32.totalorder (!%p226_p9), %s632_s10, 95  ;;  %s634_s21 = sshll.u32 (!%p226_p9), %s800_s15, 1 }
  0x21   : > { %p284_p11 = scmp.lt.s32.totalorder (!%p226_p9), %s634_s21, 3  ;;  %s234_s30 = scalar_lea.vmem (!%p226_p9), [#allocation3], %s899_s11 }
  0x22   : > { %p636_p12 = scmp.ne.s32.totalorder (!%p226_p9), %s796_s14, 0 }
  0x26   : > { %s978_s10 = smov (!%p272_p10, %s632_s10), 95  ;;  %s980_s21 = smov (!%p284_p11, %s634_s21), 3 }
  0x27   : > { %s633_s22 = sshll.u32 %s978_s10, 2  ;;  %s635_s27 = sshll.u32 %s980_s21, 3  ;;  %v814_v2 = vmov (!%p636_p12), 0.0  }
  0x28   : > { %s905_s26 = scalar_lea.vmem %s962_s1, %s633_s22  ;;  %s910_s12 = scalar_lea.vmem %s964_s3, %s635_s27  ;;  %297 = vst [vmem:[#allocation2] sm:$0xff] (!%p636_p12), %v814_v2  ;;  %298 = vst [vmem:[#allocation2 + $0x8] sm:$0xff] (!%p636_p12), %v814_v2 }
  0x29   : > { %296 = sbr.rel (%p636_p12) target bundleno = 48 (0x30), region = 74 }
  0x30 PF: > { %v739_v3 = vld [vmem:[%s905_s26 + $0x40] sm:$0xff]   ;;  %v741_v5 = vld [vmem:[%s905_s26 + $0x48] sm:$0xff]   ;;  %v743_v7 = vld [vmem:[%s905_s26 + $0x50] sm:$0xff]   ;;  %p655_p13 = scmp.ne.s32.totalorder %s796_s14, 2 }
  0x31   : > { %v740_v4 = vld [vmem:[%s905_s26] sm:$0xff]   ;;  %659 = vmatprep.subr.bf16.mxu0 %v739_v3  ;;  %v742_v6 = vld [vmem:[%s905_s26 + $0x8] sm:$0xff]   ;;  %v744_v8 = vld [vmem:[%s905_s26 + $0x10] sm:$0xff]  }
  0x32   : > { %660 = vmatpush3.bf16.msra.mxu0 %v740_v4  ;;  %v745_v9 = vld [vmem:[%s905_s26 + $0x58] sm:$0xff]   ;;  %v747_v11 = vld [vmem:[%s905_s26 + $0x60] sm:$0xff]   ;;  %v749_v13 = vld [vmem:[%s905_s26 + $0x68] sm:$0xff]  }
  0x33   : > { %661 = vmatprep.subr.bf16.mxu0 %v741_v5  ;;  %v746_v10 = vld [vmem:[%s905_s26 + $0x18] sm:$0xff]   ;;  %v748_v12 = vld [vmem:[%s905_s26 + $0x20] sm:$0xff]   ;;  %v750_v15 = vld [vmem:[%s905_s26 + $0x28] sm:$0xff]  }
  0x34   : > { %v757_v14 = vld [vmem:[%s234_s30 + $0x4] ss:$8 sps:$4 sm:$0xff]   ;;  %v755_v20 = vld [vmem:[%s234_s30] ss:$8 sps:$4 sm:$0xff]  }
  0x35   : > { %473 = vmatprep.mubr.bf16.mxu0 %v757_v14  ;;  %v751_v16 = vld [vmem:[%s905_s26 + $0x70] sm:$0xff]   ;;  %v753_v18 = vld [vmem:[%s905_s26 + $0x78] sm:$0xff]   ;;  %v299_v22 = vld [vmem:[#allocation2] sm:$0xff] }
  0x36   : > { %662 = vmatpush3.bf16.msra.mxu0 %v742_v6  ;;  %v752_v17 = vld [vmem:[%s905_s26 + $0x30] sm:$0xff]   ;;  %v754_v19 = vld [vmem:[%s905_s26 + $0x38] sm:$0xff]   ;;  %v300_v26 = vld [vmem:[#allocation2 + $0x8] sm:$0xff] }
  0x37   : > { %663 = vmatprep.subr.bf16.mxu0 %v743_v7  ;;  %v656_v32 = vld [vmem:[%s963_s2] ss:$0 sm:$0xff] (!%p655_p13) }
  0x3a   : > { %664 = vmatpush3.bf16.msra.mxu0 %v744_v8 }
  0x3b   : > { %665 = vmatprep.subr.bf16.mxu0 %v745_v9 }
  0x3e   : > { %666 = vmatpush3.bf16.msra.mxu0 %v746_v10 }
  0x3f   : > { %667 = vmatprep.subr.bf16.mxu0 %v747_v11 }
  0x42   : > { %668 = vmatpush3.bf16.msra.mxu0 %v748_v12 }
  0x43   : > { %669 = vmatprep.subr.bf16.mxu0 %v749_v13 }
  0x46   : > { %670 = vmatpush3.bf16.msra.mxu0 %v750_v15 }
  0x47   : > { %671 = vmatprep.subr.bf16.mxu0 %v751_v16 }
  0x4a   : > { %672 = vmatpush3.bf16.msra.mxu0 %v752_v17 }
  0x4b   : > { %673 = vmatprep.subr.bf16.mxu0 %v753_v18 }
  0x4e   : > { %674 = vmatpush3.bf16.msra.mxu0 %v754_v19 }
  0x51   : > { %474 = vmatmul.mubr.bf16.vlgmr.msra.gmra.mrb[0].mxu0 %v755_v20 }
 0x124   : > { %v675_v21 = vpop.f32.mrb[0].mxu0 }
 0x125   : > { %v676_v23 = vpop.f32.mrb[1].mxu0 }
 0x126   : > { %v677_v24 = vadd.f32 %v676_v23, %v675_v21  ;;  %v678_v25 = vpop.f32.mrb[2].mxu0  ;;  %489 = sbr.rel (%p655_p13) target bundleno = 311 (0x137), region = 78 }
 0x127   : > { %v679_v27 = vpop.f32.mrb[3].mxu0 }
 0x128   : > { %v482_v28 = vadd.f32 %v677_v24, %v299_v22  ;;  %v680_v29 = vadd.f32 %v679_v27, %v678_v25 }
 0x12a   : > { %484 = vst [vmem:[#allocation2] sm:$0xff] %v482_v28  ;;  %v483_v30 = vadd.f32 %v680_v29, %v300_v26 }
 0x12c   : > { %485 = vst [vmem:[#allocation2 + $0x8] sm:$0xff] %v483_v30 }
 0x131   : > { %v490_v31 = vld [vmem:[#allocation2] sm:$0xff] }
 0x132   : > { %v499_v34 = vadd.f32 %v656_v32, %v490_v31 }
 0x133   : > { %v491_v33 = vld [vmem:[#allocation2 + $0x8] sm:$0xff] }
 0x134   : > { %v500_v35 = vadd.f32 %v656_v32, %v491_v33  ;;  %501 = vst [vmem:[%s910_s12] sm:$0xff] %v499_v34 }
 0x136   : > { %502 = vst [vmem:[%s910_s12 + $0x8] sm:$0xff] %v500_v35 }
 0x137 PF: > { %s13_s18 = sadd.s32 1, %s812_s18   ;;  %s965_s12 = smov %s792_s13 }
 0x138   : > { %p10_p0 = scmp.ge.s32.totalorder %s13_s18, 8   ;;  %s966_s13 = smov %s886_s25 }
 0x139   : > { %s967_s14 = smov %s804_s16  ;;  %s968_s15 = smov %s808_s17 }
 0x13a   : > { %s969_s16 = smov %s972_s19  ;;  %s970_s17 = smov %s976_s20 }
 0x13b   :  { %12 = sbr.rel (!%p10_p0) target bundleno = 4 (0x4), region = 119 }

// kernel: ssd_forward.13
= control target key start
LH: loop header
LB: loop body
LE: loop exit
PB: predicated region body
PF: predicated region fallthrough
CT: control target
= control target key end

     0   :  { %s1202_s12 = smov 0   ;;  %s1204_s13 = smov 0   ;;  %s1379_s0 = inlined_call_operand.vmem [shape: bf16[128,512], index: 0, kind: input, shape index: {}]   ;;  %s1380_s1 = inlined_call_operand.vmem [shape: bf16[512,128], index: 1, kind: input, shape index: {}]   ;;  %s1381_s2 = inlined_call_operand.vmem [shape: f32[1,128], index: 2, kind: input, shape index: {}]   ;;  %s1382_s3 = inlined_call_operand.vmem [shape: f32[128,128], index: 3, kind: output, shape index: {}]  }
   0x1   :  { %s1206_s14 = smov 0  }
   0x2 LB: > { %s32_s15 = sadd.s32 1, %s1176_s13  ;;  %p940_p0 = scmp.ge.s32.totalorder %s1180_s14, 1  ;;  %s1180_s14 = sphi %s1206_s14, %s13_s14   ;;  %s1176_s13 = sphi %s1204_s13, %s1384_s13   ;;  %s1172_s12 = sphi %s1202_s12, %s1383_s12  }
   0x3   : > { %p34_p1 = scmp.ge.s32.totalorder %s32_s15, 2  ;;  %p191_p2 = scmp.lt.s32.totalorder %s1180_s14, 3 }
   0x5   : > { %s1386_s15 = smov (%p34_p1, %s32_s15), 0  ;;  %p192_p3 = pnand %p940_p0, %p191_p2 }
   0x6   : > { %v1102_v0 = vld [vmem:[%s1380_s1 + $0x40] sm:$0xff] (!%p192_p3)   ;;  %v1106_v4 = vld [vmem:[%s1380_s1 + $0x48] sm:$0xff] (!%p192_p3)   ;;  %v1110_v8 = vld [vmem:[%s1380_s1 + $0x50] sm:$0xff] (!%p192_p3)   ;;  %s941_s25 = sshll.u32 (!%p192_p3), %s1172_s12, 3 }
   0x7   : > { %195 = sbr.rel (%p192_p3) target bundleno = 287 (0x11f), region = 32  ;;  %v1103_v1 = vld [vmem:[%s1380_s1 + $0xc0] sm:$0xff] (!%p192_p3)   ;;  %998 = vmatprep.subr.bf16.mxu0 (!%p192_p3), %v1102_v0  ;;  %v1107_v5 = vld [vmem:[%s1380_s1 + $0xc8] sm:$0xff] (!%p192_p3)   ;;  %v1111_v9 = vld [vmem:[%s1380_s1 + $0xd0] sm:$0xff] (!%p192_p3)   ;;  %p236_p4 = scmp.lt.s32.totalorder (!%p192_p3), %s941_s25, 15 }
   0x8   : > { %v1104_v2 = vld [vmem:[%s1380_s1] sm:$0xff] (!%p192_p3)   ;;  %1038 = vmatprep.subr.bf16.mxu1 (!%p192_p3), %v1103_v1  ;;  %v1108_v6 = vld [vmem:[%s1380_s1 + $0x8] sm:$0xff] (!%p192_p3)   ;;  %v1112_v10 = vld [vmem:[%s1380_s1 + $0x10] sm:$0xff] (!%p192_p3)  }
   0x9   : > { %v1105_v3 = vld [vmem:[%s1380_s1 + $0x80] sm:$0xff] (!%p192_p3)   ;;  %999 = vmatpush3.bf16.msra.mxu0 (!%p192_p3), %v1104_v2  ;;  %v1109_v7 = vld [vmem:[%s1380_s1 + $0x88] sm:$0xff] (!%p192_p3)   ;;  %v1113_v11 = vld [vmem:[%s1380_s1 + $0x90] sm:$0xff] (!%p192_p3)  }
   0xa   : > { %1039 = vmatpush3.bf16.msra.mxu1 (!%p192_p3), %v1105_v3  ;;  %1000 = vmatprep.subr.bf16.mxu0 (!%p192_p3), %v1106_v4  ;;  %v1114_v12 = vld [vmem:[%s1380_s1 + $0x58] sm:$0xff] (!%p192_p3)   ;;  %v1118_v16 = vld [vmem:[%s1380_s1 + $0x60] sm:$0xff] (!%p192_p3)   ;;  %v1122_v20 = vld [vmem:[%s1380_s1 + $0x68] sm:$0xff] (!%p192_p3)  }
   0xb   : > { %1040 = vmatprep.subr.bf16.mxu1 (!%p192_p3), %v1107_v5  ;;  %v1115_v13 = vld [vmem:[%s1380_s1 + $0xd8] sm:$0xff] (!%p192_p3)   ;;  %v1119_v17 = vld [vmem:[%s1380_s1 + $0xe0] sm:$0xff] (!%p192_p3)   ;;  %v1123_v21 = vld [vmem:[%s1380_s1 + $0xe8] sm:$0xff] (!%p192_p3)  }
   0xc   : > { %v1116_v14 = vld [vmem:[%s1380_s1 + $0x18] sm:$0xff] (!%p192_p3)   ;;  %v1120_v18 = vld [vmem:[%s1380_s1 + $0x20] sm:$0xff] (!%p192_p3)   ;;  %v1124_v22 = vld [vmem:[%s1380_s1 + $0x28] sm:$0xff] (!%p192_p3)  }
   0xd   : > { %1001 = vmatpush3.bf16.msra.mxu0 (!%p192_p3), %v1108_v6  ;;  %v1117_v15 = vld [vmem:[%s1380_s1 + $0x98] sm:$0xff] (!%p192_p3)   ;;  %v1121_v19 = vld [vmem:[%s1380_s1 + $0xa0] sm:$0xff] (!%p192_p3)   ;;  %v1125_v23 = vld [vmem:[%s1380_s1 + $0xa8] sm:$0xff] (!%p192_p3)  }
   0xe   : > { %1041 = vmatpush3.bf16.msra.mxu1 %v1109_v7  ;;  %1002 = vmatprep.subr.bf16.mxu0 %v1110_v8  ;;  %s1388_s25 = smov (!%p236_p4, %s941_s25), 15  ;;  %v1126_v24 = vld [vmem:[%s1380_s1 + $0x70] sm:$0xff]   ;;  %v1130_v28 = vld [vmem:[%s1380_s1 + $0x78] sm:$0xff]   ;;  %v1347_v57 = vld [vmem:[%s1381_s2] ss:$0 sm:$0xff] }
   0xf   : > { %1042 = vmatprep.subr.bf16.mxu1 %v1111_v9  ;;  %v1127_v25 = vld [vmem:[%s1380_s1 + $0xf0] sm:$0xff]   ;;  %s997_s24 = sshll.u32 %s1388_s25, 4  ;;  %v1131_v29 = vld [vmem:[%s1380_s1 + $0xf8] sm:$0xff]   ;;  %s945_s11 = sshll.u32 %s1388_s25, 3 }
  0x10   : > { %v1128_v26 = vld [vmem:[%s1380_s1 + $0x30] sm:$0xff]   ;;  %s1319_s12 = scalar_lea.vmem %s1379_s0, %s997_s24  ;;  %v1132_v30 = vld [vmem:[%s1380_s1 + $0x38] sm:$0xff]   ;;  %s1352_s20 = scalar_lea.vmem %s1382_s3, %s945_s11 }
  0x11   : > { %1003 = vmatpush3.bf16.msra.mxu0 %v1112_v10  ;;  %v1129_v27 = vld [vmem:[%s1380_s1 + $0xb0] sm:$0xff]   ;;  %v1133_v31 = vld [vmem:[%s1380_s1 + $0xb8] sm:$0xff]  }
  0x12   : > { %1043 = vmatpush3.bf16.msra.mxu1 %v1113_v11  ;;  %1004 = vmatprep.subr.bf16.mxu0 %v1114_v12  ;;  %v1134_v32 = vld [vmem:[%s1319_s12] ss:$16 sps:$4 sm:$0xff]   ;;  %v1136_v33 = vld [vmem:[%s1319_s12 + $0x4] ss:$16 sps:$4 sm:$0xff]   ;;  %v1137_v34 = vld [vmem:[%s1319_s12 + $0x8] ss:$16 sps:$4 sm:$0xff]  }
  0x13   : > { %1044 = vmatprep.subr.bf16.mxu1 %v1115_v13  ;;  %v1139_v35 = vld [vmem:[%s1319_s12 + $0xc] ss:$16 sps:$4 sm:$0xff]   ;;  %672 = vmatprep.mubr.bf16.mxu0 %v1136_v33  ;;  %v1140_v36 = vld [vmem:[%s1319_s12 + $0x24] ss:$16 sps:$4 sm:$0xff]   ;;  %v1144_v38 = vld [vmem:[%s1319_s12 + $0x20] ss:$16 sps:$4 sm:$0xff]  }
  0x14   : > { %737 = vmatprep.mubr.bf16.mxu1 %v1139_v35  ;;  %v1142_v37 = vld [vmem:[%s1319_s12 + $0x2c] ss:$16 sps:$4 sm:$0xff]   ;;  %v1145_v39 = vld [vmem:[%s1319_s12 + $0x28] ss:$16 sps:$4 sm:$0xff]   ;;  %v1146_v40 = vld [vmem:[%s1319_s12 + $0x44] ss:$16 sps:$4 sm:$0xff]  }
  0x15   : > { %1005 = vmatpush3.bf16.msra.mxu0 %v1116_v14  ;;  %v1148_v41 = vld [vmem:[%s1319_s12 + $0x4c] ss:$16 sps:$4 sm:$0xff]   ;;  %v1150_v42 = vld [vmem:[%s1319_s12 + $0x40] ss:$16 sps:$4 sm:$0xff]   ;;  %v1151_v43 = vld [vmem:[%s1319_s12 + $0x48] ss:$16 sps:$4 sm:$0xff]  }
  0x16   : > { %1045 = vmatpush3.bf16.msra.mxu1 %v1117_v15  ;;  %1006 = vmatprep.subr.bf16.mxu0 %v1118_v16  ;;  %v1152_v44 = vld [vmem:[%s1319_s12 + $0x64] ss:$16 sps:$4 sm:$0xff]   ;;  %v1154_v45 = vld [vmem:[%s1319_s12 + $0x6c] ss:$16 sps:$4 sm:$0xff]   ;;  %v1156_v46 = vld [vmem:[%s1319_s12 + $0x60] ss:$16 sps:$4 sm:$0xff]  }
  0x17   : > { %1046 = vmatprep.subr.bf16.mxu1 %v1119_v17  ;;  %v1157_v47 = vld [vmem:[%s1319_s12 + $0x68] ss:$16 sps:$4 sm:$0xff]  }
  0x19   : > { %1007 = vmatpush3.bf16.msra.mxu0 %v1120_v18 }
  0x1a   : > { %1047 = vmatpush3.bf16.msra.mxu1 %v1121_v19  ;;  %1008 = vmatprep.subr.bf16.mxu0 %v1122_v20 }
  0x1b   : > { %1048 = vmatprep.subr.bf16.mxu1 %v1123_v21 }
  0x1d   : > { %1009 = vmatpush3.bf16.msra.mxu0 %v1124_v22 }
  0x1e   : > { %1049 = vmatpush3.bf16.msra.mxu1 %v1125_v23  ;;  %1010 = vmatprep.subr.bf16.mxu0 %v1126_v24 }
  0x1f   : > { %1050 = vmatprep.subr.bf16.mxu1 %v1127_v25 }
  0x21   : > { %1011 = vmatpush3.bf16.msra.mxu0 %v1128_v26 }
  0x22   : > { %1051 = vmatpush3.bf16.msra.mxu1 %v1129_v27  ;;  %1012 = vmatprep.subr.bf16.mxu0 %v1130_v28 }
  0x23   : > { %1052 = vmatprep.subr.bf16.mxu1 %v1131_v29 }
  0x25   : > { %1013 = vmatpush3.bf16.msra.mxu0 %v1132_v30 }
  0x26   : > { %1053 = vmatpush3.bf16.msra.mxu1 %v1133_v31 }
  0x28   : > { %673 = vmatmul.mubr.bf16.vlgmr.msra.gmra.mrb[0].mxu0 %v1134_v32 }
  0x29   : > { %738 = vmatmul.mubr.bf16.vlgmr.msra.gmra.mrb[0].mxu1 %v1137_v34  ;;  %680 = vmatprep.mubr.bf16.mxu0 %v1140_v36 }
  0x2a   : > { %745 = vmatprep.mubr.bf16.mxu1 %v1142_v37 }
  0x30   : > { %681 = vmatmul.mubr.bf16.gmra.mrb[4].mxu0 %v1144_v38 }
  0x31   : > { %746 = vmatmul.mubr.bf16.gmra.mrb[4].mxu1 %v1145_v39  ;;  %688 = vmatprep.mubr.bf16.mxu0 %v1146_v40 }
  0x32   : > { %753 = vmatprep.mubr.bf16.mxu1 %v1148_v41 }
  0x38   : > { %689 = vmatmul.mubr.bf16.gmra.mrb[8].mxu0 %v1150_v42 }
  0x39   : > { %754 = vmatmul.mubr.bf16.gmra.mrb[8].mxu1 %v1151_v43  ;;  %696 = vmatprep.mubr.bf16.mxu0 %v1152_v44 }
  0x3a   : > { %761 = vmatprep.mubr.bf16.mxu1 %v1154_v45 }
  0x40   : > { %697 = vmatmul.mubr.bf16.gmra.mrb[12].mxu0 %v1156_v46 }
  0x41   : > { %762 = vmatmul.mubr.bf16.gmra.mrb[12].mxu1 %v1157_v47 }
  0xfb   : > { %v1014_v48 = vpop.f32.mrb[0].mxu0 }
  0xfc   : > { %v1054_v49 = vpop.f32.mrb[0].mxu1  ;;  %v1015_v50 = vpop.f32.mrb[1].mxu0 }
  0xfd   : > { %v1016_v51 = vadd.f32 %v1015_v50, %v1014_v48  ;;  %v1055_v52 = vpop.f32.mrb[1].mxu1  ;;  %v1017_v53 = vpop.f32.mrb[2].mxu0 }
  0xfe   : > { %v1056_v54 = vadd.f32 %v1055_v52, %v1054_v49  ;;  %v1057_v55 = vpop.f32.mrb[2].mxu1  ;;  %v1018_v56 = vpop.f32.mrb[3].mxu0 }
  0xff   : > { %v1019_v58 = vadd.f32 %v1018_v56, %v1017_v53  ;;  %v1058_v59 = vpop.f32.mrb[3].mxu1 }
 0x100   : > { %v740_v60 = vadd.f32 %v1056_v54, %v1016_v51  ;;  %v1059_v61 = vadd.f32 %v1058_v59, %v1057_v55 }
 0x102   : > { %v804_v62 = vadd.f32 %v1347_v57, %v740_v60  ;;  %v743_v63 = vadd.f32 %v1059_v61, %v1019_v58 }
 0x103   : > { %v1020_v0 = vpop.f32.mrb[4].mxu0 }
 0x104   : > { %812 = vst [vmem:[%s1352_s20] sm:$0xff] %v804_v62  ;;  %v805_v1 = vadd.f32 %v1347_v57, %v743_v63  ;;  %v1060_v2 = vpop.f32.mrb[4].mxu1  ;;  %v1021_v3 = vpop.f32.mrb[5].mxu0 }
 0x105   : > { %v1022_v4 = vadd.f32 %v1021_v3, %v1020_v0  ;;  %v1061_v5 = vpop.f32.mrb[5].mxu1  ;;  %v1023_v6 = vpop.f32.mrb[6].mxu0 }
 0x106   : > { %813 = vst [vmem:[%s1352_s20 + $0x8] sm:$0xff] %v805_v1  ;;  %v1062_v7 = vadd.f32 %v1061_v5, %v1060_v2  ;;  %v1063_v8 = vpop.f32.mrb[6].mxu1  ;;  %v1024_v9 = vpop.f32.mrb[7].mxu0 }
 0x107   : > { %v1025_v10 = vadd.f32 %v1024_v9, %v1023_v6  ;;  %v1064_v11 = vpop.f32.mrb[7].mxu1 }
 0x108   : > { %v748_v12 = vadd.f32 %v1062_v7, %v1022_v4  ;;  %v1065_v13 = vadd.f32 %v1064_v11, %v1063_v8 }
 0x10a   : > { %v806_v14 = vadd.f32 %v1347_v57, %v748_v12  ;;  %v751_v15 = vadd.f32 %v1065_v13, %v1025_v10 }
 0x10b   : > { %v1026_v16 = vpop.f32.mrb[8].mxu0 }
 0x10c   : > { %814 = vst [vmem:[%s1352_s20 + $0x10] sm:$0xff] %v806_v14  ;;  %v807_v17 = vadd.f32 %v1347_v57, %v751_v15  ;;  %v1066_v18 = vpop.f32.mrb[8].mxu1  ;;  %v1027_v19 = vpop.f32.mrb[9].mxu0 }
 0x10d   : > { %v1028_v20 = vadd.f32 %v1027_v19, %v1026_v16  ;;  %v1067_v21 = vpop.f32.mrb[9].mxu1  ;;  %v1029_v22 = vpop.f32.mrb[10].mxu0 }
 0x10e   : > { %815 = vst [vmem:[%s1352_s20 + $0x18] sm:$0xff] %v807_v17  ;;  %v1068_v23 = vadd.f32 %v1067_v21, %v1066_v18  ;;  %v1069_v24 = vpop.f32.mrb[10].mxu1  ;;  %v1030_v25 = vpop.f32.mrb[11].mxu0 }
 0x10f   : > { %v1031_v26 = vadd.f32 %v1030_v25, %v1029_v22  ;;  %v1070_v27 = vpop.f32.mrb[11].mxu1 }
 0x110   : > { %v756_v28 = vadd.f32 %v1068_v23, %v1028_v20  ;;  %v1071_v29 = vadd.f32 %v1070_v27, %v1069_v24 }
 0x112   : > { %v808_v30 = vadd.f32 %v1347_v57, %v756_v28  ;;  %v759_v31 = vadd.f32 %v1071_v29, %v1031_v26 }
 0x113   : > { %v1032_v32 = vpop.f32.mrb[12].mxu0 }
 0x114   : > { %816 = vst [vmem:[%s1352_s20 + $0x20] sm:$0xff] %v808_v30  ;;  %v809_v33 = vadd.f32 %v1347_v57, %v759_v31  ;;  %v1072_v34 = vpop.f32.mrb[12].mxu1  ;;  %v1033_v35 = vpop.f32.mrb[13].mxu0 }
 0x115   : > { %v1034_v36 = vadd.f32 %v1033_v35, %v1032_v32  ;;  %v1073_v37 = vpop.f32.mrb[13].mxu1  ;;  %v1035_v38 = vpop.f32.mrb[14].mxu0 }
 0x116   : > { %817 = vst [vmem:[%s1352_s20 + $0x28] sm:$0xff] %v809_v33  ;;  %v1074_v39 = vadd.f32 %v1073_v37, %v1072_v34  ;;  %v1075_v40 = vpop.f32.mrb[14].mxu1  ;;  %v1036_v41 = vpop.f32.mrb[15].mxu0 }
 0x117   : > { %v1037_v42 = vadd.f32 %v1036_v41, %v1035_v38  ;;  %v1076_v43 = vpop.f32.mrb[15].mxu1 }
 0x118   : > { %v764_v44 = vadd.f32 %v1074_v39, %v1034_v36  ;;  %v1077_v45 = vadd.f32 %v1076_v43, %v1075_v40 }
 0x11a   : > { %v810_v46 = vadd.f32 %v1347_v57, %v764_v44  ;;  %v767_v47 = vadd.f32 %v1077_v45, %v1037_v42 }
 0x11c   : > { %818 = vst [vmem:[%s1352_s20 + $0x30] sm:$0xff] %v810_v46  ;;  %v811_v48 = vadd.f32 %v1347_v57, %v767_v47 }
 0x11e   : > { %819 = vst [vmem:[%s1352_s20 + $0x38] sm:$0xff] %v811_v48 }
 0x11f PF: > { %s13_s14 = sadd.s32 1, %s1180_s14   ;;  %s1383_s12 = smov %s1176_s13 }
 0x120   : > { %p10_p5 = scmp.ge.s32.totalorder %s13_s14, 4   ;;  %s1384_s13 = smov %s1386_s15 }
 0x122   :  { %12 = sbr.rel (!%p10_p5) target bundleno = 2 (0x2), region = 76 }

// kernel: ssd_forward.10
= control target key start
LH: loop header
LB: loop body
LE: loop exit
PB: predicated region body
PF: predicated region fallthrough
CT: control target
= control target key end

     0   :  { %s1425_s12 = smov 0   ;;  %s1427_s13 = smov 0   ;;  %s1618_s0 = inlined_call_operand.vmem [shape: bf16[512,256], index: 0, kind: input, shape index: {}]   ;;  %s1619_s1 = inlined_call_operand.vmem [shape: bf16[256,128], index: 1, kind: input, shape index: {}]   ;;  %s1620_s2 = inlined_call_operand.vmem [shape: f32[1,128], index: 2, kind: input, shape index: {}]   ;;  %s1621_s3 = inlined_call_operand.vmem [shape: f32[512,128], index: 3, kind: output, shape index: {}]  }
   0x1   :  { %s1429_s14 = smov 0  }
   0x2 LB: > { %s32_s15 = sadd.s32 1, %s1399_s13  ;;  %p1107_p0 = scmp.ge.s32.totalorder %s1403_s14, 1  ;;  %s1403_s14 = sphi %s1429_s14, %s13_s14   ;;  %s1399_s13 = sphi %s1427_s13, %s1623_s13   ;;  %s1395_s12 = sphi %s1425_s12, %s1622_s12  }
   0x3   : > { %p34_p1 = scmp.ge.s32.totalorder %s32_s15, 2  ;;  %p191_p2 = scmp.lt.s32.totalorder %s1403_s14, 3 }
   0x5   : > { %s1625_s15 = smov (%p34_p1, %s32_s15), 0  ;;  %p192_p3 = pnand %p1107_p0, %p191_p2 }
   0x6   : > { %v1317_v0 = vld [vmem:[%s1619_s1 + $0x40] sm:$0xff] (!%p192_p3)   ;;  %s1108_s18 = sshll.u32 (!%p192_p3), %s1395_s12, 5  ;;  %v1319_v2 = vld [vmem:[%s1619_s1 + $0x48] sm:$0xff] (!%p192_p3)   ;;  %v1321_v4 = vld [vmem:[%s1619_s1 + $0x50] sm:$0xff] (!%p192_p3)  }
   0x7   : > { %195 = sbr.rel (%p192_p3) target bundleno = 315 (0x13b), region = 32  ;;  %v1318_v1 = vld [vmem:[%s1619_s1] sm:$0xff] (!%p192_p3)   ;;  %1165 = vmatprep.subr.bf16.mxu0 (!%p192_p3), %v1317_v0  ;;  %1277 = vmatprep.subr.bf16.mxu1 (!%p192_p3), %v1317_v0  ;;  %v1320_v3 = vld [vmem:[%s1619_s1 + $0x8] sm:$0xff] (!%p192_p3)   ;;  %p236_p4 = scmp.lt.s32.totalorder (!%p192_p3), %s1108_s18, 63  ;;  %v1322_v5 = vld [vmem:[%s1619_s1 + $0x10] sm:$0xff] (!%p192_p3)  }
   0x8   : > { %1166 = vmatpush3.bf16.msra.mxu0 (!%p192_p3), %v1318_v1  ;;  %1285 = vmatpush3.bf16.msra.mxu1 (!%p192_p3), %v1318_v1  ;;  %v1323_v6 = vld [vmem:[%s1619_s1 + $0x58] sm:$0xff] (!%p192_p3)   ;;  %v1325_v8 = vld [vmem:[%s1619_s1 + $0x60] sm:$0xff] (!%p192_p3)   ;;  %v1327_v10 = vld [vmem:[%s1619_s1 + $0x68] sm:$0xff] (!%p192_p3)  }
   0x9   : > { %1167 = vmatprep.subr.bf16.mxu0 (!%p192_p3), %v1319_v2  ;;  %1278 = vmatprep.subr.bf16.mxu1 (!%p192_p3), %v1319_v2  ;;  %v1324_v7 = vld [vmem:[%s1619_s1 + $0x18] sm:$0xff] (!%p192_p3)   ;;  %v1326_v9 = vld [vmem:[%s1619_s1 + $0x20] sm:$0xff] (!%p192_p3)   ;;  %v1328_v13 = vld [vmem:[%s1619_s1 + $0x28] sm:$0xff] (!%p192_p3)  }
   0xa   : > { %v1329_v14 = vld [vmem:[%s1619_s1 + $0x70] sm:$0xff] (!%p192_p3)   ;;  %v1331_v16 = vld [vmem:[%s1619_s1 + $0x78] sm:$0xff] (!%p192_p3)   ;;  %v1536_v51 = vld [vmem:[%s1620_s2] ss:$0 sm:$0xff] (!%p192_p3) }
   0xb   : > { %v1330_v15 = vld [vmem:[%s1619_s1 + $0x30] sm:$0xff] (!%p192_p3)   ;;  %v1332_v17 = vld [vmem:[%s1619_s1 + $0x38] sm:$0xff] (!%p192_p3)  }
   0xc   : > { %1168 = vmatpush3.bf16.msra.mxu0 (!%p192_p3), %v1320_v3  ;;  %1286 = vmatpush3.bf16.msra.mxu1 (!%p192_p3), %v1320_v3 }
   0xd   : > { %1169 = vmatprep.subr.bf16.mxu0 (!%p192_p3), %v1321_v4  ;;  %1279 = vmatprep.subr.bf16.mxu1 (!%p192_p3), %v1321_v4 }
   0xe   : > { %s1627_s18 = smov (!%p236_p4, %s1108_s18), 63 }
   0xf   : > { %s1164_s6 = sshll.u32 %s1627_s18, 3 }
  0x10   : > { %1170 = vmatpush3.bf16.msra.mxu0 %v1322_v5  ;;  %1287 = vmatpush3.bf16.msra.mxu1 %v1322_v5  ;;  %s1478_s11 = scalar_lea.vmem %s1618_s0, %s1164_s6  ;;  %s1543_s8 = scalar_lea.vmem %s1621_s3, %s1164_s6 }
  0x11   : > { %1171 = vmatprep.subr.bf16.mxu0 %v1323_v6  ;;  %1280 = vmatprep.subr.bf16.mxu1 %v1323_v6  ;;  %v1335_v11 = vld [vmem:[%s1478_s11 + $0x4] ss:$8 sps:$4 sm:$0xff]   ;;  %v1333_v18 = vld [vmem:[%s1478_s11] ss:$8 sps:$4 sm:$0xff]   ;;  %v1339_v20 = vld [vmem:[%s1478_s11 + $0x14] ss:$8 sps:$4 sm:$0xff]  }
  0x12   : > { %v1338_v12 = vld [vmem:[%s1478_s11 + $0x84] ss:$8 sps:$4 sm:$0xff]   ;;  %688 = vmatprep.mubr.bf16.mxu0 %v1335_v11  ;;  %v1336_v19 = vld [vmem:[%s1478_s11 + $0x80] ss:$8 sps:$4 sm:$0xff]   ;;  %v1341_v21 = vld [vmem:[%s1478_s11 + $0x94] ss:$8 sps:$4 sm:$0xff]  }
  0x13   : > { %752 = vmatprep.mubr.bf16.mxu1 %v1338_v12  ;;  %v1343_v22 = vld [vmem:[%s1478_s11 + $0x10] ss:$8 sps:$4 sm:$0xff]   ;;  %v1345_v24 = vld [vmem:[%s1478_s11 + $0x24] ss:$8 sps:$4 sm:$0xff]   ;;  %v1349_v26 = vld [vmem:[%s1478_s11 + $0x20] ss:$8 sps:$4 sm:$0xff]  }
  0x14   : > { %1172 = vmatpush3.bf16.msra.mxu0 %v1324_v7  ;;  %1288 = vmatpush3.bf16.msra.mxu1 %v1324_v7  ;;  %v1344_v23 = vld [vmem:[%s1478_s11 + $0x90] ss:$8 sps:$4 sm:$0xff]   ;;  %v1347_v25 = vld [vmem:[%s1478_s11 + $0xa4] ss:$8 sps:$4 sm:$0xff]   ;;  %v1350_v27 = vld [vmem:[%s1478_s11 + $0xa0] ss:$8 sps:$4 sm:$0xff]  }
  0x15   : > { %1173 = vmatprep.subr.bf16.mxu0 %v1325_v8  ;;  %1281 = vmatprep.subr.bf16.mxu1 %v1325_v8  ;;  %v1351_v28 = vld [vmem:[%s1478_s11 + $0x34] ss:$8 sps:$4 sm:$0xff]   ;;  %v1355_v30 = vld [vmem:[%s1478_s11 + $0x30] ss:$8 sps:$4 sm:$0xff]   ;;  %v1357_v32 = vld [vmem:[%s1478_s11 + $0x44] ss:$8 sps:$4 sm:$0xff]  }
  0x16   : > { %v1353_v29 = vld [vmem:[%s1478_s11 + $0xb4] ss:$8 sps:$4 sm:$0xff]   ;;  %v1356_v31 = vld [vmem:[%s1478_s11 + $0xb0] ss:$8 sps:$4 sm:$0xff]   ;;  %v1359_v33 = vld [vmem:[%s1478_s11 + $0xc4] ss:$8 sps:$4 sm:$0xff]  }
  0x17   : > { %v1361_v34 = vld [vmem:[%s1478_s11 + $0x40] ss:$8 sps:$4 sm:$0xff]   ;;  %v1363_v36 = vld [vmem:[%s1478_s11 + $0x54] ss:$8 sps:$4 sm:$0xff]   ;;  %v1367_v38 = vld [vmem:[%s1478_s11 + $0x50] ss:$8 sps:$4 sm:$0xff]  }
  0x18   : > { %1174 = vmatpush3.bf16.msra.mxu0 %v1326_v9  ;;  %1289 = vmatpush3.bf16.msra.mxu1 %v1326_v9  ;;  %v1362_v35 = vld [vmem:[%s1478_s11 + $0xc0] ss:$8 sps:$4 sm:$0xff]   ;;  %v1365_v37 = vld [vmem:[%s1478_s11 + $0xd4] ss:$8 sps:$4 sm:$0xff]   ;;  %v1368_v39 = vld [vmem:[%s1478_s11 + $0xd0] ss:$8 sps:$4 sm:$0xff]  }
  0x19   : > { %1175 = vmatprep.subr.bf16.mxu0 %v1327_v10  ;;  %1282 = vmatprep.subr.bf16.mxu1 %v1327_v10  ;;  %v1369_v40 = vld [vmem:[%s1478_s11 + $0x64] ss:$8 sps:$4 sm:$0xff]   ;;  %v1373_v42 = vld [vmem:[%s1478_s11 + $0x60] ss:$8 sps:$4 sm:$0xff]   ;;  %v1375_v44 = vld [vmem:[%s1478_s11 + $0x74] ss:$8 sps:$4 sm:$0xff]  }
  0x1a   : > { %v1371_v41 = vld [vmem:[%s1478_s11 + $0xe4] ss:$8 sps:$4 sm:$0xff]   ;;  %v1374_v43 = vld [vmem:[%s1478_s11 + $0xe0] ss:$8 sps:$4 sm:$0xff]   ;;  %v1377_v45 = vld [vmem:[%s1478_s11 + $0xf4] ss:$8 sps:$4 sm:$0xff]  }
  0x1b   : > { %v1379_v46 = vld [vmem:[%s1478_s11 + $0x70] ss:$8 sps:$4 sm:$0xff]  }
  0x1c   : > { %1176 = vmatpush3.bf16.msra.mxu0 %v1328_v13  ;;  %1290 = vmatpush3.bf16.msra.mxu1 %v1328_v13  ;;  %v1380_v47 = vld [vmem:[%s1478_s11 + $0xf0] ss:$8 sps:$4 sm:$0xff]  }
  0x1d   : > { %1177 = vmatprep.subr.bf16.mxu0 %v1329_v14  ;;  %1283 = vmatprep.subr.bf16.mxu1 %v1329_v14 }
  0x20   : > { %1178 = vmatpush3.bf16.msra.mxu0 %v1330_v15  ;;  %1291 = vmatpush3.bf16.msra.mxu1 %v1330_v15 }
  0x21   : > { %1179 = vmatprep.subr.bf16.mxu0 %v1331_v16  ;;  %1284 = vmatprep.subr.bf16.mxu1 %v1331_v16 }
  0x24   : > { %1180 = vmatpush3.bf16.msra.mxu0 %v1332_v17  ;;  %1292 = vmatpush3.bf16.msra.mxu1 %v1332_v17 }
  0x27   : > { %689 = vmatmul.mubr.bf16.vlgmr.msra.gmra.mrb[0].mxu0 %v1333_v18  ;;  %753 = vmatmul.mubr.bf16.vlgmr.msra.gmra.mrb[0].mxu1 %v1336_v19 }
  0x28   : > { %696 = vmatprep.mubr.bf16.mxu0 %v1339_v20  ;;  %760 = vmatprep.mubr.bf16.mxu1 %v1341_v21 }
  0x2f   : > { %697 = vmatmul.mubr.bf16.gmra.mrb[4].mxu0 %v1343_v22  ;;  %761 = vmatmul.mubr.bf16.gmra.mrb[4].mxu1 %v1344_v23 }
  0x30   : > { %704 = vmatprep.mubr.bf16.mxu0 %v1345_v24  ;;  %768 = vmatprep.mubr.bf16.mxu1 %v1347_v25 }
  0x37   : > { %705 = vmatmul.mubr.bf16.gmra.mrb[8].mxu0 %v1349_v26  ;;  %769 = vmatmul.mubr.bf16.gmra.mrb[8].mxu1 %v1350_v27 }
  0x38   : > { %712 = vmatprep.mubr.bf16.mxu0 %v1351_v28  ;;  %776 = vmatprep.mubr.bf16.mxu1 %v1353_v29 }
  0x3f   : > { %713 = vmatmul.mubr.bf16.gmra.mrb[12].mxu0 %v1355_v30  ;;  %777 = vmatmul.mubr.bf16.gmra.mrb[12].mxu1 %v1356_v31 }
  0x40   : > { %720 = vmatprep.mubr.bf16.mxu0 %v1357_v32  ;;  %784 = vmatprep.mubr.bf16.mxu1 %v1359_v33 }
  0x47   : > { %721 = vmatmul.mubr.bf16.gmra.mrb[16].mxu0 %v1361_v34  ;;  %785 = vmatmul.mubr.bf16.gmra.mrb[16].mxu1 %v1362_v35 }
  0x48   : > { %728 = vmatprep.mubr.bf16.mxu0 %v1363_v36  ;;  %792 = vmatprep.mubr.bf16.mxu1 %v1365_v37 }
  0x4f   : > { %729 = vmatmul.mubr.bf16.gmra.mrb[20].mxu0 %v1367_v38  ;;  %793 = vmatmul.mubr.bf16.gmra.mrb[20].mxu1 %v1368_v39 }
  0x50   : > { %736 = vmatprep.mubr.bf16.mxu0 %v1369_v40  ;;  %800 = vmatprep.mubr.bf16.mxu1 %v1371_v41 }
  0x57   : > { %737 = vmatmul.mubr.bf16.gmra.mrb[24].mxu0 %v1373_v42  ;;  %801 = vmatmul.mubr.bf16.gmra.mrb[24].mxu1 %v1374_v43 }
  0x58   : > { %744 = vmatprep.mubr.bf16.mxu0 %v1375_v44  ;;  %808 = vmatprep.mubr.bf16.mxu1 %v1377_v45 }
  0x5f   : > { %745 = vmatmul.mubr.bf16.gmra.mrb[28].mxu0 %v1379_v46  ;;  %809 = vmatmul.mubr.bf16.gmra.mrb[28].mxu1 %v1380_v47 }
  0xfa   : > { %v1181_v48 = vpop.f32.mrb[0].mxu0  ;;  %v1229_v49 = vpop.f32.mrb[0].mxu1 }
  0xfb   : > { %v1182_v50 = vpop.f32.mrb[1].mxu0  ;;  %v1230_v52 = vpop.f32.mrb[1].mxu1 }
  0xfc   : > { %v1183_v53 = vadd.f32 %v1182_v50, %v1181_v48  ;;  %v1231_v54 = vadd.f32 %v1230_v52, %v1229_v49  ;;  %v1184_v55 = vpop.f32.mrb[2].mxu0  ;;  %v1232_v56 = vpop.f32.mrb[2].mxu1 }
  0xfd   : > { %v1185_v57 = vpop.f32.mrb[3].mxu0  ;;  %v1233_v58 = vpop.f32.mrb[3].mxu1 }
  0xfe   : > { %v923_v59 = vadd.f32 %v1183_v53, %v1536_v51  ;;  %v939_v60 = vadd.f32 %v1231_v54, %v1536_v51  ;;  %v1186_v61 = vadd.f32 %v1185_v57, %v1184_v55  ;;  %v1234_v62 = vadd.f32 %v1233_v58, %v1232_v56 }
 0x100   : > { %955 = vst [vmem:[%s1543_s8] sm:$0xff] %v923_v59  ;;  %971 = vst [vmem:[%s1543_s8 + $0x80] sm:$0xff] %v939_v60  ;;  %v924_v63 = vadd.f32 %v1186_v61, %v1536_v51  ;;  %v940_v0 = vadd.f32 %v1234_v62, %v1536_v51 }
 0x102   : > { %956 = vst [vmem:[%s1543_s8 + $0x8] sm:$0xff] %v924_v63  ;;  %972 = vst [vmem:[%s1543_s8 + $0x88] sm:$0xff] %v940_v0  ;;  %v1187_v1 = vpop.f32.mrb[4].mxu0  ;;  %v1235_v2 = vpop.f32.mrb[4].mxu1 }
 0x103   : > { %v1188_v3 = vpop.f32.mrb[5].mxu0  ;;  %v1236_v4 = vpop.f32.mrb[5].mxu1 }
 0x104   : > { %v1189_v5 = vadd.f32 %v1188_v3, %v1187_v1  ;;  %v1237_v6 = vadd.f32 %v1236_v4, %v1235_v2  ;;  %v1190_v7 = vpop.f32.mrb[6].mxu0  ;;  %v1238_v8 = vpop.f32.mrb[6].mxu1 }
 0x105   : > { %v1191_v9 = vpop.f32.mrb[7].mxu0  ;;  %v1239_v10 = vpop.f32.mrb[7].mxu1 }
 0x106   : > { %v925_v11 = vadd.f32 %v1189_v5, %v1536_v51  ;;  %v941_v12 = vadd.f32 %v1237_v6, %v1536_v51  ;;  %v1192_v13 = vadd.f32 %v1191_v9, %v1190_v7  ;;  %v1240_v14 = vadd.f32 %v1239_v10, %v1238_v8 }
 0x108   : > { %957 = vst [vmem:[%s1543_s8 + $0x10] sm:$0xff] %v925_v11  ;;  %973 = vst [vmem:[%s1543_s8 + $0x90] sm:$0xff] %v941_v12  ;;  %v926_v15 = vadd.f32 %v1192_v13, %v1536_v51  ;;  %v942_v16 = vadd.f32 %v1240_v14, %v1536_v51 }
 0x10a   : > { %958 = vst [vmem:[%s1543_s8 + $0x18] sm:$0xff] %v926_v15  ;;  %974 = vst [vmem:[%s1543_s8 + $0x98] sm:$0xff] %v942_v16  ;;  %v1193_v17 = vpop.f32.mrb[8].mxu0  ;;  %v1241_v18 = vpop.f32.mrb[8].mxu1 }
 0x10b   : > { %v1194_v19 = vpop.f32.mrb[9].mxu0  ;;  %v1242_v20 = vpop.f32.mrb[9].mxu1 }
 0x10c   : > { %v1195_v21 = vadd.f32 %v1194_v19, %v1193_v17  ;;  %v1243_v22 = vadd.f32 %v1242_v20, %v1241_v18  ;;  %v1196_v23 = vpop.f32.mrb[10].mxu0  ;;  %v1244_v24 = vpop.f32.mrb[10].mxu1 }
 0x10d   : > { %v1197_v25 = vpop.f32.mrb[11].mxu0  ;;  %v1245_v26 = vpop.f32.mrb[11].mxu1 }
 0x10e   : > { %v927_v27 = vadd.f32 %v1195_v21, %v1536_v51  ;;  %v943_v28 = vadd.f32 %v1243_v22, %v1536_v51  ;;  %v1198_v29 = vadd.f32 %v1197_v25, %v1196_v23  ;;  %v1246_v30 = vadd.f32 %v1245_v26, %v1244_v24 }
 0x110   : > { %959 = vst [vmem:[%s1543_s8 + $0x20] sm:$0xff] %v927_v27  ;;  %975 = vst [vmem:[%s1543_s8 + $0xa0] sm:$0xff] %v943_v28  ;;  %v928_v31 = vadd.f32 %v1198_v29, %v1536_v51  ;;  %v944_v32 = vadd.f32 %v1246_v30, %v1536_v51 }
 0x112   : > { %960 = vst [vmem:[%s1543_s8 + $0x28] sm:$0xff] %v928_v31  ;;  %976 = vst [vmem:[%s1543_s8 + $0xa8] sm:$0xff] %v944_v32  ;;  %v1199_v33 = vpop.f32.mrb[12].mxu0  ;;  %v1247_v34 = vpop.f32.mrb[12].mxu1 }
 0x113   : > { %v1200_v35 = vpop.f32.mrb[13].mxu0  ;;  %v1248_v36 = vpop.f32.mrb[13].mxu1 }
 0x114   : > { %v1201_v37 = vadd.f32 %v1200_v35, %v1199_v33  ;;  %v1249_v38 = vadd.f32 %v1248_v36, %v1247_v34  ;;  %v1202_v39 = vpop.f32.mrb[14].mxu0  ;;  %v1250_v40 = vpop.f32.mrb[14].mxu1 }
 0x115   : > { %v1203_v41 = vpop.f32.mrb[15].mxu0  ;;  %v1251_v42 = vpop.f32.mrb[15].mxu1 }
 0x116   : > { %v929_v43 = vadd.f32 %v1201_v37, %v1536_v51  ;;  %v945_v44 = vadd.f32 %v1249_v38, %v1536_v51  ;;  %v1204_v45 = vadd.f32 %v1203_v41, %v1202_v39  ;;  %v1252_v46 = vadd.f32 %v1251_v42, %v1250_v40 }
 0x118   : > { %961 = vst [vmem:[%s1543_s8 + $0x30] sm:$0xff] %v929_v43  ;;  %977 = vst [vmem:[%s1543_s8 + $0xb0] sm:$0xff] %v945_v44  ;;  %v930_v47 = vadd.f32 %v1204_v45, %v1536_v51  ;;  %v946_v48 = vadd.f32 %v1252_v46, %v1536_v51 }
 0x11a   : > { %962 = vst [vmem:[%s1543_s8 + $0x38] sm:$0xff] %v930_v47  ;;  %978 = vst [vmem:[%s1543_s8 + $0xb8] sm:$0xff] %v946_v48  ;;  %v1205_v49 = vpop.f32.mrb[16].mxu0  ;;  %v1253_v50 = vpop.f32.mrb[16].mxu1 }
 0x11b   : > { %v1206_v52 = vpop.f32.mrb[17].mxu0  ;;  %v1254_v53 = vpop.f32.mrb[17].mxu1 }
 0x11c   : > { %v1207_v54 = vadd.f32 %v1206_v52, %v1205_v49  ;;  %v1255_v55 = vadd.f32 %v1254_v53, %v1253_v50  ;;  %v1208_v56 = vpop.f32.mrb[18].mxu0  ;;  %v1256_v57 = vpop.f32.mrb[18].mxu1 }
 0x11d   : > { %v1209_v58 = vpop.f32.mrb[19].mxu0  ;;  %v1257_v59 = vpop.f32.mrb[19].mxu1 }
 0x11e   : > { %v931_v60 = vadd.f32 %v1207_v54, %v1536_v51  ;;  %v947_v61 = vadd.f32 %v1255_v55, %v1536_v51  ;;  %v1210_v62 = vadd.f32 %v1209_v58, %v1208_v56  ;;  %v1258_v63 = vadd.f32 %v1257_v59, %v1256_v57 }
 0x120   : > { %963 = vst [vmem:[%s1543_s8 + $0x40] sm:$0xff] %v931_v60  ;;  %979 = vst [vmem:[%s1543_s8 + $0xc0] sm:$0xff] %v947_v61  ;;  %v932_v0 = vadd.f32 %v1210_v62, %v1536_v51  ;;  %v948_v1 = vadd.f32 %v1258_v63, %v1536_v51 }
 0x122   : > { %964 = vst [vmem:[%s1543_s8 + $0x48] sm:$0xff] %v932_v0  ;;  %980 = vst [vmem:[%s1543_s8 + $0xc8] sm:$0xff] %v948_v1  ;;  %v1211_v2 = vpop.f32.mrb[20].mxu0  ;;  %v1259_v3 = vpop.f32.mrb[20].mxu1 }
 0x123   : > { %v1212_v4 = vpop.f32.mrb[21].mxu0  ;;  %v1260_v5 = vpop.f32.mrb[21].mxu1 }
 0x124   : > { %v1213_v6 = vadd.f32 %v1212_v4, %v1211_v2  ;;  %v1261_v7 = vadd.f32 %v1260_v5, %v1259_v3  ;;  %v1214_v8 = vpop.f32.mrb[22].mxu0  ;;  %v1262_v9 = vpop.f32.mrb[22].mxu1 }
 0x125   : > { %v1215_v10 = vpop.f32.mrb[23].mxu0  ;;  %v1263_v11 = vpop.f32.mrb[23].mxu1 }
 0x126   : > { %v933_v12 = vadd.f32 %v1213_v6, %v1536_v51  ;;  %v949_v13 = vadd.f32 %v1261_v7, %v1536_v51  ;;  %v1216_v14 = vadd.f32 %v1215_v10, %v1214_v8  ;;  %v1264_v15 = vadd.f32 %v1263_v11, %v1262_v9 }
 0x128   : > { %965 = vst [vmem:[%s1543_s8 + $0x50] sm:$0xff] %v933_v12  ;;  %981 = vst [vmem:[%s1543_s8 + $0xd0] sm:$0xff] %v949_v13  ;;  %v934_v16 = vadd.f32 %v1216_v14, %v1536_v51  ;;  %v950_v17 = vadd.f32 %v1264_v15, %v1536_v51 }
 0x12a   : > { %966 = vst [vmem:[%s1543_s8 + $0x58] sm:$0xff] %v934_v16  ;;  %982 = vst [vmem:[%s1543_s8 + $0xd8] sm:$0xff] %v950_v17  ;;  %v1217_v18 = vpop.f32.mrb[24].mxu0  ;;  %v1265_v19 = vpop.f32.mrb[24].mxu1 }
 0x12b   : > { %v1218_v20 = vpop.f32.mrb[25].mxu0  ;;  %v1266_v21 = vpop.f32.mrb[25].mxu1 }
 0x12c   : > { %v1219_v22 = vadd.f32 %v1218_v20, %v1217_v18  ;;  %v1267_v23 = vadd.f32 %v1266_v21, %v1265_v19  ;;  %v1220_v24 = vpop.f32.mrb[26].mxu0  ;;  %v1268_v25 = vpop.f32.mrb[26].mxu1 }
 0x12d   : > { %v1221_v26 = vpop.f32.mrb[27].mxu0  ;;  %v1269_v27 = vpop.f32.mrb[27].mxu1 }
 0x12e   : > { %v935_v28 = vadd.f32 %v1219_v22, %v1536_v51  ;;  %v951_v29 = vadd.f32 %v1267_v23, %v1536_v51  ;;  %v1222_v30 = vadd.f32 %v1221_v26, %v1220_v24  ;;  %v1270_v31 = vadd.f32 %v1269_v27, %v1268_v25 }
 0x130   : > { %967 = vst [vmem:[%s1543_s8 + $0x60] sm:$0xff] %v935_v28  ;;  %983 = vst [vmem:[%s1543_s8 + $0xe0] sm:$0xff] %v951_v29  ;;  %v936_v32 = vadd.f32 %v1222_v30, %v1536_v51  ;;  %v952_v33 = vadd.f32 %v1270_v31, %v1536_v51 }
 0x132   : > { %968 = vst [vmem:[%s1543_s8 + $0x68] sm:$0xff] %v936_v32  ;;  %984 = vst [vmem:[%s1543_s8 + $0xe8] sm:$0xff] %v952_v33  ;;  %v1223_v34 = vpop.f32.mrb[28].mxu0  ;;  %v1271_v35 = vpop.f32.mrb[28].mxu1 }
 0x133   : > { %v1224_v36 = vpop.f32.mrb[29].mxu0  ;;  %v1272_v37 = vpop.f32.mrb[29].mxu1 }
 0x134   : > { %v1225_v38 = vadd.f32 %v1224_v36, %v1223_v34  ;;  %v1273_v39 = vadd.f32 %v1272_v37, %v1271_v35  ;;  %v1226_v40 = vpop.f32.mrb[30].mxu0  ;;  %v1274_v41 = vpop.f32.mrb[30].mxu1 }
 0x135   : > { %v1227_v42 = vpop.f32.mrb[31].mxu0  ;;  %v1275_v43 = vpop.f32.mrb[31].mxu1 }
 0x136   : > { %v937_v44 = vadd.f32 %v1225_v38, %v1536_v51  ;;  %v953_v45 = vadd.f32 %v1273_v39, %v1536_v51  ;;  %v1228_v46 = vadd.f32 %v1227_v42, %v1226_v40  ;;  %v1276_v47 = vadd.f32 %v1275_v43, %v1274_v41 }
 0x138   : > { %969 = vst [vmem:[%s1543_s8 + $0x70] sm:$0xff] %v937_v44  ;;  %985 = vst [vmem:[%s1543_s8 + $0xf0] sm:$0xff] %v953_v45  ;;  %v938_v48 = vadd.f32 %v1228_v46, %v1536_v51  ;;  %v954_v49 = vadd.f32 %v1276_v47, %v1536_v51 }
 0x13a   : > { %970 = vst [vmem:[%s1543_s8 + $0x78] sm:$0xff] %v938_v48  ;;  %986 = vst [vmem:[%s1543_s8 + $0xf8] sm:$0xff] %v954_v49 }
 0x13b PF: > { %s13_s14 = sadd.s32 1, %s1403_s14   ;;  %s1622_s12 = smov %s1399_s13 }
 0x13c   : > { %p10_p5 = scmp.ge.s32.totalorder %s13_s14, 4   ;;  %s1623_s13 = smov %s1625_s15 }
 0x13e   :  { %12 = sbr.rel (!%p10_p5) target bundleno = 2 (0x2), region = 76 }

</bundles_post_ra>
